<compile_context>
chip_gen: v5e
topology: v5e:2x2
jax: 0.10.0
libtpu: 0.0.40
codegen_flags: <defaults>
</compile_context>

<pallas_src>
import functools

import jax
import jax.numpy as jnp
from jax.experimental import pallas as pl
from jax.experimental.pallas import tpu as pltpu

IN_DIM = 100
IN_PAD = 128             # layer-1 contraction dim padded to a full lane tile
OUT_DIM = 28 * 28        # 784
OUT_PAD = 896            # 7 * 128 -> lane-dense output stores
_MIN_TILE = 16           # multiple of 16 keeps bf16 sublane packing clean
_DEFAULT_BM_MAX = 256    # default max rows per batch tile


def _leaky_relu(x, slope=0.2):
    return jnp.where(x > 0, x, slope * x)


def generator_kernel(z_ref,
                     w1_ref, b1_ref,
                     w2_ref, b2_ref,
                     w3_ref, b3_ref,
                     w4_ref, b4_ref,
                     out_ref):
    # Layer 1: (bm,128)bf16 @ (128,256)bf16 -> f32 accum
    h = jnp.dot(z_ref[...], w1_ref[...], preferred_element_type=jnp.float32)
    h = _leaky_relu(h + b1_ref[...])
    # Layer 2: (bm,256) @ (256,512)
    h = jnp.dot(h.astype(jnp.bfloat16), w2_ref[...],
                preferred_element_type=jnp.float32)
    h = _leaky_relu(h + b2_ref[...])
    # Layer 3: (bm,512) @ (512,1024)
    h = jnp.dot(h.astype(jnp.bfloat16), w3_ref[...],
                preferred_element_type=jnp.float32)
    h = _leaky_relu(h + b3_ref[...])
    # Layer 4: (bm,1024) @ (1024,896) -> Tanh (padded cols are zeros)
    h = jnp.dot(h.astype(jnp.bfloat16), w4_ref[...],
                preferred_element_type=jnp.float32)
    # bf16 writeback halves the dominant output HBM traffic; the consumer
    # upcast fuses with the de-pad slice under jit.
    out_ref[...] = jnp.tanh(h + b4_ref[...]).astype(jnp.bfloat16)


def init_params(key):
    """Deterministic init mimicking PyTorch nn.Linear default (U[-k, k],
    k = 1/sqrt(fan_in)). Weights stored transposed: (in, out), fp32."""
    dims = [(IN_DIM, 256), (256, 512), (512, 1024), (1024, OUT_DIM)]
    params = {}
    keys = jax.random.split(key, 2 * len(dims))
    for idx, (fan_in, fan_out) in enumerate(dims):
        k = 1.0 / jnp.sqrt(jnp.float32(fan_in))
        w = jax.random.uniform(keys[2 * idx], (fan_in, fan_out),
                               minval=-k, maxval=k, dtype=jnp.float32)
        b = jax.random.uniform(keys[2 * idx + 1], (1, fan_out),
                               minval=-k, maxval=k, dtype=jnp.float32)
        params[f"w{idx + 1}"] = w
        params[f"b{idx + 1}"] = b
    return params


def prepare_params(params):
    """fp32 PyTorch-layout params -> kernel-ready (bf16 weights, lane-padded)."""
    kp = {}
    w1 = jnp.zeros((IN_PAD, 256), jnp.float32).at[:IN_DIM, :].set(params["w1"])
    kp["w1"] = w1.astype(jnp.bfloat16)
    kp["b1"] = params["b1"]
    kp["w2"] = params["w2"].astype(jnp.bfloat16)
    kp["b2"] = params["b2"]
    kp["w3"] = params["w3"].astype(jnp.bfloat16)
    kp["b3"] = params["b3"]
    w4 = jnp.zeros((1024, OUT_PAD), jnp.float32).at[:, :OUT_DIM].set(params["w4"])
    kp["w4"] = w4.astype(jnp.bfloat16)
    b4 = jnp.zeros((1, OUT_PAD), jnp.float32).at[:, :OUT_DIM].set(params["b4"])
    kp["b4"] = b4
    return kp


def _round_up(x, m):
    return ((x + m - 1) // m) * m


def _choose_bm(batch, bm_max):
    """Balanced batch tiles: bm is a multiple of 16, tiles ~equal-sized, and
    the grid keeps >=2 steps when the batch allows it (v7x has 2 TCs)."""
    bm_max = max(_MIN_TILE, _round_up(int(bm_max), _MIN_TILE))
    n_tiles = pl.cdiv(batch, bm_max)
    if n_tiles == 1 and batch >= 2 * _MIN_TILE:
        n_tiles = 2
    bm = _round_up(pl.cdiv(batch, n_tiles), _MIN_TILE)
    return bm


@functools.partial(jax.jit, static_argnames=("bm",))
def _generator_forward_impl(z, w1, b1, w2, b2, w3, b3, w4, b4, *, bm):
    B = z.shape[0]
    Bp = pl.cdiv(B, bm) * bm

    # Zero-pad batch -> Bp and features 100 -> 128; matmul LHS is bf16.
    zp = jnp.zeros((Bp, IN_PAD), jnp.float32).at[:B, :IN_DIM].set(z)
    zp = zp.astype(jnp.bfloat16)

    def resident(shape):
        # Same block every grid step -> stays resident in VMEM.
        return pl.BlockSpec(shape, lambda i: (0, 0))

    out = pl.pallas_call(
        generator_kernel,
        out_shape=jax.ShapeDtypeStruct((Bp, OUT_PAD), jnp.bfloat16),
        grid_spec=pltpu.PrefetchScalarGridSpec(
            num_scalar_prefetch=0,
            grid=(Bp // bm,),
            in_specs=[
                pl.BlockSpec((bm, IN_PAD), lambda i: (i, 0)),   # z tile
                resident(w1.shape), resident(b1.shape),
                resident(w2.shape), resident(b2.shape),
                resident(w3.shape), resident(b3.shape),
                resident(w4.shape), resident(b4.shape),
            ],
            out_specs=pl.BlockSpec((bm, OUT_PAD), lambda i: (i, 0)),
        ),
        compiler_params=pltpu.CompilerParams(
            dimension_semantics=("parallel",),
            vmem_limit_bytes=32 << 20,   # safe on v7x's 64 MiB VMEM
        ),
    )(zp, w1, b1, w2, b2, w3, b3, w4, b4)

    # De-pad + upcast to f32; fuses with the kernel output under jit.
    return out[:B, :OUT_DIM].astype(jnp.float32)


def generator_forward(z, kparams, *, bm=None):
    """z: (B, ..., 100) float32 (flattened like input.view(B, 100)).
    kparams: output of prepare_params(). Returns (B, 784) float32.
    `bm` is an optional *maximum* batch-tile size (rounded to a multiple of 16).
    NOTE: the original module's .cuda() is a device move; here the result
    simply stays on the default TPU device."""
    B = z.shape[0]
    z = z.reshape(B, IN_DIM).astype(jnp.float32)
    tile = _choose_bm(B, _DEFAULT_BM_MAX if bm is None else bm)
    return _generator_forward_impl(
        z,
        kparams["w1"], kparams["b1"],
        kparams["w2"], kparams["b2"],
        kparams["w3"], kparams["b3"],
        kparams["w4"], kparams["b4"],
        bm=tile)


def reference_forward(z, params):
    """Pure-f32 reference matching the PyTorch module semantics."""
    h = z
    for i in range(1, 4):
        h = h @ params[f"w{i}"] + params[f"b{i}"]
        h = jnp.where(h > 0, h, 0.2 * h)
    h = h @ params["w4"] + params["b4"]
    return jnp.tanh(h)


def reference_forward_bf16(z, params):
    """Reference mimicking the kernel numerics (bf16 matmul inputs, f32 accum)."""
    h = z.astype(jnp.bfloat16)
    for i in range(1, 4):
        h = jnp.dot(h, params[f"w{i}"].astype(jnp.bfloat16),
                    preferred_element_type=jnp.float32) + params[f"b{i}"]
        h = jnp.where(h > 0, h, 0.2 * h).astype(jnp.bfloat16)
    h = jnp.dot(h, params["w4"].astype(jnp.bfloat16),
                preferred_element_type=jnp.float32) + params["b4"]
    return jnp.tanh(h)


if __name__ == "__main__":
    key = jax.random.PRNGKey(0)
    pkey, zkey1, zkey2 = jax.random.split(key, 3)
    params = init_params(pkey)
    kparams = prepare_params(params)

    # Small batch (matches the module's input.view(B, 100) usage); single tile.
    B = 8
    z = jax.random.normal(zkey1, (B, IN_DIM), dtype=jnp.float32)
    out = jax.block_until_ready(generator_forward(z, kparams))
    assert out.shape == (B, OUT_DIM), out.shape
    ref_bf16 = reference_forward_bf16(z, params)
    ref_f32 = reference_forward(z, params)
    assert jnp.allclose(out, ref_bf16, atol=2e-2, rtol=2e-2), \
        "mismatch vs bf16 reference"
    assert jnp.allclose(out, ref_f32, atol=5e-2, rtol=5e-2), \
        "mismatch vs fp32 reference"

    # Slightly larger batch: exercises the >=2-step grid (balanced tiles,
    # bm rounded to a multiple of 16) and the batch zero-padding path.
    B2 = 40
    z2 = jax.random.normal(zkey2, (B2, IN_DIM), dtype=jnp.float32)
    out2 = jax.block_until_ready(generator_forward(z2, kparams))
    assert out2.shape == (B2, OUT_DIM), out2.shape
    ref2_bf16 = reference_forward_bf16(z2, params)
    assert jnp.allclose(out2, ref2_bf16, atol=2e-2, rtol=2e-2), \
        "mismatch vs bf16 reference (B=40)"

    print("KERNEL_OK")
</pallas_src>

<mosaic_0001>
module attributes {stable_mosaic.version = 11 : i64} {
  func.func @generator_kernel(%arg0: i32, %arg1: memref<16x128xbf16, #tpu.memory_space<vmem>>, %arg2: memref<128x256xbf16, #tpu.memory_space<vmem>>, %arg3: memref<1x256xf32, #tpu.memory_space<vmem>>, %arg4: memref<256x512xbf16, #tpu.memory_space<vmem>>, %arg5: memref<1x512xf32, #tpu.memory_space<vmem>>, %arg6: memref<512x1024xbf16, #tpu.memory_space<vmem>>, %arg7: memref<1x1024xf32, #tpu.memory_space<vmem>>, %arg8: memref<1024x896xbf16, #tpu.memory_space<vmem>>, %arg9: memref<1x896xf32, #tpu.memory_space<vmem>>, %arg10: memref<16x896xbf16, #tpu.memory_space<vmem>>) attributes {dimension_semantics = [#tpu.dimension_semantics<parallel>], iteration_bounds = array<i64: 1>, scalar_prefetch = 0 : i64, scratch_operands = 0 : i64, tpu.core_type = #tpu.core_type<tc>, window_params = [{transform_indices = @transform_0, window_bounds = array<i64: 16, 128>}, {pipeline_mode = #tpu.pipeline_mode<synchronous>, transform_indices = @transform_1, window_bounds = array<i64: 128, 256>}, {pipeline_mode = #tpu.pipeline_mode<synchronous>, transform_indices = @transform_2, window_bounds = array<i64: 1, 256>}, {pipeline_mode = #tpu.pipeline_mode<synchronous>, transform_indices = @transform_3, window_bounds = array<i64: 256, 512>}, {pipeline_mode = #tpu.pipeline_mode<synchronous>, transform_indices = @transform_4, window_bounds = array<i64: 1, 512>}, {pipeline_mode = #tpu.pipeline_mode<synchronous>, transform_indices = @transform_5, window_bounds = array<i64: 512, 1024>}, {pipeline_mode = #tpu.pipeline_mode<synchronous>, transform_indices = @transform_6, window_bounds = array<i64: 1, 1024>}, {pipeline_mode = #tpu.pipeline_mode<synchronous>, transform_indices = @transform_7, window_bounds = array<i64: 1024, 896>}, {pipeline_mode = #tpu.pipeline_mode<synchronous>, transform_indices = @transform_8, window_bounds = array<i64: 1, 896>}, {transform_indices = @transform_9, window_bounds = array<i64: 16, 896>}]} {
    %c0 = arith.constant 0 : index
    %c0_0 = arith.constant 0 : index
    %0 = vector.load %arg1[%c0, %c0_0] : memref<16x128xbf16, #tpu.memory_space<vmem>>, vector<16x128xbf16>
    %c0_1 = arith.constant 0 : index
    %c0_2 = arith.constant 0 : index
    %1 = vector.load %arg2[%c0_1, %c0_2] : memref<128x256xbf16, #tpu.memory_space<vmem>>, vector<128x256xbf16>
    %cst = arith.constant dense<0.000000e+00> : vector<16x256xf32>
    %2 = tpu.matmul %0, %1, %cst {dimension_numbers = #tpu.dot_dimension_numbers<[1], [0], [0], [1], [0, 0, 1, 1], [], []>} : vector<16x128xbf16>, vector<128x256xbf16>, vector<16x256xf32> -> vector<16x256xf32>
    %c0_3 = arith.constant 0 : index
    %c0_4 = arith.constant 0 : index
    %3 = vector.load %arg3[%c0_3, %c0_4] : memref<1x256xf32, #tpu.memory_space<vmem>>, vector<1x256xf32>
    %4 = vector.broadcast %3 : vector<1x256xf32> to vector<16x256xf32>
    %5 = arith.addf %2, %4 : vector<16x256xf32>
    %cst_5 = arith.constant 0.000000e+00 : f32
    %6 = vector.broadcast %cst_5 : f32 to vector<16x256xf32>
    %7 = arith.cmpf ogt, %5, %6 : vector<16x256xf32>
    %cst_6 = arith.constant 2.000000e-01 : f32
    %8 = vector.broadcast %cst_6 : f32 to vector<16x256xf32>
    %9 = arith.mulf %8, %5 : vector<16x256xf32>
    %10 = arith.select %7, %5, %9 : vector<16x256xi1>, vector<16x256xf32>
    %11 = arith.truncf %10 : vector<16x256xf32> to vector<16x256xbf16>
    %c0_7 = arith.constant 0 : index
    %c0_8 = arith.constant 0 : index
    %12 = vector.load %arg4[%c0_7, %c0_8] : memref<256x512xbf16, #tpu.memory_space<vmem>>, vector<256x512xbf16>
    %cst_9 = arith.constant dense<0.000000e+00> : vector<16x512xf32>
    %13 = tpu.matmul %11, %12, %cst_9 {dimension_numbers = #tpu.dot_dimension_numbers<[1], [0], [0], [1], [0, 0, 1, 1], [], []>} : vector<16x256xbf16>, vector<256x512xbf16>, vector<16x512xf32> -> vector<16x512xf32>
    %c0_10 = arith.constant 0 : index
    %c0_11 = arith.constant 0 : index
    %14 = vector.load %arg5[%c0_10, %c0_11] : memref<1x512xf32, #tpu.memory_space<vmem>>, vector<1x512xf32>
    %15 = vector.broadcast %14 : vector<1x512xf32> to vector<16x512xf32>
    %16 = arith.addf %13, %15 : vector<16x512xf32>
    %cst_12 = arith.constant 0.000000e+00 : f32
    %17 = vector.broadcast %cst_12 : f32 to vector<16x512xf32>
    %18 = arith.cmpf ogt, %16, %17 : vector<16x512xf32>
    %cst_13 = arith.constant 2.000000e-01 : f32
    %19 = vector.broadcast %cst_13 : f32 to vector<16x512xf32>
    %20 = arith.mulf %19, %16 : vector<16x512xf32>
    %21 = arith.select %18, %16, %20 : vector<16x512xi1>, vector<16x512xf32>
    %22 = arith.truncf %21 : vector<16x512xf32> to vector<16x512xbf16>
    %c0_14 = arith.constant 0 : index
    %c0_15 = arith.constant 0 : index
    %23 = vector.load %arg6[%c0_14, %c0_15] : memref<512x1024xbf16, #tpu.memory_space<vmem>>, vector<512x1024xbf16>
    %cst_16 = arith.constant dense<0.000000e+00> : vector<16x1024xf32>
    %24 = tpu.matmul %22, %23, %cst_16 {dimension_numbers = #tpu.dot_dimension_numbers<[1], [0], [0], [1], [0, 0, 1, 1], [], []>} : vector<16x512xbf16>, vector<512x1024xbf16>, vector<16x1024xf32> -> vector<16x1024xf32>
    %c0_17 = arith.constant 0 : index
    %c0_18 = arith.constant 0 : index
    %25 = vector.load %arg7[%c0_17, %c0_18] : memref<1x1024xf32, #tpu.memory_space<vmem>>, vector<1x1024xf32>
    %26 = vector.broadcast %25 : vector<1x1024xf32> to vector<16x1024xf32>
    %27 = arith.addf %24, %26 : vector<16x1024xf32>
    %cst_19 = arith.constant 0.000000e+00 : f32
    %28 = vector.broadcast %cst_19 : f32 to vector<16x1024xf32>
    %29 = arith.cmpf ogt, %27, %28 : vector<16x1024xf32>
    %cst_20 = arith.constant 2.000000e-01 : f32
    %30 = vector.broadcast %cst_20 : f32 to vector<16x1024xf32>
    %31 = arith.mulf %30, %27 : vector<16x1024xf32>
    %32 = arith.select %29, %27, %31 : vector<16x1024xi1>, vector<16x1024xf32>
    %33 = arith.truncf %32 : vector<16x1024xf32> to vector<16x1024xbf16>
    %c0_21 = arith.constant 0 : index
    %c0_22 = arith.constant 0 : index
    %34 = vector.load %arg8[%c0_21, %c0_22] : memref<1024x896xbf16, #tpu.memory_space<vmem>>, vector<1024x896xbf16>
    %cst_23 = arith.constant dense<0.000000e+00> : vector<16x896xf32>
    %35 = tpu.matmul %33, %34, %cst_23 {dimension_numbers = #tpu.dot_dimension_numbers<[1], [0], [0], [1], [0, 0, 1, 1], [], []>} : vector<16x1024xbf16>, vector<1024x896xbf16>, vector<16x896xf32> -> vector<16x896xf32>
    %c0_24 = arith.constant 0 : index
    %c0_25 = arith.constant 0 : index
    %36 = vector.load %arg9[%c0_24, %c0_25] : memref<1x896xf32, #tpu.memory_space<vmem>>, vector<1x896xf32>
    %37 = vector.broadcast %36 : vector<1x896xf32> to vector<16x896xf32>
    %38 = arith.addf %35, %37 : vector<16x896xf32>
    %39 = math.tanh %38 : vector<16x896xf32>
    %40 = arith.truncf %39 : vector<16x896xf32> to vector<16x896xbf16>
    %c0_26 = arith.constant 0 : index
    %c0_27 = arith.constant 0 : index
    %41 = vector.load %arg10[%c0_26, %c0_27] : memref<16x896xbf16, #tpu.memory_space<vmem>>, vector<16x896xbf16>
    tpu.vector_store %arg10[%c0_26, %c0_27], %40 {strides = array<i32>} : memref<16x896xbf16, #tpu.memory_space<vmem>>, vector<16x896xbf16>,
    return
  }
  func.func @transform_0(%arg0: i32) -> (i32, i32) {
    %c0_i32 = arith.constant 0 : i32
    %c0_i32_0 = arith.constant 0 : i32
    return %arg0, %c0_i32 : i32, i32
  }
  func.func @transform_1(%arg0: i32) -> (i32, i32) {
    %c0_i32 = arith.constant 0 : i32
    %c0_i32_0 = arith.constant 0 : i32
    %c0_i32_1 = arith.constant 0 : i32
    return %c0_i32, %c0_i32_0 : i32, i32
  }
  func.func @transform_2(%arg0: i32) -> (i32, i32) {
    %c0_i32 = arith.constant 0 : i32
    %c0_i32_0 = arith.constant 0 : i32
    %c0_i32_1 = arith.constant 0 : i32
    return %c0_i32, %c0_i32_0 : i32, i32
  }
  func.func @transform_3(%arg0: i32) -> (i32, i32) {
    %c0_i32 = arith.constant 0 : i32
    %c0_i32_0 = arith.constant 0 : i32
    %c0_i32_1 = arith.constant 0 : i32
    return %c0_i32, %c0_i32_0 : i32, i32
  }
  func.func @transform_4(%arg0: i32) -> (i32, i32) {
    %c0_i32 = arith.constant 0 : i32
    %c0_i32_0 = arith.constant 0 : i32
    %c0_i32_1 = arith.constant 0 : i32
    return %c0_i32, %c0_i32_0 : i32, i32
  }
  func.func @transform_5(%arg0: i32) -> (i32, i32) {
    %c0_i32 = arith.constant 0 : i32
    %c0_i32_0 = arith.constant 0 : i32
    %c0_i32_1 = arith.constant 0 : i32
    return %c0_i32, %c0_i32_0 : i32, i32
  }
  func.func @transform_6(%arg0: i32) -> (i32, i32) {
    %c0_i32 = arith.constant 0 : i32
    %c0_i32_0 = arith.constant 0 : i32
    %c0_i32_1 = arith.constant 0 : i32
    return %c0_i32, %c0_i32_0 : i32, i32
  }
  func.func @transform_7(%arg0: i32) -> (i32, i32) {
    %c0_i32 = arith.constant 0 : i32
    %c0_i32_0 = arith.constant 0 : i32
    %c0_i32_1 = arith.constant 0 : i32
    return %c0_i32, %c0_i32_0 : i32, i32
  }
  func.func @transform_8(%arg0: i32) -> (i32, i32) {
    %c0_i32 = arith.constant 0 : i32
    %c0_i32_0 = arith.constant 0 : i32
    %c0_i32_1 = arith.constant 0 : i32
    return %c0_i32, %c0_i32_0 : i32, i32
  }
  func.func @transform_9(%arg0: i32) -> (i32, i32) {
    %c0_i32 = arith.constant 0 : i32
    %c0_i32_0 = arith.constant 0 : i32
    return %arg0, %c0_i32 : i32, i32
  }
}

</mosaic_0001>

<bundles_post_ra>
// kernel: _generator_forward_impl.1
= control target key start
LH: loop header
LB: loop body
LE: loop exit
PB: predicated region body
PF: predicated region fallthrough
CT: control target
= control target key end

     0   :  { %14 = vsyncpa [#allocation3], 0  ;;  %s11190_s0 = inlined_call_operand.vmem [shape: bf16[16,128], index: 0, kind: input, shape index: {}]   ;;  %s11191_s1 = inlined_call_operand.hbm [shape: bf16[128,256], index: 1, kind: input, shape index: {}]   ;;  %s11192_s2 = inlined_call_operand.hbm [shape: f32[1,256], index: 2, kind: input, shape index: {}]   ;;  %s11193_s3 = inlined_call_operand.hbm [shape: bf16[256,512], index: 3, kind: input, shape index: {}]   ;;  %s11194_s4 = inlined_call_operand.hbm [shape: f32[1,512], index: 4, kind: input, shape index: {}]   ;;  %s11195_s5 = inlined_call_operand.hbm [shape: bf16[512,1024], index: 5, kind: input, shape index: {}]   ;;  %s11196_s6 = inlined_call_operand.hbm [shape: f32[1,1024], index: 6, kind: input, shape index: {}]   ;;  %s11197_s7 = inlined_call_operand.hbm [shape: bf16[1024,896], index: 7, kind: input, shape index: {}]   ;;  %s11198_s8 = inlined_call_operand.hbm [shape: f32[1,896], index: 8, kind: input, shape index: {}]   ;;  %s11199_s9 = inlined_call_operand.vmem [shape: bf16[16,896], index: 9, kind: output, shape index: {}]  }
   0x1   :  { %15 = vsyncpa [#allocation5], 0 }
   0x2   :  { %16 = vsyncpa [#allocation8], 0 }
   0x3   :  { %17 = vsyncpa [#allocation11], 0  ;;  %s39_s11 = sshll.u32 %s11192_s2, 4  ;;  %s40_s11 = int_to_ptr.hbm [resolvable:$true] %s39_s11 }
   0x4   :  { %18 = vsyncpa [#allocation14], 0  ;;  %s10721_s12 = smov [#allocation4]   ;;  %s63_s16 = sshll.u32 %s11194_s4, 4  ;;  %s64_s16 = int_to_ptr.hbm [resolvable:$true] %s63_s16 }
   0x5   :  { %s41_s13 = sshll.u32 %s10721_s12, 4  ;;  %s10722_s17 = smov [#allocation7]   ;;  %s42_s13 = int_to_ptr.vmem [resolvable:$true] %s41_s13 }
   0x6   :  { %44 = dma.hbm_to_vmem [thread:$0]  %s40_s11, 32, %s42_s13, [#allocation5]  }
   0x7   :  { %s65_s18 = sshll.u32 %s10722_s17, 4  ;;  %s87_s21 = sshll.u32 %s11196_s6, 4  ;;  %s66_s18 = int_to_ptr.vmem [resolvable:$true] %s65_s18  ;;  %s88_s21 = int_to_ptr.hbm [resolvable:$true] %s87_s21 }
   0x8   :  { %68 = dma.hbm_to_vmem [thread:$0]  %s64_s16, 64, %s66_s18, [#allocation8]  }
   0x9   :  { %s25_s23 = sshll.u32 %s11191_s1, 4  ;;  %s10723_s24 = smov [#allocation10]   ;;  %s26_s23 = int_to_ptr.hbm [resolvable:$true] %s25_s23 }
   0xa   :  { %s89_s25 = sshll.u32 %s10723_s24, 4  ;;  %s10724_s4 = smov [#allocation2]   ;;  %s90_s25 = int_to_ptr.vmem [resolvable:$true] %s89_s25 }
   0xb   :  { %92 = dma.hbm_to_vmem [thread:$0]  %s88_s21, 128, %s90_s25, [#allocation11]  }
   0xc   :  { %s27_s26 = sshll.u32 %s10724_s4, 4  ;;  %s10725_s27 = smov 128   ;;  %s28_s26 = int_to_ptr.vmem [resolvable:$true] %s27_s26 }
   0xd   :  { %s10726_s28 = smov 8   ;;  %s49_s30 = sshll.u32 %s11193_s3, 4  ;;  %s50_s30 = int_to_ptr.hbm [resolvable:$true] %s49_s30 }
   0xe   :  { %33 = dma.hbm_to_vmem [thread:$0]  %s26_s23, 2048, %s28_s26, [#allocation3], %s10725_s27, %s10725_s27, %s10726_s28  }
   0xf   :  { %s10727_s10 = smov [#allocation6]   ;;  %s73_s13 = sshll.u32 %s11195_s5, 4  ;;  %s74_s13 = int_to_ptr.hbm [resolvable:$true] %s73_s13 }
  0x10   :  { %s51_s11 = sshll.u32 %s10727_s10, 4  ;;  %s10728_s14 = smov 256   ;;  %s52_s11 = int_to_ptr.vmem [resolvable:$true] %s51_s11 }
  0x11   :  { %s10729_s15 = smov 16   ;;  %s10730_s16 = smov [#allocation9]  }
  0x12   :  { %57 = dma.hbm_to_vmem [thread:$0]  %s50_s30, 8192, %s52_s11, [#allocation5], %s10728_s14, %s10728_s14, %s10729_s15  }
  0x13   :  { %s75_s17 = sshll.u32 %s10730_s16, 4  ;;  %s10731_s18 = smov 512   ;;  %s76_s17 = int_to_ptr.vmem [resolvable:$true] %s75_s17 }
  0x14   :  { %s10732_s19 = smov 32   ;;  %s97_s21 = sshll.u32 %s11197_s7, 4  ;;  %s98_s21 = int_to_ptr.hbm [resolvable:$true] %s97_s21 }
  0x15   :  { %81 = dma.hbm_to_vmem [thread:$0]  %s74_s13, 32768, %s76_s17, [#allocation8], %s10731_s18, %s10731_s18, %s10732_s19  }
  0x16   :  { %s10733_s2 = smov [#allocation12]   ;;  %s111_s24 = sshll.u32 %s11198_s8, 4  ;;  %s112_s24 = int_to_ptr.hbm [resolvable:$true] %s111_s24 }
  0x17   :  { %s99_s22 = sshll.u32 %s10733_s2, 4  ;;  %s10734_s25 = smov 448   ;;  %s100_s22 = int_to_ptr.vmem [resolvable:$true] %s99_s22 }
  0x18   :  { %s10735_s4 = smov 28   ;;  %s10736_s26 = smov [#allocation13]  }
  0x19   :  { %105 = dma.hbm_to_vmem [thread:$0]  %s98_s21, 57344, %s100_s22, [#allocation11], %s10734_s25, %s10734_s25, %s10735_s4  }
  0x1a   :  { %s113_s27 = sshll.u32 %s10736_s26, 4  ;;  %s114_s27 = int_to_ptr.vmem [resolvable:$true] %s113_s27 }
  0x1b   :  { %116 = dma.hbm_to_vmem [thread:$0]  %s112_s24, 112, %s114_s27, [#allocation14]  }
  0x1c   :  { %10711 = dma.done.wait [#allocation3], 2048  }
  0x1d   :  { %10712 = vsyncadd [#allocation3], 4294965248 }
  0x1e   :  { %10713 = dma.done.wait [#allocation5], 8224  }
  0x1f   :  { %10714 = vsyncadd [#allocation5], 4294959072 }
  0x20   :  { %10715 = dma.done.wait [#allocation8], 32832  }
  0x21   :  { %10716 = vsyncadd [#allocation8], 4294934464 }
  0x22   :  { %10717 = dma.done.wait [#allocation11], 57472  }
  0x23   :  { %10718 = vsyncadd [#allocation11], 4294909824 }
  0x24   :  { %10719 = dma.done.wait [#allocation14], 112  }
  0x25   :  { %10720 = vsyncadd [#allocation14], 4294967184  ;;  %v6610_v0 = vld [vmem:[#allocation2 + $0x70] sm:$0xf]  ;;  %v9704_v1 = vld [vmem:[#allocation2 + $0x74] sm:$0xf0] }
  0x26   :  { %v9703_v2 = vld [vmem:[#allocation2 + $0x74] sm:$0xf]  ;;  %v6611_v3 = vor.u32 %v9704_v1, %v6610_v0  ;;  %v6612_v4 = vld [vmem:[#allocation2 + $0x78] sm:$0xf0]  ;;  %v6602_v5 = vld [vmem:[#allocation2 + $0x60] sm:$0xf] }
  0x27   :  { %v9702_v6 = vld [vmem:[#allocation2 + $0x64] sm:$0xf0]  ;;  %v6615_v7 = vor.u32 %v9703_v2, %v6612_v4  ;;  %v9701_v8 = vld [vmem:[#allocation2 + $0x64] sm:$0xf]  ;;  %v6604_v9 = vld [vmem:[#allocation2 + $0x68] sm:$0xf0] }
  0x28   :  { %259 = vmatpush.bf16.msra.mxu0 %v6611_v3  ;;  %v6603_v10 = vor.u32 %v9702_v6, %v6602_v5  ;;  %v6607_v11 = vor.u32 %v9701_v8, %v6604_v9  ;;  %v6594_v12 = vld [vmem:[#allocation2 + $0x50] sm:$0xf]  ;;  %v9700_v13 = vld [vmem:[#allocation2 + $0x54] sm:$0xf0]  ;;  %v9699_v14 = vld [vmem:[#allocation2 + $0x54] sm:$0xf] }
  0x29   :  { %273 = vmatpush.bf16.msra.mxu1 %v6615_v7  ;;  %v6596_v15 = vld [vmem:[#allocation2 + $0x58] sm:$0xf0]  ;;  %v6595_v16 = vor.u32 %v9700_v13, %v6594_v12  ;;  %v6586_v18 = vld [vmem:[#allocation2 + $0x40] sm:$0xf]  ;;  %v9698_v19 = vld [vmem:[#allocation2 + $0x44] sm:$0xf0] }
  0x2a   :  { %v6599_v17 = vor.u32 %v9699_v14, %v6596_v15  ;;  %v9697_v20 = vld [vmem:[#allocation2 + $0x44] sm:$0xf]  ;;  %v6588_v21 = vld [vmem:[#allocation2 + $0x48] sm:$0xf0]  ;;  %v6587_v22 = vor.u32 %v9698_v19, %v6586_v18  ;;  %v9735_v24 = vld [vmem:[#allocation6 + $0xec] sm:$0xf0] }
  0x2b   :  { %v6730_v23 = vld [vmem:[#allocation6 + $0xe0] sm:$0xf]  ;;  %v6591_v26 = vor.u32 %v9697_v20, %v6588_v21  ;;  %v6578_v27 = vld [vmem:[#allocation2 + $0x30] sm:$0xf]  ;;  %v9696_v28 = vld [vmem:[#allocation2 + $0x34] sm:$0xf0] }
  0x2c   :  { %260 = vmatpush.bf16.msra.mxu0 %v6603_v10  ;;  %v6858_v25 = vld [vmem:[#allocation6 + $0x1e0] sm:$0xf]  ;;  %v6731_v29 = vor.u32 %v9735_v24, %v6730_v23  ;;  %v9767_v30 = vld [vmem:[#allocation6 + $0x1ec] sm:$0xf0]  ;;  %v6580_v32 = vld [vmem:[#allocation2 + $0x38] sm:$0xf0]  ;;  %v6579_v38 = vor.u32 %v9696_v28, %v6578_v27 }
  0x2d   :  { %274 = vmatpush.bf16.msra.mxu1 %v6607_v11  ;;  %v9695_v31 = vld [vmem:[#allocation2 + $0x34] sm:$0xf]  ;;  %v6859_v33 = vor.u32 %v9767_v30, %v6858_v25  ;;  %v6714_v34 = vld [vmem:[#allocation6 + $0xc0] sm:$0xf]  ;;  %v9694_v40 = vld [vmem:[#allocation2 + $0x24] sm:$0xf0] }
  0x2e   :  { %695 = vmatpush.bf16.msra.mxu2 %v6731_v29  ;;  %v9731_v35 = vld [vmem:[#allocation6 + $0xcc] sm:$0xf0]  ;;  %v6842_v36 = vld [vmem:[#allocation6 + $0x1c0] sm:$0xf]  ;;  %v6583_v43 = vor.u32 %v9695_v31, %v6580_v32  ;;  %v6572_v47 = vld [vmem:[#allocation2 + $0x28] sm:$0xf0] }
  0x2f   :  { %v9763_v37 = vld [vmem:[#allocation6 + $0x1cc] sm:$0xf0]  ;;  %v6570_v39 = vld [vmem:[#allocation2 + $0x20] sm:$0xf]  ;;  %709 = vmatpush.bf16.msra.mxu3 %v6859_v33  ;;  %v6715_v41 = vor.u32 %v9731_v35, %v6714_v34  ;;  %v9693_v44 = vld [vmem:[#allocation2 + $0x24] sm:$0xf] }
  0x30   :  { %261 = vmatpush.bf16.msra.mxu0 %v6595_v16  ;;  %v6843_v42 = vor.u32 %v9763_v37, %v6842_v36  ;;  %v6698_v45 = vld [vmem:[#allocation6 + $0xa0] sm:$0xf]  ;;  %v9727_v46 = vld [vmem:[#allocation6 + $0xac] sm:$0xf0]  ;;  %v6571_v51 = vor.u32 %v9694_v40, %v6570_v39  ;;  %v6575_v56 = vor.u32 %v9693_v44, %v6572_v47  ;;  %v9692_v57 = vld [vmem:[#allocation2 + $0x14] sm:$0xf0] }
  0x31   :  { %275 = vmatpush.bf16.msra.mxu1 %v6599_v17  ;;  %v6826_v48 = vld [vmem:[#allocation6 + $0x1a0] sm:$0xf]  ;;  %v9759_v49 = vld [vmem:[#allocation6 + $0x1ac] sm:$0xf0]  ;;  %v6699_v50 = vor.u32 %v9727_v46, %v6698_v45  ;;  %v6564_v61 = vld [vmem:[#allocation2 + $0x18] sm:$0xf0] }
  0x32   :  { %696 = vmatpush.bf16.msra.mxu2 %v6715_v41  ;;  %v6562_v52 = vld [vmem:[#allocation2 + $0x10] sm:$0xf]  ;;  %v6827_v53 = vor.u32 %v9759_v49, %v6826_v48  ;;  %v6682_v54 = vld [vmem:[#allocation6 + $0x80] sm:$0xf]  ;;  %v9691_v60 = vld [vmem:[#allocation2 + $0x14] sm:$0xf] }
  0x33   :  { %710 = vmatpush.bf16.msra.mxu3 %v6843_v42  ;;  %v9723_v55 = vld [vmem:[#allocation6 + $0x8c] sm:$0xf0]  ;;  %v6810_v58 = vld [vmem:[#allocation6 + $0x180] sm:$0xf]  ;;  %v6563_v0 = vor.u32 %v9692_v57, %v6562_v52  ;;  %v9690_v1 = vld [vmem:[#allocation2 + $0x4] sm:$0xf0]  ;;  %v6567_v5 = vor.u32 %v9691_v60, %v6564_v61 }
  0x34   :  { %262 = vmatpush.bf16.msra.mxu0 %v6587_v22  ;;  %v9755_v59 = vld [vmem:[#allocation6 + $0x18c] sm:$0xf0]  ;;  %v6554_v62 = vld [vmem:[#allocation2] sm:$0xf]  ;;  %v6683_v63 = vor.u32 %v9723_v55, %v6682_v54  ;;  %v9689_v6 = vld [vmem:[#allocation2 + $0x4] sm:$0xf] }
  0x35   :  { %276 = vmatpush.bf16.msra.mxu1 %v6591_v26  ;;  %v6811_v2 = vor.u32 %v9755_v59, %v6810_v58  ;;  %v6666_v3 = vld [vmem:[#allocation6 + $0x60] sm:$0xf]  ;;  %v9719_v4 = vld [vmem:[#allocation6 + $0x6c] sm:$0xf0]  ;;  %v6556_v9 = vld [vmem:[#allocation2 + $0x8] sm:$0xf0]  ;;  %v6555_v15 = vor.u32 %v9690_v1, %v6554_v62 }
  0x36   :  { %697 = vmatpush.bf16.msra.mxu2 %v6699_v50  ;;  %v6794_v7 = vld [vmem:[#allocation6 + $0x160] sm:$0xf]  ;;  %v9751_v8 = vld [vmem:[#allocation6 + $0x16c] sm:$0xf0]  ;;  %v9733_v10 = vld [vmem:[#allocation6 + $0xe4] sm:$0xf]  ;;  %v6667_v14 = vor.u32 %v9719_v4, %v6666_v3  ;;  %v6559_v19 = vor.u32 %v9689_v6, %v6556_v9 }
  0x37   :  { %711 = vmatpush.bf16.msra.mxu3 %v6827_v53  ;;  %v6732_v11 = vld [vmem:[#allocation6 + $0xf0] sm:$0xf0]  ;;  %v9765_v12 = vld [vmem:[#allocation6 + $0x1e4] sm:$0xf]  ;;  %v6795_v16 = vor.u32 %v9751_v8, %v6794_v7  ;;  %v6650_v17 = vld [vmem:[#allocation6 + $0x40] sm:$0xf] }
  0x38   :  { %263 = vmatpush.bf16.msra.mxu0 %v6579_v38  ;;  %v6860_v13 = vld [vmem:[#allocation6 + $0x1f0] sm:$0xf0]  ;;  %v9715_v18 = vld [vmem:[#allocation6 + $0x4c] sm:$0xf0]  ;;  %v6735_v20 = vor.u32 %v9733_v10, %v6732_v11  ;;  %v6778_v21 = vld [vmem:[#allocation6 + $0x140] sm:$0xf] }
  0x39   :  { %277 = vmatpush.bf16.msra.mxu1 %v6583_v43  ;;  %v9747_v22 = vld [vmem:[#allocation6 + $0x14c] sm:$0xf0]  ;;  %v6863_v23 = vor.u32 %v9765_v12, %v6860_v13  ;;  %v9729_v24 = vld [vmem:[#allocation6 + $0xc4] sm:$0xf]  ;;  %v6716_v25 = vld [vmem:[#allocation6 + $0xd0] sm:$0xf0]  ;;  %v6651_v29 = vor.u32 %v9715_v18, %v6650_v17 }
  0x3a   :  { %698 = vmatpush.bf16.msra.mxu2 %v6683_v63  ;;  %v9688_v26 = vld [vmem:[%s11190_s0] sm:$0xff]  ;;  %v6844_v28 = vld [vmem:[#allocation6 + $0x1d0] sm:$0xf0]  ;;  %v6779_v30 = vor.u32 %v9747_v22, %v6778_v21  ;;  %v9711_v32 = vld [vmem:[#allocation6 + $0x2c] sm:$0xf0]  ;;  %v6719_v33 = vor.u32 %v9729_v24, %v6716_v25 }
  0x3b   :  { %712 = vmatpush.bf16.msra.mxu3 %v6811_v2  ;;  %v9761_v27 = vld [vmem:[#allocation6 + $0x1c4] sm:$0xf]  ;;  %v6634_v31 = vld [vmem:[#allocation6 + $0x20] sm:$0xf]  ;;  %v9743_v35 = vld [vmem:[#allocation6 + $0x12c] sm:$0xf0] }
  0x3c   :  { %264 = vmatpush.bf16.msra.mxu0 %v6571_v51  ;;  %v6762_v34 = vld [vmem:[#allocation6 + $0x120] sm:$0xf]  ;;  %v6847_v36 = vor.u32 %v9761_v27, %v6844_v28  ;;  %v9725_v37 = vld [vmem:[#allocation6 + $0xa4] sm:$0xf]  ;;  %v6700_v38 = vld [vmem:[#allocation6 + $0xb0] sm:$0xf0]  ;;  %v6635_v41 = vor.u32 %v9711_v32, %v6634_v31 }
  0x3d   :  { %278 = vmatpush.bf16.msra.mxu1 %v6575_v56  ;;  %v9757_v39 = vld [vmem:[#allocation6 + $0x1a4] sm:$0xf]  ;;  %v6828_v40 = vld [vmem:[#allocation6 + $0x1b0] sm:$0xf0]  ;;  %v6763_v42 = vor.u32 %v9743_v35, %v6762_v34  ;;  %v6703_v43 = vor.u32 %v9725_v37, %v6700_v38  ;;  %v9707_v6 = vld [vmem:[#allocation6 + $0xc] sm:$0xf0] }
  0x3e   :  { %699 = vmatpush.bf16.msra.mxu2 %v6667_v14  ;;  %v6831_v44 = vor.u32 %v9757_v39, %v6828_v40  ;;  %v9721_v45 = vld [vmem:[#allocation6 + $0x84] sm:$0xf]  ;;  %v6684_v46 = vld [vmem:[#allocation6 + $0x90] sm:$0xf0]  ;;  %v6746_v7 = vld [vmem:[#allocation6 + $0x100] sm:$0xf] }
  0x3f   :  { %713 = vmatpush.bf16.msra.mxu3 %v6795_v16  ;;  %v9753_v47 = vld [vmem:[#allocation6 + $0x184] sm:$0xf]  ;;  %v6812_v48 = vld [vmem:[#allocation6 + $0x190] sm:$0xf0]  ;;  %v6687_v49 = vor.u32 %v9721_v45, %v6684_v46  ;;  %v9739_v9 = vld [vmem:[#allocation6 + $0x10c] sm:$0xf0] }
  0x40   :  { %265 = vmatpush.bf16.msra.mxu0 %v6563_v0  ;;  %v6815_v50 = vor.u32 %v9753_v47, %v6812_v48  ;;  %v9717_v51 = vld [vmem:[#allocation6 + $0x64] sm:$0xf]  ;;  %v6668_v52 = vld [vmem:[#allocation6 + $0x70] sm:$0xf0]  ;;  %v6747_v12 = vor.u32 %v9739_v9, %v6746_v7  ;;  %v6738_v17 = vld [vmem:[#allocation6 + $0xe8] sm:$0xf] }
  0x41   :  { %279 = vmatpush.bf16.msra.mxu1 %v6567_v5  ;;  %v9749_v53 = vld [vmem:[#allocation6 + $0x164] sm:$0xf]  ;;  %v6796_v54 = vld [vmem:[#allocation6 + $0x170] sm:$0xf0]  ;;  %v6671_v55 = vor.u32 %v9717_v51, %v6668_v52  ;;  %v6618_v5 = vld [vmem:[#allocation6] sm:$0xf] }
  0x42   :  { %700 = vmatpush.bf16.msra.mxu2 %v6651_v29  ;;  %v6799_v56 = vor.u32 %v9749_v53, %v6796_v54  ;;  %v9713_v57 = vld [vmem:[#allocation6 + $0x44] sm:$0xf]  ;;  %v6652_v58 = vld [vmem:[#allocation6 + $0x50] sm:$0xf0]  ;;  %v6619_v8 = vor.u32 %v9707_v6, %v6618_v5  ;;  %v9736_v18 = vld [vmem:[#allocation6 + $0xf4] sm:$0xf0] }
  0x43   :  { %714 = vmatpush.bf16.msra.mxu3 %v6779_v30  ;;  %v9745_v59 = vld [vmem:[#allocation6 + $0x144] sm:$0xf]  ;;  %v6780_v60 = vld [vmem:[#allocation6 + $0x150] sm:$0xf0]  ;;  %v6655_v61 = vor.u32 %v9713_v57, %v6652_v58  ;;  %v9768_v21 = vld [vmem:[#allocation6 + $0x1f4] sm:$0xf0] }
  0x44   :  { %266 = vmatpush.bf16.msra.mxu0 %v6555_v15  ;;  %v6783_v62 = vor.u32 %v9745_v59, %v6780_v60  ;;  %v9709_v63 = vld [vmem:[#allocation6 + $0x24] sm:$0xf]  ;;  %v6636_v0 = vld [vmem:[#allocation6 + $0x30] sm:$0xf0]  ;;  %v9734_v22 = vld [vmem:[#allocation6 + $0xec] sm:$0xf] }
  0x45   :  { %280 = vmatpush.bf16.msra.mxu1 %v6559_v19  ;;  %v9741_v1 = vld [vmem:[#allocation6 + $0x124] sm:$0xf]  ;;  %v6764_v2 = vld [vmem:[#allocation6 + $0x130] sm:$0xf0]  ;;  %v6639_v3 = vor.u32 %v9709_v63, %v6636_v0  ;;  %v6866_v19 = vld [vmem:[#allocation6 + $0x1e8] sm:$0xf] }
  0x46   :  { %701 = vmatpush.bf16.msra.mxu2 %v6635_v41  ;;  %v6767_v4 = vor.u32 %v9741_v1, %v6764_v2  ;;  %v9705_v10 = vld [vmem:[#allocation6 + $0x4] sm:$0xf]  ;;  %v6620_v11 = vld [vmem:[#allocation6 + $0x10] sm:$0xf0]  ;;  %v6867_v24 = vor.u32 %v9768_v21, %v6866_v19  ;;  %v6868_v27 = vld [vmem:[#allocation6 + $0x1f8] sm:$0xf0] }
  0x47   :  { %267 = vmatmul.bf16.vlgmr.msra.gmra.mxu0 %v9688_v26  ;;  %715 = vmatpush.bf16.msra.mxu3 %v6763_v42  ;;  %v6623_v13 = vor.u32 %v9705_v10, %v6620_v11  ;;  %v9737_v14 = vld [vmem:[#allocation6 + $0x104] sm:$0xf]  ;;  %v6748_v15 = vld [vmem:[#allocation6 + $0x110] sm:$0xf0]  ;;  %v6722_v28 = vld [vmem:[#allocation6 + $0xc8] sm:$0xf] }
  0x48   :  { %723 = vmatpush.bf16.msrb.mxu0 %v6735_v20  ;;  %281 = vmatmul.bf16.vlgmr.msra.gmra.mxu1 %v9688_v26  ;;  %v6751_v16 = vor.u32 %v9737_v14, %v6748_v15  ;;  %v6739_v20 = vor.u32 %v9736_v18, %v6738_v17  ;;  %v9766_v26 = vld [vmem:[#allocation6 + $0x1ec] sm:$0xf]  ;;  %v9732_v30 = vld [vmem:[#allocation6 + $0xd4] sm:$0xf0]  ;;  %v6850_v31 = vld [vmem:[#allocation6 + $0x1c8] sm:$0xf] }
  0x49   :  { %737 = vmatpush.bf16.msrb.mxu1 %v6863_v23  ;;  %v6740_v23 = vld [vmem:[#allocation6 + $0xf8] sm:$0xf0]  ;;  %v6871_v29 = vor.u32 %v9766_v26, %v6868_v27  ;;  %v9764_v32 = vld [vmem:[#allocation6 + $0x1d4] sm:$0xf0]  ;;  %v9730_v35 = vld [vmem:[#allocation6 + $0xcc] sm:$0xf] }
  0x4a   :  { %702 = vmatpush.bf16.msra.mxu2 %v6619_v8  ;;  %v6743_v25 = vor.u32 %v9734_v22, %v6740_v23  ;;  %v6851_v34 = vor.u32 %v9764_v32, %v6850_v31  ;;  %v9762_v37 = vld [vmem:[#allocation6 + $0x1cc] sm:$0xf]  ;;  %v6852_v39 = vld [vmem:[#allocation6 + $0x1d8] sm:$0xf0]  ;;  %v6706_v41 = vld [vmem:[#allocation6 + $0xa8] sm:$0xf] }
  0x4b   :  { %716 = vmatpush.bf16.msra.mxu3 %v6747_v12  ;;  %v6855_v40 = vor.u32 %v9762_v37, %v6852_v39  ;;  %v9728_v42 = vld [vmem:[#allocation6 + $0xb4] sm:$0xf0]  ;;  %v9726_v46 = vld [vmem:[#allocation6 + $0xac] sm:$0xf]  ;;  %v6708_v47 = vld [vmem:[#allocation6 + $0xb8] sm:$0xf0] }
  0x4c   :  { %724 = vmatpush.bf16.msrb.mxu0 %v6719_v33  ;;  %v6723_v33 = vor.u32 %v9732_v30, %v6722_v28  ;;  %v9760_v45 = vld [vmem:[#allocation6 + $0x1b4] sm:$0xf0]  ;;  %v6836_v51 = vld [vmem:[#allocation6 + $0x1b8] sm:$0xf0]  ;;  %v6690_v53 = vld [vmem:[#allocation6 + $0x88] sm:$0xf] }
  0x4d   :  { %738 = vmatpush.bf16.msrb.mxu1 %v6847_v36  ;;  %v6724_v36 = vld [vmem:[#allocation6 + $0xd8] sm:$0xf0]  ;;  %v9724_v54 = vld [vmem:[#allocation6 + $0x94] sm:$0xf0]  ;;  %v9722_v58 = vld [vmem:[#allocation6 + $0x8c] sm:$0xf] }
  0x4e   :  { %751 = vmatpush.bf16.msrb.mxu2 %v6739_v20  ;;  %v6727_v38 = vor.u32 %v9730_v35, %v6724_v36  ;;  %v9756_v57 = vld [vmem:[#allocation6 + $0x194] sm:$0xf0]  ;;  %v6692_v59 = vld [vmem:[#allocation6 + $0x98] sm:$0xf0]  ;;  %v6674_v1 = vld [vmem:[#allocation6 + $0x68] sm:$0xf] }
  0x4f   :  { %765 = vmatpush.bf16.msrb.mxu3 %v6867_v24  ;;  %v6820_v63 = vld [vmem:[#allocation6 + $0x198] sm:$0xf0]  ;;  %v9720_v2 = vld [vmem:[#allocation6 + $0x74] sm:$0xf0]  ;;  %v9718_v6 = vld [vmem:[#allocation6 + $0x6c] sm:$0xf] }
  0x50   :  { %725 = vmatpush.bf16.msrb.mxu0 %v6703_v43  ;;  %v6834_v43 = vld [vmem:[#allocation6 + $0x1a8] sm:$0xf]  ;;  %v9752_v5 = vld [vmem:[#allocation6 + $0x174] sm:$0xf0]  ;;  %v6676_v7 = vld [vmem:[#allocation6 + $0x78] sm:$0xf0] }
  0x51   :  { %739 = vmatpush.bf16.msrb.mxu1 %v6831_v44  ;;  %v6707_v44 = vor.u32 %v9728_v42, %v6706_v41  ;;  %v6835_v48 = vor.u32 %v9760_v45, %v6834_v43  ;;  %v6679_v9 = vor.u32 %v9718_v6, %v6676_v7  ;;  %v9750_v10 = vld [vmem:[#allocation6 + $0x16c] sm:$0xf]  ;;  %v6804_v11 = vld [vmem:[#allocation6 + $0x178] sm:$0xf0]  ;;  %v6658_v12 = vld [vmem:[#allocation6 + $0x48] sm:$0xf] }
  0x52   :  { %752 = vmatpush.bf16.msrb.mxu2 %v6723_v33  ;;  %v9716_v14 = vld [vmem:[#allocation6 + $0x54] sm:$0xf0]  ;;  %v6786_v15 = vld [vmem:[#allocation6 + $0x148] sm:$0xf]  ;;  %v9714_v17 = vld [vmem:[#allocation6 + $0x4c] sm:$0xf] }
  0x53   :  { %766 = vmatpush.bf16.msrb.mxu3 %v6851_v34  ;;  %v6660_v18 = vld [vmem:[#allocation6 + $0x58] sm:$0xf0]  ;;  %v9746_v19 = vld [vmem:[#allocation6 + $0x14c] sm:$0xf]  ;;  %v6659_v20 = vor.u32 %v9716_v14, %v6658_v12  ;;  %v6642_v24 = vld [vmem:[#allocation6 + $0x28] sm:$0xf] }
  0x54   :  { %726 = vmatpush.bf16.msrb.mxu0 %v6687_v49  ;;  %v6711_v49 = vor.u32 %v9726_v46, %v6708_v47  ;;  %v6788_v21 = vld [vmem:[#allocation6 + $0x158] sm:$0xf0]  ;;  %v6663_v23 = vor.u32 %v9714_v17, %v6660_v18  ;;  %v6770_v26 = vld [vmem:[#allocation6 + $0x128] sm:$0xf]  ;;  %v9744_v28 = vld [vmem:[#allocation6 + $0x134] sm:$0xf0] }
  0x55   :  { %740 = vmatpush.bf16.msrb.mxu1 %v6815_v50  ;;  %v9758_v50 = vld [vmem:[#allocation6 + $0x1ac] sm:$0xf]  ;;  %v6791_v27 = vor.u32 %v9746_v19, %v6788_v21  ;;  %v6644_v30 = vld [vmem:[#allocation6 + $0x38] sm:$0xf0]  ;;  %v6771_v34 = vor.u32 %v9744_v28, %v6770_v26  ;;  %v6626_v36 = vld [vmem:[#allocation6 + $0x8] sm:$0xf] }
  0x56   :  { %v6839_v52 = vor.u32 %v9758_v50, %v6836_v51  ;;  %753 = vmatpush.bf16.msrb.mxu2 %v6707_v44  ;;  %v9742_v31 = vld [vmem:[#allocation6 + $0x12c] sm:$0xf]  ;;  %v6772_v32 = vld [vmem:[#allocation6 + $0x138] sm:$0xf0]  ;;  %v9708_v37 = vld [vmem:[#allocation6 + $0x14] sm:$0xf0] }
  0x57   :  { %767 = vmatpush.bf16.msrb.mxu3 %v6835_v48  ;;  %v6775_v39 = vor.u32 %v9742_v31, %v6772_v32  ;;  %v9706_v41 = vld [vmem:[#allocation6 + $0xc] sm:$0xf]  ;;  %v6628_v42 = vld [vmem:[#allocation6 + $0x18] sm:$0xf0]  ;;  %v6627_v45 = vor.u32 %v9708_v37, %v6626_v36  ;;  %v9957_v7 = vld [vmem:[#allocation9 + $0x5dc] sm:$0xf0] }
  0x58   :  { %727 = vmatpush.bf16.msrb.mxu0 %v6671_v55  ;;  %v6818_v55 = vld [vmem:[#allocation6 + $0x188] sm:$0xf]  ;;  %v9738_v43 = vld [vmem:[#allocation6 + $0x10c] sm:$0xf]  ;;  %v6756_v44 = vld [vmem:[#allocation6 + $0x118] sm:$0xf0]  ;;  %v6631_v47 = vor.u32 %v9706_v41, %v6628_v42 }
  0x59   :  { %741 = vmatpush.bf16.msrb.mxu1 %v6799_v56  ;;  %v6691_v56 = vor.u32 %v9724_v54, %v6690_v53  ;;  %v6819_v60 = vor.u32 %v9756_v57, %v6818_v55  ;;  %v167_v48 = vld [vmem:[#allocation4] sm:$0x3]  ;;  %v7354_v57 = vld [vmem:[#allocation9 + $0x3c0] sm:$0xf] }
  0x5a   :  { %v169_v51 = vperm.slane %v167_v48, 0  ;;  %v170_v53 = vperm.slane %v167_v48, 1  ;;  %v7322_v14 = vld [vmem:[#allocation9 + $0x380] sm:$0xf] }
  0x5b   :  { %754 = vmatpush.bf16.msrb.mxu2 %v6691_v56  ;;  %768 = vmatpush.bf16.msrb.mxu3 %v6819_v60  ;;  %v7066_v18 = vld [vmem:[#allocation9 + $0x180] sm:$0xf] }
  0x5c   :  { %728 = vmatpush.bf16.msrb.mxu0 %v6655_v61  ;;  %v6695_v61 = vor.u32 %v9722_v58, %v6692_v59  ;;  %v9893_v58 = vld [vmem:[#allocation9 + $0x3dc] sm:$0xf0] }
  0x5d   :  { %742 = vmatpush.bf16.msrb.mxu1 %v6783_v62  ;;  %v9754_v62 = vld [vmem:[#allocation6 + $0x18c] sm:$0xf]  ;;  %v9821_v19 = vld [vmem:[#allocation9 + $0x19c] sm:$0xf0] }
  0x5e   :  { %v6823_v0 = vor.u32 %v9754_v62, %v6820_v63  ;;  %v7098_v62 = vld [vmem:[#allocation9 + $0x1c0] sm:$0xf] }
  0x5f   :  { %v9829_v63 = vld [vmem:[#allocation9 + $0x1dc] sm:$0xf0] }
  0x60   :  { %729 = vmatpush.bf16.msrb.mxu0 %v6639_v3  ;;  %v6802_v3 = vld [vmem:[#allocation6 + $0x168] sm:$0xf]  ;;  %v7834_v21 = vld [vmem:[#allocation9 + $0x780] sm:$0xf] }
  0x61   :  { %743 = vmatpush.bf16.msrb.mxu1 %v6767_v4  ;;  %v6675_v4 = vor.u32 %v9720_v2, %v6674_v1  ;;  %v6803_v8 = vor.u32 %v9752_v5, %v6802_v3  ;;  %v7866_v2 = vld [vmem:[#allocation9 + $0x7c0] sm:$0xf] }
  0x62   :  { %v10021_v3 = vld [vmem:[#allocation9 + $0x7dc] sm:$0xf0] }
  0x63   :  { %755 = vmatpush.bf16.msrb.mxu2 %v6675_v4  ;;  %769 = vmatpush.bf16.msrb.mxu3 %v6803_v8  ;;  %v7610_v5 = vld [vmem:[#allocation9 + $0x5c0] sm:$0xf] }
  0x64   :  { %730 = vmatpush.bf16.msrb.mxu0 %v6623_v13  ;;  %v6807_v13 = vor.u32 %v9750_v10, %v6804_v11  ;;  %v7355_v10 = vor.u32 %v9893_v58, %v7354_v57  ;;  %v9877_v28 = vld [vmem:[#allocation9 + $0x35c] sm:$0xf0] }
  0x65   :  { %744 = vmatpush.bf16.msrb.mxu1 %v6751_v16  ;;  %v9748_v16 = vld [vmem:[#allocation6 + $0x154] sm:$0xf0]  ;;  %v9813_v31 = vld [vmem:[#allocation9 + $0x15c] sm:$0xf0] }
  0x66   :  { %v6787_v22 = vor.u32 %v9748_v16, %v6786_v15  ;;  %v9885_v15 = vld [vmem:[#allocation9 + $0x39c] sm:$0xf0]  ;;  %v7099_v16 = vor.u32 %v9829_v63, %v7098_v62 }
  0x67   :  { %756 = vmatpush.bf16.msrb.mxu2 %v6659_v20  ;;  %v7867_v20 = vor.u32 %v10021_v3, %v7866_v2  ;;  %v7323_v26 = vor.u32 %v9885_v15, %v7322_v14  ;;  %v7546_v36 = vld [vmem:[#allocation9 + $0x540] sm:$0xf] }
  0x68   :  { %779 = vmatpush.bf16.msra.mxu0 %v6743_v25  ;;  %v9712_v25 = vld [vmem:[#allocation6 + $0x34] sm:$0xf0]  ;;  %770 = vmatpush.bf16.msrb.mxu3 %v6787_v22  ;;  %v7611_v22 = vor.u32 %v9957_v7, %v7610_v5  ;;  %v9941_v37 = vld [vmem:[#allocation9 + $0x55c] sm:$0xf0] }
  0x69   :  { %793 = vmatpush.bf16.msra.mxu1 %v6871_v29  ;;  %v9710_v29 = vld [vmem:[#allocation6 + $0x2c] sm:$0xf]  ;;  %v6643_v33 = vor.u32 %v9712_v25, %v6642_v24  ;;  %v7578_v24 = vld [vmem:[#allocation9 + $0x580] sm:$0xf] }
  0x6a   :  { %v6647_v35 = vor.u32 %v9710_v29, %v6644_v30  ;;  %v9949_v25 = vld [vmem:[#allocation9 + $0x59c] sm:$0xf0]  ;;  %v7067_v29 = vor.u32 %v9821_v19, %v7066_v18 }
  0x6b   :  { %757 = vmatpush.bf16.msrb.mxu2 %v6643_v33  ;;  %v7034_v30 = vld [vmem:[#allocation9 + $0x140] sm:$0xf] }
  0x6c   :  { %780 = vmatpush.bf16.msra.mxu0 %v6727_v38  ;;  %v6754_v38 = vld [vmem:[#allocation6 + $0x108] sm:$0xf]  ;;  %771 = vmatpush.bf16.msrb.mxu3 %v6771_v34  ;;  %v7802_v33 = vld [vmem:[#allocation9 + $0x740] sm:$0xf]  ;;  %v7579_v34 = vor.u32 %v9949_v25, %v7578_v24  ;;  %v7035_v41 = vor.u32 %v9813_v31, %v7034_v30 }
  0x6d   :  { %794 = vmatpush.bf16.msra.mxu1 %v6855_v40  ;;  %v9740_v40 = vld [vmem:[#allocation6 + $0x114] sm:$0xf0]  ;;  %v7002_v42 = vld [vmem:[#allocation9 + $0x100] sm:$0xf]  ;;  %v7100_v24 = vld [vmem:[#allocation9 + $0x1e0] sm:$0xf0] }
  0x6e   :  { %v6755_v46 = vor.u32 %v9740_v40, %v6754_v38  ;;  %v9869_v40 = vld [vmem:[#allocation9 + $0x31c] sm:$0xf0]  ;;  %v7324_v30 = vld [vmem:[#allocation9 + $0x3a0] sm:$0xf0] }
  0x6f   :  { %758 = vmatpush.bf16.msrb.mxu2 %v6627_v45  ;;  %v7770_v45 = vld [vmem:[#allocation9 + $0x700] sm:$0xf]  ;;  %v9817_v31 = vld [vmem:[#allocation9 + $0x184] sm:$0xf] }
  0x70   :  { %781 = vmatpush.bf16.msra.mxu0 %v6711_v49  ;;  %v6759_v49 = vor.u32 %v9738_v43, %v6756_v44  ;;  %772 = vmatpush.bf16.msrb.mxu3 %v6755_v46  ;;  %v9805_v43 = vld [vmem:[#allocation9 + $0x11c] sm:$0xf0]  ;;  %v7547_v46 = vor.u32 %v9941_v37, %v7546_v36  ;;  %v7292_v36 = vld [vmem:[#allocation9 + $0x360] sm:$0xf0] }
  0x71   :  { %795 = vmatpush.bf16.msra.mxu1 %v6839_v52  ;;  %v7514_v48 = vld [vmem:[#allocation9 + $0x500] sm:$0xf] }
  0x72   :  { %v7738_v57 = vld [vmem:[#allocation9 + $0x6c0] sm:$0xf] }
  0x73   :  { %v7194_v63 = vld [vmem:[#allocation9 + $0x280] sm:$0xf] }
  0x74   :  { %782 = vmatpush.bf16.msra.mxu0 %v6695_v61  ;;  %v6938_v2 = vld [vmem:[#allocation9 + $0x80] sm:$0xf] }
  0x75   :  { %796 = vmatpush.bf16.msra.mxu1 %v6823_v0  ;;  %v9789_v3 = vld [vmem:[#allocation9 + $0x9c] sm:$0xf0] }
  0x76   :  { %v9981_v7 = vld [vmem:[#allocation9 + $0x69c] sm:$0xf0] }
  0x77   :  { %v9781_v14 = vld [vmem:[#allocation9 + $0x5c] sm:$0xf0] }
  0x78   :  { %783 = vmatpush.bf16.msra.mxu0 %v6679_v9  ;;  %v9837_v18 = vld [vmem:[#allocation9 + $0x21c] sm:$0xf0] }
  0x79   :  { %797 = vmatpush.bf16.msra.mxu1 %v6807_v13 }
  0x7c   :  { %784 = vmatpush.bf16.msra.mxu0 %v6663_v23  ;;  %v10013_v23 = vld [vmem:[#allocation9 + $0x79c] sm:$0xf0] }
  0x7d   :  { %798 = vmatpush.bf16.msra.mxu1 %v6791_v27  ;;  %v7290_v27 = vld [vmem:[#allocation9 + $0x340] sm:$0xf]  ;;  %v7835_v32 = vor.u32 %v10013_v23, %v7834_v21  ;;  %v9825_v23 = vld [vmem:[#allocation9 + $0x1c4] sm:$0xf] }
  0x7e   :  { %v7291_v38 = vor.u32 %v9877_v28, %v7290_v27  ;;  %v6874_v21 = vld [vmem:[#allocation9] sm:$0xf]  ;;  %v9881_v28 = vld [vmem:[#allocation9 + $0x384] sm:$0xf] }
  0x80   :  { %785 = vmatpush.bf16.msra.mxu0 %v6647_v35  ;;  %v10005_v35 = vld [vmem:[#allocation9 + $0x75c] sm:$0xf0] }
  0x81   :  { %799 = vmatpush.bf16.msra.mxu1 %v6775_v39  ;;  %v7258_v39 = vld [vmem:[#allocation9 + $0x300] sm:$0xf]  ;;  %v7803_v44 = vor.u32 %v10005_v35, %v7802_v33  ;;  %v7327_v33 = vor.u32 %v9881_v28, %v7324_v30  ;;  %v9873_v35 = vld [vmem:[#allocation9 + $0x344] sm:$0xf] }
  0x82   :  { %v7295_v37 = vor.u32 %v9873_v35, %v7292_v36  ;;  %v9833_v28 = vld [vmem:[#allocation9 + $0x204] sm:$0xf] }
  0x83   :  { %v9993_v30 = vld [vmem:[#allocation9 + $0x704] sm:$0xf] }
  0x84   :  { %786 = vmatpush.bf16.msra.mxu0 %v6631_v47  ;;  %v9997_v47 = vld [vmem:[#allocation9 + $0x71c] sm:$0xf0]  ;;  %v6908_v35 = vld [vmem:[#allocation9 + $0x60] sm:$0xf0] }
  0x85   :  { %800 = vmatpush.bf16.msra.mxu1 %v6759_v49  ;;  %v9933_v49 = vld [vmem:[#allocation9 + $0x51c] sm:$0xf0] }
  0x86   :  { %v7515_v58 = vor.u32 %v9933_v49, %v7514_v48  ;;  %v7036_v48 = vld [vmem:[#allocation9 + $0x160] sm:$0xf0] }
  0xc4   :  { %v268_v50 = vpop.f32.mrf.mxu0 }
  0xc5   :  { %v282_v52 = vpop.f32.mrf.mxu1  ;;  %v269_v54 = vadd.f32 %v268_v50, %v169_v51  ;;  %v7259_v50 = vor.u32 %v9869_v40, %v7258_v39  ;;  %v9973_v39 = vld [vmem:[#allocation9 + $0x65c] sm:$0xf0] }
  0xc6   :  { %v283_v55 = vadd.f32 %v282_v52, %v170_v53  ;;  %v9861_v52 = vld [vmem:[#allocation9 + $0x2dc] sm:$0xf0] }
  0xc7   :  { %vm287_vm0 = vcmp.gt.f32.partialorder %v269_v54, 0.0  ;;  %v291_v59 = vmul.f32 0.2, %v269_v54 }
  0xc8   :  { %v292_v0 = vmul.f32 0.2, %v283_v55  ;;  %vm288_vm1 = vcmp.gt.f32.partialorder %v283_v55, 0.0 }
  0xc9   :  { %v295_v8 = vsel %vm287_vm0, %v269_v54, %v291_v59  ;;  %v6970_v54 = vld [vmem:[#allocation9 + $0xc0] sm:$0xf] }
  0xca   :  { %v296_v11 = vsel %vm288_vm1, %v283_v55, %v292_v0  ;;  %v9797_v55 = vld [vmem:[#allocation9 + $0xdc] sm:$0xf0] }
  0xcb   :  { %v9989_v59 = vld [vmem:[#allocation9 + $0x6dc] sm:$0xf0]  ;;  %v6971_v0 = vor.u32 %v9797_v55, %v6970_v54  ;;  %v7228_v54 = vld [vmem:[#allocation9 + $0x2e0] sm:$0xf0] }
  0xcc   :  { %v270_v56 = vpop.f32.mrf.mxu0  ;;  %v10017_v55 = vld [vmem:[#allocation9 + $0x7c4] sm:$0xf] }
  0xcd   :  { %v271_v60 = vadd.f32 %v270_v56, %v169_v51  ;;  %v284_v61 = vpop.f32.mrf.mxu1  ;;  %v7226_v51 = vld [vmem:[#allocation9 + $0x2c0] sm:$0xf]  ;;  %v7771_v56 = vor.u32 %v9997_v47, %v7770_v45  ;;  %v9809_v47 = vld [vmem:[#allocation9 + $0x144] sm:$0xf] }
  0xce   :  { %v285_v1 = vadd.f32 %v284_v61, %v170_v53  ;;  %v7003_v53 = vor.u32 %v9805_v43, %v7002_v42  ;;  %v9925_v61 = vld [vmem:[#allocation9 + $0x4dc] sm:$0xf0]  ;;  %v7227_v62 = vor.u32 %v9861_v52, %v7226_v51  ;;  %v7260_v42 = vld [vmem:[#allocation9 + $0x320] sm:$0xf0]  ;;  %v7039_v49 = vor.u32 %v9809_v47, %v7036_v48 }
  0xcf   :  { %vm289_vm2 = vcmp.gt.f32.partialorder %v271_v60, 0.0  ;;  %v293_v4 = vmul.f32 0.2, %v271_v60  ;;  %v9917_v45 = vld [vmem:[#allocation9 + $0x49c] sm:$0xf0] }
  0xd0   :  { %vm290_vm3 = vcmp.gt.f32.partialorder %v285_v1, 0.0  ;;  %v294_v6 = vmul.f32 0.2, %v285_v1  ;;  %v9965_v51 = vld [vmem:[#allocation9 + $0x61c] sm:$0xf0] }
  0xd1   :  { %v297_v9 = vsel %vm289_vm2, %v271_v60, %v293_v4  ;;  %v7482_v60 = vld [vmem:[#allocation9 + $0x4c0] sm:$0xf]  ;;  %v7739_v4 = vor.u32 %v9989_v59, %v7738_v57  ;;  %v7868_v57 = vld [vmem:[#allocation9 + $0x7e0] sm:$0xf0] }
  0xd2   :  { %v10815_v12 = vpack.c.bf16 %v297_v9, %v295_v8  ;;  %v298_v13 = vsel %vm290_vm3, %v285_v1, %v294_v6  ;;  %v9853_v1 = vld [vmem:[#allocation9 + $0x29c] sm:$0xf0]  ;;  %v7483_v5 = vor.u32 %v9925_v61, %v7482_v60  ;;  %v7871_v60 = vor.u32 %v10017_v55, %v7868_v57  ;;  %v7516_v47 = vld [vmem:[#allocation9 + $0x520] sm:$0xf0]  ;;  %v10827_v57 = vld [vmem:[#allocation7] sm:$0xf] }
  0xd3   :  { %v10817_v17 = vpack.c.bf16 %v298_v13, %v296_v11  ;;  %v7706_v6 = vld [vmem:[#allocation9 + $0x680] sm:$0xf]  ;;  %v7195_v8 = vor.u32 %v9853_v1, %v7194_v63  ;;  %v7004_v63 = vld [vmem:[#allocation9 + $0x120] sm:$0xf0] }
  0xd4   :  { %703 = vmatmul.bf16.vlgmr.msra.gmra.mxu2 %v10815_v12  ;;  %731 = vmatmul.bf16.vlgmr.msrb.gmra.mxu0 %v10815_v12  ;;  %v7162_v9 = vld [vmem:[#allocation9 + $0x240] sm:$0xf]  ;;  %v7707_v15 = vor.u32 %v9981_v7, %v7706_v6  ;;  %v9849_v1 = vld [vmem:[#allocation9 + $0x284] sm:$0xf] }
  0xd5   :  { %717 = vmatmul.bf16.vlgmr.msra.gmra.mxu3 %v10817_v17  ;;  %745 = vmatmul.bf16.vlgmr.msrb.gmra.mxu1 %v10817_v17  ;;  %v9845_v11 = vld [vmem:[#allocation9 + $0x25c] sm:$0xf0]  ;;  %v9969_v55 = vld [vmem:[#allocation9 + $0x644] sm:$0xf] }
  0xd6   :  { %2403 = vmatpush.bf16.msra.mxu3 %v7355_v10  ;;  %2389 = vmatpush.bf16.msra.mxu2 %v7099_v16  ;;  %v6939_v10 = vor.u32 %v9789_v3, %v6938_v2  ;;  %v6906_v13 = vld [vmem:[#allocation9 + $0x40] sm:$0xf]  ;;  %v7163_v16 = vor.u32 %v9845_v11, %v7162_v9  ;;  %v7196_v2 = vld [vmem:[#allocation9 + $0x2a0] sm:$0xf0] }
  0xd7   :  { %2431 = vmatpush.bf16.msrb.mxu1 %v7867_v20  ;;  %2417 = vmatpush.bf16.msrb.mxu0 %v7611_v22  ;;  %v6907_v19 = vor.u32 %v9781_v14, %v6906_v13  ;;  %v9889_v20 = vld [vmem:[#allocation9 + $0x3c4] sm:$0xf]  ;;  %v9909_v59 = vld [vmem:[#allocation9 + $0x45c] sm:$0xf0] }
  0xd8   :  { %v7356_v22 = vld [vmem:[#allocation9 + $0x3e0] sm:$0xf0]  ;;  %v7386_v6 = vld [vmem:[#allocation9 + $0x400] sm:$0xf] }
  0xd9   :  { %v7359_v27 = vor.u32 %v9889_v20, %v7356_v22  ;;  %v10009_v3 = vld [vmem:[#allocation9 + $0x784] sm:$0xf]  ;;  %v9901_v7 = vld [vmem:[#allocation9 + $0x41c] sm:$0xf0] }
  0xda   :  { %2404 = vmatpush.bf16.msra.mxu3 %v7323_v26  ;;  %2390 = vmatpush.bf16.msra.mxu2 %v7067_v29  ;;  %v7103_v29 = vor.u32 %v9825_v23, %v7100_v24  ;;  %v7387_v9 = vor.u32 %v9901_v7, %v7386_v6  ;;  %v6972_v11 = vld [vmem:[#allocation9 + $0xe0] sm:$0xf0] }
  0xdb   :  { %2432 = vmatpush.bf16.msrb.mxu1 %v7835_v32  ;;  %2418 = vmatpush.bf16.msrb.mxu0 %v7579_v34  ;;  %v7068_v32 = vld [vmem:[#allocation9 + $0x1a0] sm:$0xf0] }
  0xdc   :  { %v7071_v34 = vor.u32 %v9817_v31, %v7068_v32  ;;  %v9953_v13 = vld [vmem:[#allocation9 + $0x5c4] sm:$0xf] }
  0xdd   :  { %v9785_v22 = vld [vmem:[#allocation9 + $0x84] sm:$0xf] }
  0xde   :  { %2405 = vmatpush.bf16.msra.mxu3 %v7291_v38  ;;  %2391 = vmatpush.bf16.msra.mxu2 %v7035_v41  ;;  %v7674_v38 = vld [vmem:[#allocation9 + $0x640] sm:$0xf]  ;;  %v9865_v41 = vld [vmem:[#allocation9 + $0x304] sm:$0xf] }
  0xdf   :  { %2433 = vmatpush.bf16.msrb.mxu1 %v7803_v44  ;;  %2419 = vmatpush.bf16.msrb.mxu0 %v7547_v46  ;;  %v7675_v40 = vor.u32 %v9973_v39, %v7674_v38  ;;  %v7263_v43 = vor.u32 %v9865_v41, %v7260_v42  ;;  %v7450_v44 = vld [vmem:[#allocation9 + $0x480] sm:$0xf]  ;;  %v6940_v23 = vld [vmem:[#allocation9 + $0xa0] sm:$0xf0] }
  0xe0   :  { %v7451_v46 = vor.u32 %v9917_v45, %v7450_v44  ;;  %v9945_v24 = vld [vmem:[#allocation9 + $0x584] sm:$0xf] }
  0xe1   :  { %v7772_v32 = vld [vmem:[#allocation9 + $0x720] sm:$0xf0] }
  0xe2   :  { %2406 = vmatpush.bf16.msra.mxu3 %v7259_v50  ;;  %2392 = vmatpush.bf16.msra.mxu2 %v7003_v53  ;;  %v7642_v50 = vld [vmem:[#allocation9 + $0x600] sm:$0xf]  ;;  %v9857_v53 = vld [vmem:[#allocation9 + $0x2c4] sm:$0xf] }
  0xe3   :  { %2434 = vmatpush.bf16.msrb.mxu1 %v7771_v56  ;;  %2420 = vmatpush.bf16.msrb.mxu0 %v7515_v58  ;;  %v7643_v52 = vor.u32 %v9965_v51, %v7642_v50  ;;  %v7231_v56 = vor.u32 %v9857_v53, %v7228_v54  ;;  %v7418_v58 = vld [vmem:[#allocation9 + $0x440] sm:$0xf]  ;;  %v7548_v38 = vld [vmem:[#allocation9 + $0x560] sm:$0xf0] }
  0xe4   :  { %759 = vmatmul.bf16.vlgmr.msrb.gmra.mxu2 %v10815_v12  ;;  %787 = vmatmul.bf16.vlgmr.msra.gmra.mxu0 %v10815_v12  ;;  %v7130_v12 = vld [vmem:[#allocation9 + $0x200] sm:$0xf]  ;;  %v7419_v61 = vor.u32 %v9909_v59, %v7418_v58  ;;  %v7740_v41 = vld [vmem:[#allocation9 + $0x6e0] sm:$0xf0] }
  0xe5   :  { %773 = vmatmul.bf16.vlgmr.msrb.gmra.mxu3 %v10817_v17  ;;  %801 = vmatmul.bf16.vlgmr.msra.gmra.mxu1 %v10817_v17  ;;  %v9773_v17 = vld [vmem:[#allocation9 + $0x1c] sm:$0xf0]  ;;  %v7131_v25 = vor.u32 %v9837_v18, %v7130_v12  ;;  %v9841_v12 = vld [vmem:[#allocation9 + $0x244] sm:$0xf] }
  0xe6   :  { %2407 = vmatpush.bf16.msra.mxu3 %v7227_v62  ;;  %2393 = vmatpush.bf16.msra.mxu2 %v6971_v0  ;;  %v6875_v26 = vor.u32 %v9773_v17, %v6874_v21  ;;  %v9801_v62 = vld [vmem:[#allocation9 + $0x104] sm:$0xf] }
  0xe7   :  { %2435 = vmatpush.bf16.msrb.mxu1 %v7739_v4  ;;  %2421 = vmatpush.bf16.msrb.mxu0 %v7483_v5  ;;  %v7007_v0 = vor.u32 %v9801_v62, %v7004_v63  ;;  %v7199_v4 = vor.u32 %v9849_v1, %v7196_v2  ;;  %v7836_v5 = vld [vmem:[#allocation9 + $0x7a0] sm:$0xf0]  ;;  %v368_v62 = vperm.slane %v10827_v57, 1 }
  0xe8   :  { %v7164_v18 = vld [vmem:[#allocation9 + $0x260] sm:$0xf0] }
  0xe9   :  { %v7167_v20 = vor.u32 %v9841_v12, %v7164_v18  ;;  %v7804_v21 = vld [vmem:[#allocation9 + $0x760] sm:$0xf0] }
  0xea   :  { %2408 = vmatpush.bf16.msra.mxu3 %v7195_v8  ;;  %2394 = vmatpush.bf16.msra.mxu2 %v6939_v10  ;;  %v7839_v8 = vor.u32 %v10009_v3, %v7836_v5  ;;  %v9793_v10 = vld [vmem:[#allocation9 + $0xc4] sm:$0xf] }
  0xeb   :  { %2436 = vmatpush.bf16.msrb.mxu1 %v7707_v15  ;;  %2422 = vmatpush.bf16.msrb.mxu0 %v7451_v46  ;;  %v6975_v14 = vor.u32 %v9793_v10, %v6972_v11  ;;  %v7612_v15 = vld [vmem:[#allocation9 + $0x5e0] sm:$0xf0] }
  0xec   :  { %v6876_v44 = vld [vmem:[#allocation9 + $0x20] sm:$0xf0] }
  0xed   :  { %v9929_v45 = vld [vmem:[#allocation9 + $0x504] sm:$0xf] }
  0xee   :  { %2409 = vmatpush.bf16.msra.mxu3 %v7163_v16  ;;  %2395 = vmatpush.bf16.msra.mxu2 %v6907_v19  ;;  %v7615_v16 = vor.u32 %v9953_v13, %v7612_v15  ;;  %v10001_v19 = vld [vmem:[#allocation9 + $0x744] sm:$0xf]  ;;  %v7519_v48 = vor.u32 %v9929_v45, %v7516_v47  ;;  %v9878_v45 = vld [vmem:[#allocation9 + $0x364] sm:$0xf0] }
  0xef   :  { %2437 = vmatpush.bf16.msrb.mxu1 %v7675_v40  ;;  %2423 = vmatpush.bf16.msrb.mxu0 %v7419_v61  ;;  %v7807_v17 = vor.u32 %v10001_v19, %v7804_v21  ;;  %v9985_v40 = vld [vmem:[#allocation9 + $0x6c4] sm:$0xf] }
  0xf0   :  { %v7743_v42 = vor.u32 %v9985_v40, %v7740_v41  ;;  %v7708_v50 = vld [vmem:[#allocation9 + $0x6a0] sm:$0xf0]  ;;  %v9830_v40 = vld [vmem:[#allocation9 + $0x1e4] sm:$0xf0] }
  0xf1   :  { %v7484_v53 = vld [vmem:[#allocation9 + $0x4e0] sm:$0xf0] }
  0xf2   :  { %2410 = vmatpush.bf16.msra.mxu3 %v7131_v25  ;;  %2396 = vmatpush.bf16.msra.mxu2 %v6875_v26  ;;  %v6943_v25 = vor.u32 %v9785_v22, %v6940_v23  ;;  %v7580_v26 = vld [vmem:[#allocation9 + $0x5a0] sm:$0xf0]  ;;  %v9894_v22 = vld [vmem:[#allocation9 + $0x3e4] sm:$0xf0] }
  0xf3   :  { %2438 = vmatpush.bf16.msrb.mxu1 %v7643_v52  ;;  %2424 = vmatpush.bf16.msrb.mxu0 %v7387_v9  ;;  %v9921_v52 = vld [vmem:[#allocation9 + $0x4c4] sm:$0xf] }
  0xf4   :  { %v7487_v54 = vor.u32 %v9921_v52, %v7484_v53  ;;  %v9913_v59 = vld [vmem:[#allocation9 + $0x484] sm:$0xf]  ;;  %v7074_v52 = vld [vmem:[#allocation9 + $0x188] sm:$0xf] }
  0xf5   :  { %v9961_v63 = vld [vmem:[#allocation9 + $0x604] sm:$0xf]  ;;  %v9822_v53 = vld [vmem:[#allocation9 + $0x1a4] sm:$0xf0] }
  0xf6   :  { %2459 = vmatpush.bf16.msrb.mxu3 %v7359_v27  ;;  %2445 = vmatpush.bf16.msrb.mxu2 %v7103_v29  ;;  %v7583_v27 = vor.u32 %v9945_v24, %v7580_v26  ;;  %v7132_v29 = vld [vmem:[#allocation9 + $0x220] sm:$0xf0]  ;;  %v370_v26 = vperm.slane %v10827_v57, 3 }
  0xf7   :  { %2487 = vmatpush.bf16.msra.mxu1 %v7871_v60  ;;  %2473 = vmatpush.bf16.msra.mxu0 %v7615_v16  ;;  %v7135_v31 = vor.u32 %v9833_v28, %v7132_v29  ;;  %v7452_v60 = vld [vmem:[#allocation9 + $0x4a0] sm:$0xf0] }
  0xf8   :  { %v7455_v61 = vor.u32 %v9913_v59, %v7452_v60  ;;  %v7420_v5 = vld [vmem:[#allocation9 + $0x460] sm:$0xf0]  ;;  %v7266_v59 = vld [vmem:[#allocation9 + $0x308] sm:$0xf] }
  0xf9   :  { %v9897_v10 = vld [vmem:[#allocation9 + $0x404] sm:$0xf]  ;;  %v9870_v60 = vld [vmem:[#allocation9 + $0x324] sm:$0xf0] }
  0xfa   :  { %2460 = vmatpush.bf16.msrb.mxu3 %v7327_v33  ;;  %2446 = vmatpush.bf16.msrb.mxu2 %v7071_v34  ;;  %v7775_v33 = vor.u32 %v9993_v30, %v7772_v32  ;;  %v9777_v34 = vld [vmem:[#allocation9 + $0x44] sm:$0xf] }
  0xfb   :  { %2488 = vmatpush.bf16.msra.mxu1 %v7839_v8  ;;  %2474 = vmatpush.bf16.msra.mxu0 %v7583_v27  ;;  %v6911_v36 = vor.u32 %v9777_v34, %v6908_v35  ;;  %v367_v8 = vperm.slane %v10827_v57, 0  ;;  %v7388_v11 = vld [vmem:[#allocation9 + $0x420] sm:$0xf0]  ;;  %v7330_v34 = vld [vmem:[#allocation9 + $0x388] sm:$0xf] }
  0xfc   :  { %v7391_v15 = vor.u32 %v9897_v10, %v7388_v11  ;;  %v9886_v35 = vld [vmem:[#allocation9 + $0x3a4] sm:$0xf0] }
  0xfe   :  { %2461 = vmatpush.bf16.msrb.mxu3 %v7295_v37  ;;  %2447 = vmatpush.bf16.msrb.mxu2 %v7039_v49  ;;  %v9937_v37 = vld [vmem:[#allocation9 + $0x544] sm:$0xf] }
  0xff   :  { %2489 = vmatpush.bf16.msra.mxu1 %v7807_v17  ;;  %v7551_v39 = vor.u32 %v9937_v37, %v7548_v38  ;;  %v9977_v49 = vld [vmem:[#allocation9 + $0x684] sm:$0xf]  ;;  %v7362_v17 = vld [vmem:[#allocation9 + $0x3c8] sm:$0xf] }
 0x100   :  { %v7711_v51 = vor.u32 %v9977_v49, %v7708_v50 }
 0x101   :  { %2475 = vmatpush.bf16.msra.mxu0 %v7551_v39  ;;  %v7106_v39 = vld [vmem:[#allocation9 + $0x1c8] sm:$0xf] }
 0x102   :  { %2462 = vmatpush.bf16.msrb.mxu3 %v7263_v43  ;;  %2448 = vmatpush.bf16.msrb.mxu2 %v7007_v0  ;;  %v9769_v43 = vld [vmem:[#allocation9 + $0x4] sm:$0xf]  ;;  %v7107_v49 = vor.u32 %v9830_v40, %v7106_v39  ;;  %v7810_v39 = vld [vmem:[#allocation9 + $0x748] sm:$0xf] }
 0x103   :  { %2490 = vmatpush.bf16.msra.mxu1 %v7775_v33  ;;  %v6879_v46 = vor.u32 %v9769_v43, %v6876_v44  ;;  %v7644_v0 = vld [vmem:[#allocation9 + $0x620] sm:$0xf0]  ;;  %v7331_v43 = vor.u32 %v9886_v35, %v7330_v34  ;;  %v7298_v44 = vld [vmem:[#allocation9 + $0x348] sm:$0xf] }
 0x104   :  { %v7647_v2 = vor.u32 %v9961_v63, %v7644_v0  ;;  %v7075_v63 = vor.u32 %v9822_v53, %v7074_v52  ;;  %v7042_v0 = vld [vmem:[#allocation9 + $0x148] sm:$0xf] }
 0x105   :  { %2476 = vmatpush.bf16.msra.mxu0 %v7519_v48  ;;  %v369_v48 = vperm.slane %v10827_v57, 2  ;;  %v10006_v40 = vld [vmem:[#allocation9 + $0x764] sm:$0xf0] }
 0x106   :  { %2463 = vmatpush.bf16.msrb.mxu3 %v7231_v56  ;;  %2449 = vmatpush.bf16.msrb.mxu2 %v6975_v14  ;;  %v7676_v56 = vld [vmem:[#allocation9 + $0x660] sm:$0xf0]  ;;  %v7811_v52 = vor.u32 %v10006_v40, %v7810_v39  ;;  %v7138_v53 = vld [vmem:[#allocation9 + $0x208] sm:$0xf] }
 0x107   :  { %2491 = vmatpush.bf16.msra.mxu1 %v7743_v42  ;;  %v7679_v58 = vor.u32 %v9969_v55, %v7676_v56  ;;  %v7299_v56 = vor.u32 %v9878_v45, %v7298_v44  ;;  %v6946_v45 = vld [vmem:[#allocation9 + $0x88] sm:$0xf] }
 0x108   :  { %v7458_v39 = vld [vmem:[#allocation9 + $0x488] sm:$0xf] }
 0x109   :  { %2477 = vmatpush.bf16.msra.mxu0 %v7487_v54  ;;  %v9918_v40 = vld [vmem:[#allocation9 + $0x4a4] sm:$0xf0] }
 0x10a   :  { %2464 = vmatpush.bf16.msrb.mxu3 %v7199_v4  ;;  %2450 = vmatpush.bf16.msrb.mxu2 %v6943_v25  ;;  %v9905_v4 = vld [vmem:[#allocation9 + $0x444] sm:$0xf] }
 0x10b   :  { %2492 = vmatpush.bf16.msra.mxu1 %v7711_v51  ;;  %v7423_v6 = vor.u32 %v9905_v4, %v7420_v5  ;;  %v7267_v4 = vor.u32 %v9870_v60, %v7266_v59  ;;  %v7234_v5 = vld [vmem:[#allocation9 + $0x2c8] sm:$0xf]  ;;  %v9890_v60 = vld [vmem:[#allocation9 + $0x3cc] sm:$0xf] }
 0x10d   :  { %2478 = vmatpush.bf16.msra.mxu0 %v7455_v61 }
 0x10e   :  { %2465 = vmatpush.bf16.msrb.mxu3 %v7167_v20  ;;  %2451 = vmatpush.bf16.msrb.mxu2 %v6911_v36 }
 0x10f   :  { %2493 = vmatpush.bf16.msra.mxu1 %v7679_v58 }
 0x111   :  { %2479 = vmatpush.bf16.msra.mxu0 %v7423_v6  ;;  %v9862_v6 = vld [vmem:[#allocation9 + $0x2e4] sm:$0xf0] }
 0x112   :  { %2466 = vmatpush.bf16.msrb.mxu3 %v7135_v31  ;;  %2452 = vmatpush.bf16.msrb.mxu2 %v6879_v46  ;;  %v7363_v31 = vor.u32 %v9894_v22, %v7362_v17 }
 0x113   :  { %2494 = vmatpush.bf16.msra.mxu1 %v7647_v2 }
 0x115   :  { %2480 = vmatpush.bf16.msra.mxu0 %v7391_v15  ;;  %v7010_v15 = vld [vmem:[#allocation9 + $0x108] sm:$0xf] }
 0x151   :  { %v732_v1 = vpop.f32.mrf.mxu0 }
 0x152   :  { %v746_v3 = vpop.f32.mrf.mxu1  ;;  %v733_v7 = vadd.f32 %v732_v1, %v368_v62  ;;  %v9814_v1 = vld [vmem:[#allocation9 + $0x164] sm:$0xf0] }
 0x153   :  { %v7043_v11 = vor.u32 %v9814_v1, %v7042_v0  ;;  %v9942_v0 = vld [vmem:[#allocation9 + $0x564] sm:$0xf0] }
 0x154   :  { %v747_v13 = vadd.f32 %v746_v3, %v733_v7  ;;  %v7874_v7 = vld [vmem:[#allocation9 + $0x7c8] sm:$0xf] }
 0x156   :  { %v816_v20 = vmul.f32 0.2, %v747_v13  ;;  %vm808_vm4 = vcmp.gt.f32.partialorder %v747_v13, 0.0 }
 0x157   :  { %v704_v9 = vpop.f32.mrf.mxu2 }
 0x158   :  { %v718_v14 = vpop.f32.mrf.mxu3  ;;  %v705_v12 = vadd.f32 %v704_v9, %v367_v8  ;;  %v824_v27 = vsel %vm808_vm4, %v747_v13, %v816_v20 }
 0x159   :  { %v734_v16 = vpop.f32.mrf.mxu0 }
 0x15a   :  { %v735_v18 = vadd.f32 %v734_v16, %v368_v62  ;;  %v748_v19 = vpop.f32.mrf.mxu1  ;;  %v719_v23 = vadd.f32 %v718_v14, %v705_v12  ;;  %v7235_v14 = vor.u32 %v9862_v6, %v7234_v5  ;;  %v9806_v16 = vld [vmem:[#allocation9 + $0x124] sm:$0xf0] }
 0x15b   :  { %v9990_v5 = vld [vmem:[#allocation9 + $0x6e4] sm:$0xf0] }
 0x15c   :  { %v749_v21 = vadd.f32 %v748_v19, %v735_v18  ;;  %v815_v36 = vmul.f32 0.2, %v719_v23  ;;  %vm807_vm6 = vcmp.gt.f32.partialorder %v719_v23, 0.0 }
 0x15e   :  { %vm812_vm5 = vcmp.gt.f32.partialorder %v749_v21, 0.0  ;;  %v820_v24 = vmul.f32 0.2, %v749_v21  ;;  %v823_v46 = vsel %vm807_vm6, %v719_v23, %v815_v36  ;;  %v9854_v23 = vld [vmem:[#allocation9 + $0x2a4] sm:$0xf0] }
 0x15f   :  { %v706_v25 = vpop.f32.mrf.mxu2 }
 0x160   :  { %v828_v28 = vsel %vm812_vm5, %v749_v21, %v820_v24  ;;  %v707_v29 = vadd.f32 %v706_v25, %v367_v8  ;;  %v720_v30 = vpop.f32.mrf.mxu3  ;;  %v10022_v8 = vld [vmem:[#allocation9 + $0x7e4] sm:$0xf0] }
 0x161   :  { %v10832_v32 = vpack.c.bf16 %v828_v28, %v824_v27  ;;  %v788_v33 = vpop.f32.mrf.mxu0  ;;  %v7875_v20 = vor.u32 %v10022_v8, %v7874_v7  ;;  %v7202_v21 = vld [vmem:[#allocation9 + $0x288] sm:$0xf]  ;;  %v7011_v28 = vor.u32 %v9806_v16, %v7010_v15  ;;  %v9882_v8 = vld [vmem:[#allocation9 + $0x38c] sm:$0xf] }
 0x162   :  { %v721_v37 = vadd.f32 %v720_v30, %v707_v29  ;;  %v802_v38 = vpop.f32.mrf.mxu1  ;;  %v789_v42 = vadd.f32 %v788_v33, %v370_v26  ;;  %v7842_v24 = vld [vmem:[#allocation9 + $0x788] sm:$0xf]  ;;  %v7203_v35 = vor.u32 %v9854_v23, %v7202_v21  ;;  %v9826_v16 = vld [vmem:[#allocation9 + $0x1cc] sm:$0xf] }
 0x163   :  { %2411 = vmatmul.bf16.vlgmr.msra.gmra.mxu3 %v10832_v32  ;;  %v10014_v25 = vld [vmem:[#allocation9 + $0x7a4] sm:$0xf0]  ;;  %v9874_v23 = vld [vmem:[#allocation9 + $0x34c] sm:$0xf] }
 0x164   :  { %vm811_vm7 = vcmp.gt.f32.partialorder %v721_v37, 0.0  ;;  %v819_v41 = vmul.f32 0.2, %v721_v37  ;;  %2515 = vmatpush.bf16.msra.mxu3 %v7363_v31  ;;  %v803_v54 = vadd.f32 %v802_v38, %v789_v42  ;;  %v6978_v29 = vld [vmem:[#allocation9 + $0xc8] sm:$0xf]  ;;  %v7843_v36 = vor.u32 %v10014_v25, %v7842_v24 }
 0x165   :  { %v9798_v30 = vld [vmem:[#allocation9 + $0xe4] sm:$0xf0]  ;;  %v7300_v24 = vld [vmem:[#allocation9 + $0x368] sm:$0xf0] }
 0x166   :  { %v827_v47 = vsel %vm811_vm7, %v721_v37, %v819_v41  ;;  %v818_v2 = vmul.f32 0.2, %v803_v54  ;;  %vm810_vm8 = vcmp.gt.f32.partialorder %v803_v54, 0.0  ;;  %v7618_v31 = vld [vmem:[#allocation9 + $0x5c8] sm:$0xf] }
 0x167   :  { %v10836_v50 = vpack.c.bf16 %v827_v47, %v823_v46  ;;  %v760_v51 = vpop.f32.mrf.mxu2  ;;  %v9958_v33 = vld [vmem:[#allocation9 + $0x5e4] sm:$0xf0] }
 0x168   :  { %v774_v55 = vpop.f32.mrf.mxu3  ;;  %2516 = vmatpush.bf16.msra.mxu3 %v7331_v43  ;;  %v761_v61 = vadd.f32 %v760_v51, %v369_v48  ;;  %v826_v12 = vsel %vm810_vm8, %v803_v54, %v818_v2  ;;  %v7170_v37 = vld [vmem:[#allocation9 + $0x248] sm:$0xf]  ;;  %v6979_v43 = vor.u32 %v9798_v30, %v6978_v29  ;;  %v7619_v44 = vor.u32 %v9958_v33, %v7618_v31  ;;  %v9818_v29 = vld [vmem:[#allocation9 + $0x18c] sm:$0xf] }
 0x169   :  { %v790_v58 = vpop.f32.mrf.mxu0  ;;  %2397 = vmatmul.bf16.vlgmr.msra.gmra.mxu2 %v10836_v50  ;;  %v9846_v38 = vld [vmem:[#allocation9 + $0x264] sm:$0xf0]  ;;  %v7076_v30 = vld [vmem:[#allocation9 + $0x1a8] sm:$0xf0]  ;;  %v7303_v31 = vor.u32 %v9874_v23, %v7300_v24 }
 0x16a   :  { %v791_v62 = vadd.f32 %v790_v58, %v370_v26  ;;  %2501 = vmatpush.bf16.msra.mxu2 %v7107_v49  ;;  %v804_v57 = vpop.f32.mrf.mxu1  ;;  %v775_v9 = vadd.f32 %v774_v55, %v761_v61  ;;  %v9790_v47 = vld [vmem:[#allocation9 + $0xa4] sm:$0xf0]  ;;  %v7171_v51 = vor.u32 %v9846_v38, %v7170_v37  ;;  %v7364_v61 = vld [vmem:[#allocation9 + $0x3e8] sm:$0xf0]  ;;  %v7079_v38 = vor.u32 %v9818_v29, %v7076_v30 }
 0x16b   :  { %v9950_v49 = vld [vmem:[#allocation9 + $0x5a4] sm:$0xf0]  ;;  %v6947_v58 = vor.u32 %v9790_v47, %v6946_v45  ;;  %v7268_v37 = vld [vmem:[#allocation9 + $0x328] sm:$0xf0] }
 0x16c   :  { %v805_v3 = vadd.f32 %v804_v57, %v791_v62  ;;  %2517 = vmatpush.bf16.msra.mxu3 %v7299_v56  ;;  %v817_v26 = vmul.f32 0.2, %v775_v9  ;;  %vm809_vm10 = vcmp.gt.f32.partialorder %v775_v9, 0.0  ;;  %v9838_v54 = vld [vmem:[#allocation9 + $0x224] sm:$0xf0] }
 0x16d   :  { %v7778_v55 = vld [vmem:[#allocation9 + $0x708] sm:$0xf]  ;;  %v7139_v1 = vor.u32 %v9838_v54, %v7138_v53  ;;  %v7876_v53 = vld [vmem:[#allocation9 + $0x7e8] sm:$0xf0] }
 0x16e   :  { %vm814_vm9 = vcmp.gt.f32.partialorder %v805_v3, 0.0  ;;  %v822_v10 = vmul.f32 0.2, %v805_v3  ;;  %2502 = vmatpush.bf16.msra.mxu2 %v7075_v63  ;;  %v825_v41 = vsel %vm809_vm10, %v775_v9, %v817_v26  ;;  %v9998_v56 = vld [vmem:[#allocation9 + $0x724] sm:$0xf0] }
 0x16f   :  { %v762_v13 = vpop.f32.mrf.mxu2  ;;  %v6914_v62 = vld [vmem:[#allocation9 + $0x48] sm:$0xf]  ;;  %v7779_v2 = vor.u32 %v9998_v56, %v7778_v55  ;;  %v7332_v9 = vld [vmem:[#allocation9 + $0x3a8] sm:$0xf0] }
 0x170   :  { %v830_v18 = vsel %vm814_vm9, %v805_v3, %v822_v10  ;;  %v763_v19 = vadd.f32 %v762_v13, %v369_v48  ;;  %2518 = vmatpush.bf16.msra.mxu3 %v7267_v4  ;;  %v776_v22 = vpop.f32.mrf.mxu3  ;;  %v7586_v48 = vld [vmem:[#allocation9 + $0x588] sm:$0xf]  ;;  %v7367_v3 = vor.u32 %v9890_v60, %v7364_v61  ;;  %v7012_v60 = vld [vmem:[#allocation9 + $0x128] sm:$0xf0] }
 0x171   :  { %v10839_v17 = vpack.c.bf16 %v830_v18, %v826_v12  ;;  %v7587_v59 = vor.u32 %v9950_v49, %v7586_v48  ;;  %v9782_v63 = vld [vmem:[#allocation9 + $0x64] sm:$0xf0]  ;;  %v7108_v12 = vld [vmem:[#allocation9 + $0x1e8] sm:$0xf0]  ;;  %v7335_v18 = vor.u32 %v9882_v8, %v7332_v9  ;;  %v7459_v49 = vor.u32 %v9918_v40, %v7458_v39 }
 0x172   :  { %v777_v27 = vadd.f32 %v776_v22, %v763_v19  ;;  %2503 = vmatpush.bf16.msra.mxu2 %v7043_v11  ;;  %v7554_v57 = vld [vmem:[#allocation9 + $0x548] sm:$0xf]  ;;  %v6915_v6 = vor.u32 %v9782_v63, %v6914_v62  ;;  %v7111_v25 = vor.u32 %v9826_v16, %v7108_v12  ;;  %v9858_v48 = vld [vmem:[#allocation9 + $0x2cc] sm:$0xf] }
 0x173   :  { %2439 = vmatmul.bf16.vlgmr.msrb.gmra.mxu1 %v10839_v17  ;;  %2467 = vmatmul.bf16.vlgmr.msrb.gmra.mxu3 %v10832_v32  ;;  %v7746_v4 = vld [vmem:[#allocation9 + $0x6c8] sm:$0xf]  ;;  %v7555_v7 = vor.u32 %v9942_v0, %v7554_v57  ;;  %v9850_v63 = vld [vmem:[#allocation9 + $0x28c] sm:$0xf] }
 0x174   :  { %vm813_vm11 = vcmp.gt.f32.partialorder %v777_v27, 0.0  ;;  %v821_v34 = vmul.f32 0.2, %v777_v27  ;;  %2519 = vmatpush.bf16.msra.mxu3 %v7235_v14  ;;  %2543 = vmatpush.bf16.msrb.mxu1 %v7875_v20  ;;  %v6882_v10 = vld [vmem:[#allocation9 + $0x8] sm:$0xf]  ;;  %v7747_v15 = vor.u32 %v9990_v5, %v7746_v4 }
 0x175   :  { %v9774_v11 = vld [vmem:[#allocation9 + $0x24] sm:$0xf0]  ;;  %v7204_v0 = vld [vmem:[#allocation9 + $0x2a8] sm:$0xf0] }
 0x176   :  { %v829_v42 = vsel %vm813_vm11, %v777_v27, %v821_v34  ;;  %2504 = vmatpush.bf16.msra.mxu2 %v7011_v28  ;;  %v7522_v13 = vld [vmem:[#allocation9 + $0x508] sm:$0xf]  ;;  %v6883_v21 = vor.u32 %v9774_v11, %v6882_v10  ;;  %v9954_v8 = vld [vmem:[#allocation9 + $0x5cc] sm:$0xf]  ;;  %v7207_v10 = vor.u32 %v9850_v63, %v7204_v0  ;;  %v7306_v63 = vld [vmem:[#allocation9 + $0x350] sm:$0xf] }
 0x177   :  { %v10843_v46 = vpack.c.bf16 %v829_v42, %v825_v41  ;;  %v9934_v14 = vld [vmem:[#allocation9 + $0x524] sm:$0xf0]  ;;  %v9810_v42 = vld [vmem:[#allocation9 + $0x14c] sm:$0xf] }
 0x178   :  { %2520 = vmatpush.bf16.msra.mxu3 %v7203_v35  ;;  %2544 = vmatpush.bf16.msrb.mxu1 %v7843_v36  ;;  %v7714_v19 = vld [vmem:[#allocation9 + $0x688] sm:$0xf]  ;;  %v7523_v22 = vor.u32 %v9934_v14, %v7522_v13  ;;  %v9866_v36 = vld [vmem:[#allocation9 + $0x30c] sm:$0xf] }
 0x179   :  { %2425 = vmatmul.bf16.vlgmr.msrb.gmra.mxu0 %v10843_v46  ;;  %2453 = vmatmul.bf16.vlgmr.msrb.gmra.mxu2 %v10836_v50  ;;  %v9982_v20 = vld [vmem:[#allocation9 + $0x6a4] sm:$0xf0]  ;;  %v7620_v9 = vld [vmem:[#allocation9 + $0x5e8] sm:$0xf0] }
 0x17a   :  { %2505 = vmatpush.bf16.msra.mxu2 %v6979_v43  ;;  %2529 = vmatpush.bf16.msrb.mxu0 %v7619_v44  ;;  %v7490_v26 = vld [vmem:[#allocation9 + $0x4c8] sm:$0xf]  ;;  %v7715_v28 = vor.u32 %v9982_v20, %v7714_v19  ;;  %v7044_v43 = vld [vmem:[#allocation9 + $0x168] sm:$0xf0]  ;;  %v7271_v44 = vor.u32 %v9866_v36, %v7268_v37  ;;  %v7623_v19 = vor.u32 %v9954_v8, %v7620_v9 }
 0x17b   :  { %v9926_v27 = vld [vmem:[#allocation9 + $0x4e4] sm:$0xf0]  ;;  %v7047_v54 = vor.u32 %v9810_v42, %v7044_v43  ;;  %v9842_v13 = vld [vmem:[#allocation9 + $0x24c] sm:$0xf] }
 0x17c   :  { %2521 = vmatpush.bf16.msra.mxu3 %v7171_v51  ;;  %2545 = vmatpush.bf16.msrb.mxu1 %v7811_v52  ;;  %v7682_v33 = vld [vmem:[#allocation9 + $0x648] sm:$0xf]  ;;  %v7491_v35 = vor.u32 %v9926_v27, %v7490_v26  ;;  %v7236_v51 = vld [vmem:[#allocation9 + $0x2e8] sm:$0xf0] }
 0x17d   :  { %v9974_v34 = vld [vmem:[#allocation9 + $0x664] sm:$0xf0]  ;;  %v10018_v52 = vld [vmem:[#allocation9 + $0x7cc] sm:$0xf]  ;;  %v7239_v61 = vor.u32 %v9858_v48, %v7236_v51  ;;  %v9887_v48 = vld [vmem:[#allocation9 + $0x3ac] sm:$0xf0] }
 0x17e   :  { %2506 = vmatpush.bf16.msra.mxu2 %v6947_v58  ;;  %2530 = vmatpush.bf16.msrb.mxu0 %v7587_v59  ;;  %v7683_v41 = vor.u32 %v9974_v34, %v7682_v33  ;;  %v7650_v45 = vld [vmem:[#allocation9 + $0x608] sm:$0xf]  ;;  %v9802_v59 = vld [vmem:[#allocation9 + $0x10c] sm:$0xf]  ;;  %v7879_v62 = vor.u32 %v10018_v52, %v7876_v53  ;;  %v7370_v33 = vld [vmem:[#allocation9 + $0x3d0] sm:$0xf] }
 0x17f   :  { %v9966_v47 = vld [vmem:[#allocation9 + $0x624] sm:$0xf0]  ;;  %v10002_v16 = vld [vmem:[#allocation9 + $0x74c] sm:$0xf]  ;;  %v9895_v34 = vld [vmem:[#allocation9 + $0x3ec] sm:$0xf0] }
 0x180   :  { %2522 = vmatpush.bf16.msra.mxu3 %v7139_v1  ;;  %2546 = vmatpush.bf16.msrb.mxu1 %v7779_v2  ;;  %v7426_v55 = vld [vmem:[#allocation9 + $0x448] sm:$0xf]  ;;  %v7651_v58 = vor.u32 %v9966_v47, %v7650_v45  ;;  %v10010_v1 = vld [vmem:[#allocation9 + $0x78c] sm:$0xf]  ;;  %v7338_v47 = vld [vmem:[#allocation9 + $0x390] sm:$0xf] }
 0x181   :  { %v9910_v56 = vld [vmem:[#allocation9 + $0x464] sm:$0xf0]  ;;  %v7844_v2 = vld [vmem:[#allocation9 + $0x7a8] sm:$0xf0] }
 0x182   :  { %2507 = vmatpush.bf16.msra.mxu2 %v6915_v6  ;;  %2531 = vmatpush.bf16.msrb.mxu0 %v7555_v7  ;;  %v7427_v57 = vor.u32 %v9910_v56, %v7426_v55  ;;  %v7394_v4 = vld [vmem:[#allocation9 + $0x408] sm:$0xf]  ;;  %v9794_v6 = vld [vmem:[#allocation9 + $0xcc] sm:$0xf]  ;;  %v7847_v11 = vor.u32 %v10010_v1, %v7844_v2  ;;  %v7114_v55 = vld [vmem:[#allocation9 + $0x1d0] sm:$0xf] }
 0x183   :  { %2495 = vmatmul.bf16.vlgmr.msra.gmra.mxu1 %v10839_v17  ;;  %2523 = vmatmul.bf16.vlgmr.msra.gmra.mxu3 %v10832_v32  ;;  %v9902_v5 = vld [vmem:[#allocation9 + $0x424] sm:$0xf0]  ;;  %v6980_v7 = vld [vmem:[#allocation9 + $0xe8] sm:$0xf0]  ;;  %v9831_v56 = vld [vmem:[#allocation9 + $0x1ec] sm:$0xf0] }
 0x184   :  { %2571 = vmatpush.bf16.msrb.mxu3 %v7367_v3  ;;  %2547 = vmatpush.bf16.msrb.mxu1 %v7747_v15  ;;  %v7015_v3 = vor.u32 %v9802_v59, %v7012_v60  ;;  %v7395_v14 = vor.u32 %v9902_v5, %v7394_v4  ;;  %v7172_v15 = vld [vmem:[#allocation9 + $0x268] sm:$0xf0]  ;;  %v7115_v0 = vor.u32 %v9831_v56, %v7114_v55  ;;  %v7082_v4 = vld [vmem:[#allocation9 + $0x190] sm:$0xf] }
 0x185   :  { %v7812_v12 = vld [vmem:[#allocation9 + $0x768] sm:$0xf0]  ;;  %v7175_v24 = vor.u32 %v9842_v13, %v7172_v15  ;;  %v9823_v5 = vld [vmem:[#allocation9 + $0x1ac] sm:$0xf0] }
 0x186   :  { %2508 = vmatpush.bf16.msra.mxu2 %v6883_v21  ;;  %2532 = vmatpush.bf16.msrb.mxu0 %v7523_v22  ;;  %v9786_v20 = vld [vmem:[#allocation9 + $0x8c] sm:$0xf]  ;;  %v7083_v13 = vor.u32 %v9823_v5, %v7082_v4  ;;  %v9999_v4 = vld [vmem:[#allocation9 + $0x72c] sm:$0xf0] }
 0x187   :  { %v6948_v21 = vld [vmem:[#allocation9 + $0xa8] sm:$0xf0] }
 0x188   :  { %2572 = vmatpush.bf16.msrb.mxu3 %v7335_v18  ;;  %2548 = vmatpush.bf16.msrb.mxu1 %v7715_v28  ;;  %v6983_v18 = vor.u32 %v9794_v6, %v6980_v7  ;;  %v9946_v22 = vld [vmem:[#allocation9 + $0x58c] sm:$0xf]  ;;  %v6951_v30 = vor.u32 %v9786_v20, %v6948_v21 }
 0x189   :  { %2481 = vmatmul.bf16.vlgmr.msra.gmra.mxu0 %v10843_v46  ;;  %2509 = vmatmul.bf16.vlgmr.msra.gmra.mxu2 %v10836_v50  ;;  %v7588_v23 = vld [vmem:[#allocation9 + $0x5a8] sm:$0xf0] }
 0x18a   :  { %2557 = vmatpush.bf16.msrb.mxu2 %v7111_v25  ;;  %2533 = vmatpush.bf16.msrb.mxu0 %v7491_v35  ;;  %v7815_v25 = vor.u32 %v10002_v16, %v7812_v12  ;;  %v9834_v26 = vld [vmem:[#allocation9 + $0x20c] sm:$0xf]  ;;  %v7050_v12 = vld [vmem:[#allocation9 + $0x150] sm:$0xf] }
 0x18b   :  { %v7140_v27 = vld [vmem:[#allocation9 + $0x228] sm:$0xf0] }
 0x18c   :  { %2573 = vmatpush.bf16.msrb.mxu3 %v7303_v31  ;;  %2549 = vmatpush.bf16.msrb.mxu1 %v7683_v41  ;;  %v9994_v28 = vld [vmem:[#allocation9 + $0x70c] sm:$0xf]  ;;  %v7591_v31 = vor.u32 %v9946_v22, %v7588_v23  ;;  %v7143_v39 = vor.u32 %v9834_v26, %v7140_v27  ;;  %v7371_v41 = vor.u32 %v9895_v34, %v7370_v33  ;;  %v7242_v22 = vld [vmem:[#allocation9 + $0x2d0] sm:$0xf] }
 0x18d   :  { %v7780_v29 = vld [vmem:[#allocation9 + $0x728] sm:$0xf0]  ;;  %v10023_v26 = vld [vmem:[#allocation9 + $0x7ec] sm:$0xf0] }
 0x18e   :  { %2558 = vmatpush.bf16.msrb.mxu2 %v7079_v38  ;;  %2534 = vmatpush.bf16.msrb.mxu0 %v7459_v49  ;;  %v9778_v35 = vld [vmem:[#allocation9 + $0x4c] sm:$0xf]  ;;  %v7783_v40 = vor.u32 %v9994_v28, %v7780_v29  ;;  %v9807_v33 = vld [vmem:[#allocation9 + $0x12c] sm:$0xf0] }
 0x18f   :  { %v6916_v36 = vld [vmem:[#allocation9 + $0x68] sm:$0xf0] }
 0x190   :  { %2574 = vmatpush.bf16.msrb.mxu3 %v7271_v44  ;;  %2550 = vmatpush.bf16.msrb.mxu1 %v7651_v58  ;;  %v9938_v37 = vld [vmem:[#allocation9 + $0x54c] sm:$0xf]  ;;  %v6919_v44 = vor.u32 %v9778_v35, %v6916_v36  ;;  %v7339_v58 = vor.u32 %v9887_v48, %v7338_v47  ;;  %v7210_v36 = vld [vmem:[#allocation9 + $0x290] sm:$0xf] }
 0x191   :  { %v7556_v38 = vld [vmem:[#allocation9 + $0x568] sm:$0xf0]  ;;  %v7626_v47 = vld [vmem:[#allocation9 + $0x5d0] sm:$0xf] }
 0x192   :  { %2559 = vmatpush.bf16.msrb.mxu2 %v7047_v54  ;;  %2535 = vmatpush.bf16.msrb.mxu0 %v7427_v57  ;;  %v9986_v42 = vld [vmem:[#allocation9 + $0x6cc] sm:$0xf]  ;;  %v7559_v45 = vor.u32 %v9938_v37, %v7556_v38  ;;  %v9879_v57 = vld [vmem:[#allocation9 + $0x36c] sm:$0xf0] }
 0x193   :  { %2551 = vmatmul.bf16.vlgmr.msrb.gmra.mxu1 %v10839_v17  ;;  %v7748_v43 = vld [vmem:[#allocation9 + $0x6e8] sm:$0xf0]  ;;  %v7307_v6 = vor.u32 %v9879_v57, %v7306_v63  ;;  %v9855_v38 = vld [vmem:[#allocation9 + $0x2ac] sm:$0xf0] }
 0x194   :  { %2575 = vmatpush.bf16.msrb.mxu3 %v7239_v61  ;;  %2599 = vmatpush.bf16.msra.mxu1 %v7879_v62  ;;  %v9770_v49 = vld [vmem:[#allocation9 + $0xc] sm:$0xf]  ;;  %v7751_v54 = vor.u32 %v9986_v42, %v7748_v43  ;;  %v9959_v48 = vld [vmem:[#allocation9 + $0x5ec] sm:$0xf0] }
 0x195   :  { %v6884_v51 = vld [vmem:[#allocation9 + $0x28] sm:$0xf0]  ;;  %v7627_v56 = vor.u32 %v9959_v48, %v7626_v47  ;;  %v9951_v63 = vld [vmem:[#allocation9 + $0x5ac] sm:$0xf0] }
 0x196   :  { %2560 = vmatpush.bf16.msrb.mxu2 %v7015_v3  ;;  %2536 = vmatpush.bf16.msrb.mxu0 %v7395_v14  ;;  %v9930_v52 = vld [vmem:[#allocation9 + $0x50c] sm:$0xf]  ;;  %v6887_v61 = vor.u32 %v9770_v49, %v6884_v51  ;;  %v7211_v49 = vor.u32 %v9855_v38, %v7210_v36  ;;  %v9875_v36 = vld [vmem:[#allocation9 + $0x354] sm:$0xf]  ;;  %v7690_v47 = vld [vmem:[#allocation9 + $0x650] sm:$0xf] }
 0x197   :  { %v7524_v53 = vld [vmem:[#allocation9 + $0x528] sm:$0xf0]  ;;  %v7308_v38 = vld [vmem:[#allocation9 + $0x370] sm:$0xf0]  ;;  %v9975_v48 = vld [vmem:[#allocation9 + $0x66c] sm:$0xf0] }
 0x198   :  { %2576 = vmatpush.bf16.msrb.mxu3 %v7207_v10  ;;  %2600 = vmatpush.bf16.msra.mxu1 %v7847_v11  ;;  %v9978_v59 = vld [vmem:[#allocation9 + $0x68c] sm:$0xf]  ;;  %v7527_v62 = vor.u32 %v9930_v52, %v7524_v53  ;;  %v7274_v10 = vld [vmem:[#allocation9 + $0x310] sm:$0xf] }
 0x199   :  { %2537 = vmatmul.bf16.vlgmr.msrb.gmra.mxu0 %v10843_v46  ;;  %v7716_v60 = vld [vmem:[#allocation9 + $0x6a8] sm:$0xf0]  ;;  %v9871_v11 = vld [vmem:[#allocation9 + $0x32c] sm:$0xf0] }
 0x19a   :  { %2561 = vmatpush.bf16.msrb.mxu2 %v6983_v18  ;;  %2585 = vmatpush.bf16.msra.mxu0 %v7623_v19  ;;  %v9922_v1 = vld [vmem:[#allocation9 + $0x4cc] sm:$0xf]  ;;  %v7719_v3 = vor.u32 %v9978_v59, %v7716_v60  ;;  %v9815_v18 = vld [vmem:[#allocation9 + $0x16c] sm:$0xf0]  ;;  %v7275_v19 = vor.u32 %v9871_v11, %v7274_v10 }
 0x19b   :  { %v7492_v2 = vld [vmem:[#allocation9 + $0x4e8] sm:$0xf0]  ;;  %v7051_v27 = vor.u32 %v9815_v18, %v7050_v12  ;;  %v7178_v53 = vld [vmem:[#allocation9 + $0x250] sm:$0xf] }
 0x19c   :  { %2577 = vmatpush.bf16.msrb.mxu3 %v7175_v24  ;;  %2601 = vmatpush.bf16.msra.mxu1 %v7815_v25  ;;  %v9970_v7 = vld [vmem:[#allocation9 + $0x64c] sm:$0xf]  ;;  %v7495_v9 = vor.u32 %v9922_v1, %v7492_v2  ;;  %v9863_v24 = vld [vmem:[#allocation9 + $0x2ec] sm:$0xf0] }
 0x19d   :  { %v7684_v8 = vld [vmem:[#allocation9 + $0x668] sm:$0xf0]  ;;  %v7882_v25 = vld [vmem:[#allocation9 + $0x7d0] sm:$0xf]  ;;  %v7243_v34 = vor.u32 %v9863_v24, %v7242_v22  ;;  %v7340_v22 = vld [vmem:[#allocation9 + $0x3b0] sm:$0xf0] }
 0x19e   :  { %2562 = vmatpush.bf16.msrb.mxu2 %v6951_v30  ;;  %2586 = vmatpush.bf16.msra.mxu0 %v7591_v31  ;;  %v9914_v14 = vld [vmem:[#allocation9 + $0x48c] sm:$0xf]  ;;  %v7687_v16 = vor.u32 %v9970_v7, %v7684_v8  ;;  %v7018_v31 = vld [vmem:[#allocation9 + $0x110] sm:$0xf]  ;;  %v7883_v35 = vor.u32 %v10023_v26, %v7882_v25  ;;  %v9891_v7 = vld [vmem:[#allocation9 + $0x3d4] sm:$0xf] }
 0x19f   :  { %v7460_v15 = vld [vmem:[#allocation9 + $0x4a8] sm:$0xf0]  ;;  %v10007_v59 = vld [vmem:[#allocation9 + $0x76c] sm:$0xf0]  ;;  %v7372_v8 = vld [vmem:[#allocation9 + $0x3f0] sm:$0xf0] }
 0x1a0   :  { %2578 = vmatpush.bf16.msrb.mxu3 %v7143_v39  ;;  %2602 = vmatpush.bf16.msra.mxu1 %v7783_v40  ;;  %v9962_v20 = vld [vmem:[#allocation9 + $0x60c] sm:$0xf]  ;;  %v7463_v23 = vor.u32 %v9914_v14, %v7460_v15  ;;  %v7850_v39 = vld [vmem:[#allocation9 + $0x790] sm:$0xf] }
 0x1a1   :  { %v7652_v21 = vld [vmem:[#allocation9 + $0x628] sm:$0xf0]  ;;  %v10015_v40 = vld [vmem:[#allocation9 + $0x7ac] sm:$0xf0] }
 0x1a2   :  { %2563 = vmatpush.bf16.msrb.mxu2 %v6919_v44  ;;  %2587 = vmatpush.bf16.msra.mxu0 %v7559_v45  ;;  %v9906_v28 = vld [vmem:[#allocation9 + $0x44c] sm:$0xf]  ;;  %v7655_v30 = vor.u32 %v9962_v20, %v7652_v21  ;;  %v6986_v44 = vld [vmem:[#allocation9 + $0xd0] sm:$0xf]  ;;  %v7851_v51 = vor.u32 %v10015_v40, %v7850_v39  ;;  %v9883_v21 = vld [vmem:[#allocation9 + $0x394] sm:$0xf] }
 0x1a3   :  { %2579 = vmatmul.bf16.vlgmr.msrb.gmra.mxu3 %v10832_v32  ;;  %v7428_v29 = vld [vmem:[#allocation9 + $0x468] sm:$0xf0]  ;;  %v9799_v45 = vld [vmem:[#allocation9 + $0xec] sm:$0xf0] }
 0x1a4   :  { %2627 = vmatpush.bf16.msra.mxu3 %v7371_v41  ;;  %2603 = vmatpush.bf16.msra.mxu1 %v7751_v54  ;;  %v7431_v37 = vor.u32 %v9906_v28, %v7428_v29  ;;  %v7019_v41 = vor.u32 %v9807_v33, %v7018_v31  ;;  %v9898_v42 = vld [vmem:[#allocation9 + $0x40c] sm:$0xf]  ;;  %v9847_v54 = vld [vmem:[#allocation9 + $0x26c] sm:$0xf0]  ;;  %v6987_v55 = vor.u32 %v9799_v45, %v6986_v44  ;;  %v7116_v28 = vld [vmem:[#allocation9 + $0x1f0] sm:$0xf0] }
 0x1a5   :  { %v7396_v43 = vld [vmem:[#allocation9 + $0x428] sm:$0xf0]  ;;  %v6954_v60 = vld [vmem:[#allocation9 + $0x90] sm:$0xf]  ;;  %v7179_v57 = vor.u32 %v9847_v54, %v7178_v53  ;;  %v7311_v44 = vor.u32 %v9875_v36, %v7308_v38  ;;  %v7596_v36 = vld [vmem:[#allocation9 + $0x5b0] sm:$0xf0] }
 0x1a6   :  { %2564 = vmatpush.bf16.msrb.mxu2 %v6887_v61  ;;  %2588 = vmatpush.bf16.msra.mxu0 %v7527_v62  ;;  %v7399_v52 = vor.u32 %v9898_v42, %v7396_v43  ;;  %v9791_v61 = vld [vmem:[#allocation9 + $0xac] sm:$0xf0]  ;;  %v7084_v42 = vld [vmem:[#allocation9 + $0x1b0] sm:$0xf0] }
 0x1a7   :  { %v7594_v62 = vld [vmem:[#allocation9 + $0x590] sm:$0xf]  ;;  %v6955_v5 = vor.u32 %v9791_v61, %v6954_v60  ;;  %v9835_v38 = vld [vmem:[#allocation9 + $0x214] sm:$0xf] }
 0x1a8   :  { %2628 = vmatpush.bf16.msra.mxu3 %v7339_v58  ;;  %2604 = vmatpush.bf16.msra.mxu1 %v7719_v3  ;;  %v7818_v58 = vld [vmem:[#allocation9 + $0x750] sm:$0xf] }
 0x1a9   :  { %2565 = vmatmul.bf16.vlgmr.msrb.gmra.mxu2 %v10836_v50  ;;  %v7819_v1 = vor.u32 %v10007_v59, %v7818_v58  ;;  %v9839_v2 = vld [vmem:[#allocation9 + $0x22c] sm:$0xf0]  ;;  %v7691_v58 = vor.u32 %v9975_v48, %v7690_v47  ;;  %v9896_v47 = vld [vmem:[#allocation9 + $0x3f4] sm:$0xf0]  ;;  %v9779_v48 = vld [vmem:[#allocation9 + $0x54] sm:$0xf] }
 0x1aa   :  { %2613 = vmatpush.bf16.msra.mxu2 %v7115_v0  ;;  %2589 = vmatpush.bf16.msra.mxu0 %v7495_v9  ;;  %v7146_v0 = vld [vmem:[#allocation9 + $0x210] sm:$0xf] }
 0x1ab   :  { %v7786_v3 = vld [vmem:[#allocation9 + $0x710] sm:$0xf]  ;;  %v7147_v14 = vor.u32 %v9839_v2, %v7146_v0  ;;  %v7884_v2 = vld [vmem:[#allocation9 + $0x7f0] sm:$0xf0] }
 0x1ac   :  { %2629 = vmatpush.bf16.msra.mxu3 %v7307_v6  ;;  %2605 = vmatpush.bf16.msra.mxu1 %v7687_v16  ;;  %v7595_v6 = vor.u32 %v9951_v63, %v7594_v62  ;;  %v6922_v9 = vld [vmem:[#allocation9 + $0x50] sm:$0xf]  ;;  %v7787_v15 = vor.u32 %v9999_v4, %v7786_v3  ;;  %v7375_v16 = vor.u32 %v9891_v7, %v7372_v8  ;;  %v9859_v63 = vld [vmem:[#allocation9 + $0x2d4] sm:$0xf] }
 0x1ad   :  { %v9783_v10 = vld [vmem:[#allocation9 + $0x6c] sm:$0xf0] }
 0x1ae   :  { %2614 = vmatpush.bf16.msra.mxu2 %v7083_v13  ;;  %2590 = vmatpush.bf16.msra.mxu0 %v7463_v23  ;;  %v7562_v11 = vld [vmem:[#allocation9 + $0x550] sm:$0xf] }
 0x1af   :  { %v9943_v13 = vld [vmem:[#allocation9 + $0x56c] sm:$0xf0] }
 0x1b0   :  { %2630 = vmatpush.bf16.msra.mxu3 %v7275_v19  ;;  %2606 = vmatpush.bf16.msra.mxu1 %v7655_v30  ;;  %v7754_v12 = vld [vmem:[#allocation9 + $0x6d0] sm:$0xf]  ;;  %v6923_v19 = vor.u32 %v9783_v10, %v6922_v9  ;;  %v7563_v20 = vor.u32 %v9943_v13, %v7562_v11  ;;  %v7343_v30 = vor.u32 %v9883_v21, %v7340_v22  ;;  %v9851_v10 = vld [vmem:[#allocation9 + $0x294] sm:$0xf] }
 0x1b1   :  { %v9991_v18 = vld [vmem:[#allocation9 + $0x6ec] sm:$0xf0]  ;;  %v7212_v11 = vld [vmem:[#allocation9 + $0x2b0] sm:$0xf0] }
 0x1b2   :  { %2615 = vmatpush.bf16.msra.mxu2 %v7051_v27  ;;  %2591 = vmatpush.bf16.msra.mxu0 %v7431_v37  ;;  %v6890_v23 = vld [vmem:[#allocation9 + $0x10] sm:$0xf]  ;;  %v9827_v27 = vld [vmem:[#allocation9 + $0x1d4] sm:$0xf]  ;;  %v7755_v29 = vor.u32 %v9991_v18, %v7754_v12 }
 0x1b3   :  { %2607 = vmatmul.bf16.vlgmr.msra.gmra.mxu1 %v10839_v17  ;;  %v9775_v24 = vld [vmem:[#allocation9 + $0x2c] sm:$0xf0]  ;;  %v7119_v37 = vor.u32 %v9827_v27, %v7116_v28  ;;  %v9955_v21 = vld [vmem:[#allocation9 + $0x5d4] sm:$0xf] }
 0x1b4   :  { %2631 = vmatpush.bf16.msra.mxu3 %v7243_v34  ;;  %2655 = vmatpush.bf16.msrb.mxu1 %v7883_v35  ;;  %v7530_v25 = vld [vmem:[#allocation9 + $0x510] sm:$0xf]  ;;  %v6891_v31 = vor.u32 %v9775_v24, %v6890_v23  ;;  %v7628_v22 = vld [vmem:[#allocation9 + $0x5f0] sm:$0xf0]  ;;  %v7215_v23 = vor.u32 %v9851_v10, %v7212_v11  ;;  %v7314_v10 = vld [vmem:[#allocation9 + $0x358] sm:$0xf] }
 0x1b5   :  { %v9935_v26 = vld [vmem:[#allocation9 + $0x52c] sm:$0xf0]  ;;  %v9843_v27 = vld [vmem:[#allocation9 + $0x254] sm:$0xf] }
 0x1b6   :  { %2616 = vmatpush.bf16.msra.mxu2 %v7019_v41  ;;  %2592 = vmatpush.bf16.msra.mxu0 %v7399_v52  ;;  %v7531_v33 = vor.u32 %v9935_v26, %v7530_v25  ;;  %v7722_v34 = vld [vmem:[#allocation9 + $0x690] sm:$0xf]  ;;  %v9819_v41 = vld [vmem:[#allocation9 + $0x194] sm:$0xf] }
 0x1b7   :  { %v9983_v35 = vld [vmem:[#allocation9 + $0x6ac] sm:$0xf0]  ;;  %v7276_v52 = vld [vmem:[#allocation9 + $0x330] sm:$0xf0] }
 0x1b8   :  { %2632 = vmatpush.bf16.msra.mxu3 %v7211_v49  ;;  %2656 = vmatpush.bf16.msrb.mxu1 %v7851_v51  ;;  %v7498_v39 = vld [vmem:[#allocation9 + $0x4d0] sm:$0xf]  ;;  %v7723_v43 = vor.u32 %v9983_v35, %v7722_v34  ;;  %v9867_v49 = vld [vmem:[#allocation9 + $0x314] sm:$0xf]  ;;  %v7087_v51 = vor.u32 %v9819_v41, %v7084_v42 }
 0x1b9   :  { %2593 = vmatmul.bf16.vlgmr.msra.gmra.mxu0 %v10843_v46  ;;  %v9927_v40 = vld [vmem:[#allocation9 + $0x4ec] sm:$0xf0]  ;;  %v7279_v60 = vor.u32 %v9867_v49, %v7276_v52  ;;  %v7180_v28 = vld [vmem:[#allocation9 + $0x270] sm:$0xf0] }
 0x1ba   :  { %2617 = vmatpush.bf16.msra.mxu2 %v6987_v55  ;;  %2641 = vmatpush.bf16.msrb.mxu0 %v7627_v56  ;;  %v7499_v45 = vor.u32 %v9927_v40, %v7498_v39  ;;  %v7466_v53 = vld [vmem:[#allocation9 + $0x490] sm:$0xf]  ;;  %v9811_v55 = vld [vmem:[#allocation9 + $0x154] sm:$0xf] }
 0x1bb   :  { %v9919_v54 = vld [vmem:[#allocation9 + $0x4ac] sm:$0xf0]  ;;  %v7052_v56 = vld [vmem:[#allocation9 + $0x170] sm:$0xf0] }
 0x1bc   :  { %2633 = vmatpush.bf16.msra.mxu3 %v7179_v57  ;;  %2657 = vmatpush.bf16.msrb.mxu1 %v7819_v1  ;;  %v7658_v59 = vld [vmem:[#allocation9 + $0x610] sm:$0xf]  ;;  %v7467_v61 = vor.u32 %v9919_v54, %v7466_v53  ;;  %v7244_v57 = vld [vmem:[#allocation9 + $0x2f0] sm:$0xf0]  ;;  %v7055_v0 = vor.u32 %v9811_v55, %v7052_v56 }
 0x1bd   :  { %v9967_v62 = vld [vmem:[#allocation9 + $0x62c] sm:$0xf0]  ;;  %v10019_v1 = vld [vmem:[#allocation9 + $0x7d4] sm:$0xf]  ;;  %v7247_v8 = vor.u32 %v9859_v63, %v7244_v57 }
 0x1be   :  { %2618 = vmatpush.bf16.msra.mxu2 %v6955_v5  ;;  %2642 = vmatpush.bf16.msrb.mxu0 %v7595_v6  ;;  %v7434_v3 = vld [vmem:[#allocation9 + $0x450] sm:$0xf]  ;;  %v9803_v5 = vld [vmem:[#allocation9 + $0x114] sm:$0xf]  ;;  %v7659_v7 = vor.u32 %v9967_v62, %v7658_v59  ;;  %v7887_v9 = vor.u32 %v10019_v1, %v7884_v2  ;;  %v9888_v62 = vld [vmem:[#allocation9 + $0x3b4] sm:$0xf0] }
 0x1bf   :  { %v9911_v4 = vld [vmem:[#allocation9 + $0x46c] sm:$0xf0]  ;;  %v7020_v6 = vld [vmem:[#allocation9 + $0x130] sm:$0xf0]  ;;  %v7122_v2 = vld [vmem:[#allocation9 + $0x1d8] sm:$0xf] }
 0x1c0   :  { %2634 = vmatpush.bf16.msra.mxu3 %v7147_v14  ;;  %2658 = vmatpush.bf16.msrb.mxu1 %v7787_v15  ;;  %v7435_v13 = vor.u32 %v9911_v4, %v7434_v3  ;;  %v7023_v14 = vor.u32 %v9803_v5, %v7020_v6  ;;  %v10011_v15 = vld [vmem:[#allocation9 + $0x794] sm:$0xf]  ;;  %v7402_v12 = vld [vmem:[#allocation9 + $0x410] sm:$0xf]  ;;  %v9832_v3 = vld [vmem:[#allocation9 + $0x1f4] sm:$0xf0] }
 0x1c1   :  { %v9903_v18 = vld [vmem:[#allocation9 + $0x42c] sm:$0xf0]  ;;  %v6956_v34 = vld [vmem:[#allocation9 + $0xb0] sm:$0xf0]  ;;  %v7123_v11 = vor.u32 %v9832_v3, %v7122_v2  ;;  %v7186_v2 = vld [vmem:[#allocation9 + $0x258] sm:$0xf] }
 0x1c2   :  { %2619 = vmatpush.bf16.msra.mxu2 %v6923_v19  ;;  %2643 = vmatpush.bf16.msrb.mxu0 %v7563_v20  ;;  %v9795_v19 = vld [vmem:[#allocation9 + $0xd4] sm:$0xf]  ;;  %v7403_v25 = vor.u32 %v9903_v18, %v7402_v12  ;;  %v9824_v12 = vld [vmem:[#allocation9 + $0x1b4] sm:$0xf0] }
 0x1c3   :  { %2635 = vmatmul.bf16.vlgmr.msra.gmra.mxu3 %v10832_v32  ;;  %v6988_v20 = vld [vmem:[#allocation9 + $0xf0] sm:$0xf0]  ;;  %v9848_v3 = vld [vmem:[#allocation9 + $0x274] sm:$0xf0] }
 0x1c4   :  { %2683 = vmatpush.bf16.msrb.mxu3 %v7375_v16  ;;  %2659 = vmatpush.bf16.msrb.mxu1 %v7755_v29  ;;  %v7852_v16 = vld [vmem:[#allocation9 + $0x7b0] sm:$0xf0]  ;;  %v6991_v26 = vor.u32 %v9795_v19, %v6988_v20 }
 0x1c5   :  { %v7855_v24 = vor.u32 %v10011_v15, %v7852_v16  ;;  %v10003_v29 = vld [vmem:[#allocation9 + $0x754] sm:$0xf]  ;;  %v7090_v16 = vld [vmem:[#allocation9 + $0x198] sm:$0xf] }
 0x1c6   :  { %2620 = vmatpush.bf16.msra.mxu2 %v6891_v31  ;;  %2644 = vmatpush.bf16.msrb.mxu0 %v7531_v33  ;;  %v7820_v31 = vld [vmem:[#allocation9 + $0x770] sm:$0xf0] }
 0x1c7   :  { %v9787_v33 = vld [vmem:[#allocation9 + $0x94] sm:$0xf]  ;;  %v7823_v39 = vor.u32 %v10003_v29, %v7820_v31  ;;  %v9816_v29 = vld [vmem:[#allocation9 + $0x174] sm:$0xf0] }
 0x1c8   :  { %2684 = vmatpush.bf16.msrb.mxu3 %v7343_v30  ;;  %2660 = vmatpush.bf16.msrb.mxu1 %v7723_v43  ;;  %v7631_v30 = vor.u32 %v9955_v21, %v7628_v22  ;;  %v9947_v35 = vld [vmem:[#allocation9 + $0x594] sm:$0xf]  ;;  %v6959_v40 = vor.u32 %v9787_v33, %v6956_v34 }
 0x1c9   :  { %2621 = vmatmul.bf16.vlgmr.msra.gmra.mxu2 %v10836_v50  ;;  %v7148_v41 = vld [vmem:[#allocation9 + $0x230] sm:$0xf0] }
 0x1ca   :  { %2669 = vmatpush.bf16.msrb.mxu2 %v7119_v37  ;;  %2645 = vmatpush.bf16.msrb.mxu0 %v7499_v45  ;;  %v7183_v37 = vor.u32 %v9843_v27, %v7180_v28  ;;  %v9995_v42 = vld [vmem:[#allocation9 + $0x714] sm:$0xf]  ;;  %v7378_v45 = vld [vmem:[#allocation9 + $0x3d8] sm:$0xf]  ;;  %v7151_v53 = vor.u32 %v9835_v38, %v7148_v41 }
 0x1cb   :  { %v7788_v43 = vld [vmem:[#allocation9 + $0x730] sm:$0xf0]  ;;  %v7379_v55 = vor.u32 %v9896_v47, %v7378_v45  ;;  %v7058_v28 = vld [vmem:[#allocation9 + $0x158] sm:$0xf] }
 0x1cc   :  { %2685 = vmatpush.bf16.msrb.mxu3 %v7311_v44  ;;  %2661 = vmatpush.bf16.msrb.mxu1 %v7691_v58  ;;  %v7599_v44 = vor.u32 %v9947_v35, %v7596_v36  ;;  %v6924_v49 = vld [vmem:[#allocation9 + $0x70] sm:$0xf0]  ;;  %v7791_v54 = vor.u32 %v9995_v42, %v7788_v43  ;;  %v7250_v36 = vld [vmem:[#allocation9 + $0x2d8] sm:$0xf]  ;;  %v7059_v38 = vor.u32 %v9816_v29, %v7058_v28 }
 0x1cd   :  { %v7564_v52 = vld [vmem:[#allocation9 + $0x570] sm:$0xf0]  ;;  %v6927_v59 = vor.u32 %v9779_v48, %v6924_v49  ;;  %v7026_v43 = vld [vmem:[#allocation9 + $0x118] sm:$0xf] }
 0x1ce   :  { %2670 = vmatpush.bf16.msrb.mxu2 %v7087_v51  ;;  %2646 = vmatpush.bf16.msrb.mxu0 %v7467_v61  ;;  %v9939_v51 = vld [vmem:[#allocation9 + $0x554] sm:$0xf]  ;;  %v7346_v61 = vld [vmem:[#allocation9 + $0x398] sm:$0xf] }
 0x1cf   :  { %v9987_v56 = vld [vmem:[#allocation9 + $0x6d4] sm:$0xf]  ;;  %v7347_v5 = vor.u32 %v9888_v62, %v7346_v61  ;;  %v7218_v49 = vld [vmem:[#allocation9 + $0x298] sm:$0xf] }
 0x1d0   :  { %2686 = vmatpush.bf16.msrb.mxu3 %v7279_v60  ;;  %2662 = vmatpush.bf16.msrb.mxu1 %v7659_v7  ;;  %v7756_v58 = vld [vmem:[#allocation9 + $0x6f0] sm:$0xf0]  ;;  %v7567_v60 = vor.u32 %v9939_v51, %v7564_v52  ;;  %v9856_v51 = vld [vmem:[#allocation9 + $0x2b4] sm:$0xf0] }
 0x1d1   :  { %v9771_v63 = vld [vmem:[#allocation9 + $0x14] sm:$0xf]  ;;  %v7759_v4 = vor.u32 %v9987_v56, %v7756_v58  ;;  %v7634_v61 = vld [vmem:[#allocation9 + $0x5d8] sm:$0xf] }
 0x1d2   :  { %2671 = vmatpush.bf16.msrb.mxu2 %v7055_v0  ;;  %2647 = vmatpush.bf16.msrb.mxu0 %v7435_v13  ;;  %v6892_v57 = vld [vmem:[#allocation9 + $0x30] sm:$0xf0]  ;;  %v9880_v13 = vld [vmem:[#allocation9 + $0x374] sm:$0xf0] }
 0x1d3   :  { %2663 = vmatmul.bf16.vlgmr.msrb.gmra.mxu1 %v10839_v17  ;;  %v9931_v0 = vld [vmem:[#allocation9 + $0x514] sm:$0xf]  ;;  %v6895_v6 = vor.u32 %v9771_v63, %v6892_v57  ;;  %v7315_v19 = vor.u32 %v9880_v13, %v7314_v10  ;;  %v9960_v62 = vld [vmem:[#allocation9 + $0x5f4] sm:$0xf0]  ;;  %v7219_v63 = vor.u32 %v9856_v51, %v7218_v49 }
 0x1d4   :  { %2687 = vmatpush.bf16.msrb.mxu3 %v7247_v8  ;;  %2711 = vmatpush.bf16.msra.mxu1 %v7887_v9  ;;  %v7532_v1 = vld [vmem:[#allocation9 + $0x530] sm:$0xf0]  ;;  %v9952_v10 = vld [vmem:[#allocation9 + $0x5b4] sm:$0xf0] }
 0x1d5   :  { %v7535_v7 = vor.u32 %v9931_v0, %v7532_v1  ;;  %v9979_v8 = vld [vmem:[#allocation9 + $0x694] sm:$0xf]  ;;  %v7154_v13 = vld [vmem:[#allocation9 + $0x218] sm:$0xf] }
 0x1d6   :  { %2672 = vmatpush.bf16.msrb.mxu2 %v7023_v14  ;;  %2648 = vmatpush.bf16.msrb.mxu0 %v7403_v25  ;;  %v7724_v9 = vld [vmem:[#allocation9 + $0x6b0] sm:$0xf0]  ;;  %v9872_v25 = vld [vmem:[#allocation9 + $0x334] sm:$0xf0] }
 0x1d7   :  { %v9923_v14 = vld [vmem:[#allocation9 + $0x4d4] sm:$0xf]  ;;  %v7727_v18 = vor.u32 %v9979_v8, %v7724_v9  ;;  %v9792_v8 = vld [vmem:[#allocation9 + $0xb4] sm:$0xf0] }
 0x1d8   :  { %2688 = vmatpush.bf16.msrb.mxu3 %v7215_v23  ;;  %2712 = vmatpush.bf16.msra.mxu1 %v7855_v24  ;;  %v7500_v15 = vld [vmem:[#allocation9 + $0x4f0] sm:$0xf0]  ;;  %v7282_v23 = vld [vmem:[#allocation9 + $0x318] sm:$0xf]  ;;  %v7091_v24 = vor.u32 %v9824_v12, %v7090_v16 }
 0x1d9   :  { %2649 = vmatmul.bf16.vlgmr.msrb.gmra.mxu0 %v10843_v46  ;;  %v7503_v20 = vor.u32 %v9923_v14, %v7500_v15  ;;  %v9971_v21 = vld [vmem:[#allocation9 + $0x654] sm:$0xf]  ;;  %v7283_v33 = vor.u32 %v9872_v25, %v7282_v23  ;;  %v7602_v9 = vld [vmem:[#allocation9 + $0x598] sm:$0xf] }
 0x1da   :  { %2673 = vmatpush.bf16.msrb.mxu2 %v6991_v26  ;;  %2697 = vmatpush.bf16.msra.mxu0 %v7631_v30  ;;  %v7692_v22 = vld [vmem:[#allocation9 + $0x670] sm:$0xf0]  ;;  %v9840_v12 = vld [vmem:[#allocation9 + $0x234] sm:$0xf0] }
 0x1db   :  { %v9915_v26 = vld [vmem:[#allocation9 + $0x494] sm:$0xf]  ;;  %v7695_v30 = vor.u32 %v9971_v21, %v7692_v22  ;;  %v9892_v21 = vld [vmem:[#allocation9 + $0x3dc] sm:$0xf]  ;;  %v6930_v23 = vld [vmem:[#allocation9 + $0x58] sm:$0xf] }
 0x1dc   :  { %2689 = vmatpush.bf16.msrb.mxu3 %v7183_v37  ;;  %2713 = vmatpush.bf16.msra.mxu1 %v7823_v39  ;;  %v7468_v27 = vld [vmem:[#allocation9 + $0x4b0] sm:$0xf0]  ;;  %v9864_v37 = vld [vmem:[#allocation9 + $0x2f4] sm:$0xf0]  ;;  %v7380_v22 = vld [vmem:[#allocation9 + $0x3f8] sm:$0xf0] }
 0x1dd   :  { %v9963_v31 = vld [vmem:[#allocation9 + $0x614] sm:$0xf]  ;;  %v7471_v34 = vor.u32 %v9915_v26, %v7468_v27  ;;  %v7890_v39 = vld [vmem:[#allocation9 + $0x7d8] sm:$0xf]  ;;  %v7251_v47 = vor.u32 %v9864_v37, %v7250_v36  ;;  %v7155_v27 = vor.u32 %v9840_v12, %v7154_v13  ;;  %v7383_v29 = vor.u32 %v9892_v21, %v7380_v22  ;;  %v7348_v36 = vld [vmem:[#allocation9 + $0x3b8] sm:$0xf0] }
 0x1de   :  { %2674 = vmatpush.bf16.msrb.mxu2 %v6959_v40  ;;  %2698 = vmatpush.bf16.msra.mxu0 %v7599_v44  ;;  %v7660_v35 = vld [vmem:[#allocation9 + $0x630] sm:$0xf0]  ;;  %v10024_v40 = vld [vmem:[#allocation9 + $0x7f4] sm:$0xf0]  ;;  %v10020_v21 = vld [vmem:[#allocation9 + $0x7dc] sm:$0xf] }
 0x1df   :  { %v9907_v41 = vld [vmem:[#allocation9 + $0x454] sm:$0xf]  ;;  %v9808_v44 = vld [vmem:[#allocation9 + $0x134] sm:$0xf0]  ;;  %v7663_v45 = vor.u32 %v9963_v31, %v7660_v35  ;;  %v7891_v48 = vor.u32 %v10024_v40, %v7890_v39  ;;  %v9884_v35 = vld [vmem:[#allocation9 + $0x39c] sm:$0xf] }
 0x1e0   :  { %2690 = vmatpush.bf16.msrb.mxu3 %v7151_v53  ;;  %2714 = vmatpush.bf16.msra.mxu1 %v7791_v54  ;;  %v7436_v42 = vld [vmem:[#allocation9 + $0x470] sm:$0xf0]  ;;  %v7027_v53 = vor.u32 %v9808_v44, %v7026_v43  ;;  %v7858_v54 = vld [vmem:[#allocation9 + $0x798] sm:$0xf]  ;;  %v7124_v43 = vld [vmem:[#allocation9 + $0x1f8] sm:$0xf0] }
 0x1e1   :  { %v7439_v52 = vor.u32 %v9907_v41, %v7436_v42  ;;  %v9899_v56 = vld [vmem:[#allocation9 + $0x414] sm:$0xf]  ;;  %v7570_v25 = vld [vmem:[#allocation9 + $0x558] sm:$0xf]  ;;  %v9828_v42 = vld [vmem:[#allocation9 + $0x1dc] sm:$0xf] }
 0x1e2   :  { %2675 = vmatpush.bf16.msrb.mxu2 %v6927_v59  ;;  %2699 = vmatpush.bf16.msra.mxu0 %v7567_v60  ;;  %v7404_v58 = vld [vmem:[#allocation9 + $0x430] sm:$0xf0]  ;;  %v6994_v59 = vld [vmem:[#allocation9 + $0xd8] sm:$0xf]  ;;  %v7892_v22 = vld [vmem:[#allocation9 + $0x7f8] sm:$0xf0] }
 0x1e3   :  { %2691 = vmatmul.bf16.vlgmr.msrb.gmra.mxu3 %v10832_v32  ;;  %v9800_v60 = vld [vmem:[#allocation9 + $0xf4] sm:$0xf0]  ;;  %v7407_v0 = vor.u32 %v9899_v56, %v7404_v58  ;;  %v7127_v56 = vor.u32 %v9828_v42, %v7124_v43  ;;  %v7316_v58 = vld [vmem:[#allocation9 + $0x378] sm:$0xf0] }
 0x1e4   :  { %2739 = vmatpush.bf16.msra.mxu3 %v7379_v55  ;;  %2715 = vmatpush.bf16.msra.mxu1 %v7759_v4  ;;  %v10016_v55 = vld [vmem:[#allocation9 + $0x7b4] sm:$0xf0]  ;;  %v6995_v1 = vor.u32 %v9800_v60, %v6994_v59  ;;  %v9796_v43 = vld [vmem:[#allocation9 + $0xdc] sm:$0xf] }
 0x1e5   :  { %v7859_v57 = vor.u32 %v10016_v55, %v7858_v54  ;;  %v7826_v4 = vld [vmem:[#allocation9 + $0x758] sm:$0xf] }
 0x1e6   :  { %2676 = vmatpush.bf16.msrb.mxu2 %v6895_v6  ;;  %2700 = vmatpush.bf16.msra.mxu0 %v7535_v7  ;;  %v10008_v6 = vld [vmem:[#allocation9 + $0x774] sm:$0xf0] }
 0x1e7   :  { %v6962_v7 = vld [vmem:[#allocation9 + $0x98] sm:$0xf]  ;;  %v7827_v15 = vor.u32 %v10008_v6, %v7826_v4 }
 0x1e8   :  { %2740 = vmatpush.bf16.msra.mxu3 %v7347_v5  ;;  %2716 = vmatpush.bf16.msra.mxu1 %v7727_v18  ;;  %v7635_v5 = vor.u32 %v9960_v62, %v7634_v61  ;;  %v6963_v16 = vor.u32 %v9792_v8, %v6962_v7  ;;  %v7794_v18 = vld [vmem:[#allocation9 + $0x718] sm:$0xf]  ;;  %v9820_v61 = vld [vmem:[#allocation9 + $0x19c] sm:$0xf] }
 0x1e9   :  { %2677 = vmatmul.bf16.vlgmr.msrb.gmra.mxu2 %v10836_v50  ;;  %v9944_v26 = vld [vmem:[#allocation9 + $0x574] sm:$0xf0]  ;;  %v7092_v62 = vld [vmem:[#allocation9 + $0x1b8] sm:$0xf0] }
 0x1ea   :  { %2725 = vmatpush.bf16.msra.mxu2 %v7123_v11  ;;  %2701 = vmatpush.bf16.msra.mxu0 %v7503_v20  ;;  %v7187_v11 = vor.u32 %v9848_v3, %v7186_v2  ;;  %v7603_v20 = vor.u32 %v9952_v10, %v7602_v9  ;;  %v9992_v31 = vld [vmem:[#allocation9 + $0x6f4] sm:$0xf0]  ;;  %v9868_v3 = vld [vmem:[#allocation9 + $0x31c] sm:$0xf]  ;;  %v7095_v4 = vor.u32 %v9820_v61, %v7092_v62 }
 0x1eb   :  { %v6898_v37 = vld [vmem:[#allocation9 + $0x18] sm:$0xf]  ;;  %v9812_v8 = vld [vmem:[#allocation9 + $0x15c] sm:$0xf] }
 0x1ec   :  { %2741 = vmatpush.bf16.msra.mxu3 %v7315_v19  ;;  %2717 = vmatpush.bf16.msra.mxu1 %v7695_v30  ;;  %v10864_v14 = vpop.f32.mrf.mxu2  ;;  %v10000_v19 = vld [vmem:[#allocation9 + $0x734] sm:$0xf0]  ;;  %v7060_v9 = vld [vmem:[#allocation9 + $0x178] sm:$0xf0] }
 0x1ed   :  { %v7795_v28 = vor.u32 %v10000_v19, %v7794_v18  ;;  %v7762_v30 = vld [vmem:[#allocation9 + $0x6d8] sm:$0xf]  ;;  %v9860_v18 = vld [vmem:[#allocation9 + $0x2dc] sm:$0xf] }
 0x1ee   :  { %2726 = vmatpush.bf16.msra.mxu2 %v7091_v24  ;;  %2702 = vmatpush.bf16.msra.mxu0 %v7471_v34  ;;  %v9784_v24 = vld [vmem:[#allocation9 + $0x74] sm:$0xf0]  ;;  %v7571_v34 = vor.u32 %v9944_v26, %v7570_v25  ;;  %v7763_v44 = vor.u32 %v9992_v31, %v7762_v30  ;;  %v7252_v19 = vld [vmem:[#allocation9 + $0x2f8] sm:$0xf0] }
 0x1ef   :  { %v9776_v39 = vld [vmem:[#allocation9 + $0x34] sm:$0xf0]  ;;  %v9804_v26 = vld [vmem:[#allocation9 + $0x11c] sm:$0xf]  ;;  %v7255_v31 = vor.u32 %v9860_v18, %v7252_v19 }
 0x1f0   :  { %2742 = vmatpush.bf16.msra.mxu3 %v7283_v33  ;;  %2718 = vmatpush.bf16.msra.mxu1 %v7663_v45  ;;  %v6931_v33 = vor.u32 %v9784_v24, %v6930_v23  ;;  %v7538_v40 = vld [vmem:[#allocation9 + $0x518] sm:$0xf]  ;;  %v7351_v45 = vor.u32 %v9884_v35, %v7348_v36  ;;  %v7220_v35 = vld [vmem:[#allocation9 + $0x2b8] sm:$0xf0] }
 0x1f1   :  { %v9936_v41 = vld [vmem:[#allocation9 + $0x534] sm:$0xf0]  ;;  %v7828_v62 = vld [vmem:[#allocation9 + $0x778] sm:$0xf0] }
 0x1f2   :  { %2727 = vmatpush.bf16.msra.mxu2 %v7059_v38  ;;  %2703 = vmatpush.bf16.msra.mxu0 %v7439_v52  ;;  %v10867_v38 = vpop.f32.mrf.mxu3  ;;  %v7539_v49 = vor.u32 %v9936_v41, %v7538_v40  ;;  %v7730_v51 = vld [vmem:[#allocation9 + $0x698] sm:$0xf]  ;;  %v7860_v40 = vld [vmem:[#allocation9 + $0x7b8] sm:$0xf0] }
 0x1f3   :  { %2719 = vmatmul.bf16.vlgmr.msra.gmra.mxu1 %v10839_v17  ;;  %v9984_v52 = vld [vmem:[#allocation9 + $0x6b4] sm:$0xf0]  ;;  %v9780_v18 = vld [vmem:[#allocation9 + $0x5c] sm:$0xf] }
 0x1f4   :  { %2743 = vmatpush.bf16.msra.mxu3 %v7251_v47  ;;  %2767 = vmatpush.bf16.msrb.mxu1 %v7891_v48  ;;  %v10869_v47 = vpop.f32.mrf.mxu1  ;;  %v6899_v48 = vor.u32 %v9776_v39, %v6898_v37  ;;  %v10871_v54 = vpop.f32.mrf.mxu2  ;;  %v7506_v59 = vld [vmem:[#allocation9 + $0x4d8] sm:$0xf]  ;;  %v10012_v39 = vld [vmem:[#allocation9 + $0x79c] sm:$0xf] }
 0x1f5   :  { %v9928_v60 = vld [vmem:[#allocation9 + $0x4f4] sm:$0xf0]  ;;  %v6932_v19 = vld [vmem:[#allocation9 + $0x78] sm:$0xf0] }
 0x1f6   :  { %2728 = vmatpush.bf16.msra.mxu2 %v7027_v53  ;;  %2704 = vmatpush.bf16.msra.mxu0 %v7407_v0  ;;  %v9876_v53 = vld [vmem:[#allocation9 + $0x35c] sm:$0xf]  ;;  %v10873_v55 = vpop.f32.mrf.mxu0  ;;  %v7507_v0 = vor.u32 %v9928_v60, %v7506_v59  ;;  %v9976_v2 = vld [vmem:[#allocation9 + $0x674] sm:$0xf0] }
 0x1f7   :  { %v7474_v6 = vld [vmem:[#allocation9 + $0x498] sm:$0xf]  ;;  %v7188_v59 = vld [vmem:[#allocation9 + $0x278] sm:$0xf0] }
 0x1f8   :  { %2744 = vmatpush.bf16.msra.mxu3 %v7219_v63  ;;  %2768 = vmatpush.bf16.msrb.mxu1 %v7859_v57  ;;  %v7731_v63 = vor.u32 %v9984_v52, %v7730_v51  ;;  %v7319_v57 = vor.u32 %v9876_v53, %v7316_v58  ;;  %v9920_v7 = vld [vmem:[#allocation9 + $0x4b4] sm:$0xf0]  ;;  %v7863_v51 = vor.u32 %v10012_v39, %v7860_v40  ;;  %v9844_v58 = vld [vmem:[#allocation9 + $0x25c] sm:$0xf] }
 0x1f9   :  { %2705 = vmatmul.bf16.vlgmr.msra.gmra.mxu0 %v10843_v46  ;;  %v7666_v13 = vld [vmem:[#allocation9 + $0x618] sm:$0xf]  ;;  %v10004_v60 = vld [vmem:[#allocation9 + $0x75c] sm:$0xf] }
 0x1fa   :  { %2729 = vmatpush.bf16.msra.mxu2 %v6995_v1  ;;  %2753 = vmatpush.bf16.msrb.mxu0 %v7635_v5  ;;  %v7698_v1 = vld [vmem:[#allocation9 + $0x658] sm:$0xf]  ;;  %v7284_v5 = vld [vmem:[#allocation9 + $0x338] sm:$0xf0]  ;;  %v10876_v10 = vpop.f32.mrf.mxu3 }
 0x1fb   :  { %v9968_v12 = vld [vmem:[#allocation9 + $0x634] sm:$0xf0]  ;;  %v9932_v39 = vld [vmem:[#allocation9 + $0x51c] sm:$0xf] }
 0x1fc   :  { %2745 = vmatpush.bf16.msra.mxu3 %v7187_v11  ;;  %2769 = vmatpush.bf16.msrb.mxu1 %v7827_v15  ;;  %v7699_v11 = vor.u32 %v9976_v2, %v7698_v1  ;;  %v7287_v15 = vor.u32 %v9868_v3, %v7284_v5  ;;  %v7442_v23 = vld [vmem:[#allocation9 + $0x458] sm:$0xf]  ;;  %v10879_v24 = vpop.f32.mrf.mxu1  ;;  %v7667_v30 = vor.u32 %v9968_v12, %v7666_v13  ;;  %v7604_v1 = vld [vmem:[#allocation9 + $0x5b8] sm:$0xf0]  ;;  %v10133_v12 = vld [vmem:[#allocation12 + $0x360] sm:$0xf0] }
 0x1fd   :  { %v9912_v25 = vld [vmem:[#allocation9 + $0x474] sm:$0xf0]  ;;  %v7191_v3 = vor.u32 %v9844_v58, %v7188_v59  ;;  %v7796_v13 = vld [vmem:[#allocation9 + $0x738] sm:$0xf0]  ;;  %v8262_v59 = vld [vmem:[#allocation12 + $0x2d8] sm:$0xf] }
 0x1fe   :  { %2730 = vmatpush.bf16.msra.mxu2 %v6963_v16  ;;  %2754 = vmatpush.bf16.msrb.mxu0 %v7603_v20  ;;  %v7475_v16 = vor.u32 %v9920_v7, %v7474_v6  ;;  %v7063_v20 = vor.u32 %v9812_v8, %v7060_v9  ;;  %v7443_v36 = vor.u32 %v9912_v25, %v7442_v23  ;;  %v7410_v41 = vld [vmem:[#allocation9 + $0x418] sm:$0xf]  ;;  %v7156_v9 = vld [vmem:[#allocation9 + $0x238] sm:$0xf0] }
 0x1ff   :  { %v9904_v42 = vld [vmem:[#allocation9 + $0x434] sm:$0xf0]  ;;  %v7831_v7 = vor.u32 %v10004_v60, %v7828_v62  ;;  %v7540_v40 = vld [vmem:[#allocation9 + $0x538] sm:$0xf0] }
 0x200   :  { %2746 = vmatpush.bf16.msra.mxu3 %v7155_v27  ;;  %2770 = vmatpush.bf16.msrb.mxu1 %v7795_v28  ;;  %v7028_v27 = vld [vmem:[#allocation9 + $0x138] sm:$0xf0]  ;;  %v10881_v28 = vpop.f32.mrf.mxu2  ;;  %v7411_v53 = vor.u32 %v9904_v42, %v7410_v41  ;;  %v10897_v41 = vld [vmem:[#allocation10] sm:$0xff]  ;;  %v8094_v42 = vld [vmem:[#allocation12 + $0x188] sm:$0xf] }
 0x201   :  { %v7031_v37 = vor.u32 %v9804_v26, %v7028_v27  ;;  %v9988_v26 = vld [vmem:[#allocation9 + $0x6dc] sm:$0xf] }
 0x202   :  { %2731 = vmatpush.bf16.msra.mxu2 %v6931_v33  ;;  %2755 = vmatpush.bf16.msrb.mxu0 %v7571_v34  ;;  %v7895_v33 = vor.u32 %v10020_v21, %v7892_v22  ;;  %v9852_v34 = vld [vmem:[#allocation9 + $0x29c] sm:$0xf]  ;;  %v10885_v52 = vpop.f32.mrf.mxu3 }
 0x203   :  { %2747 = vmatmul.bf16.vlgmr.msra.gmra.mxu3 %v10832_v32  ;;  %v7572_v21 = vld [vmem:[#allocation9 + $0x578] sm:$0xf0] }
 0x204   :  { %2795 = vmatpush.bf16.msrb.mxu3 %v7383_v29  ;;  %2771 = vmatpush.bf16.msrb.mxu1 %v7763_v44  ;;  %v10883_v29 = vpop.f32.mrf.mxu0  ;;  %v6996_v44 = vld [vmem:[#allocation9 + $0xf8] sm:$0xf0]  ;;  %v10888_v2 = vpop.f32.mrf.mxu1 }
 0x205   :  { %v7764_v27 = vld [vmem:[#allocation9 + $0x6f8] sm:$0xf0] }
 0x206   :  { %2732 = vmatpush.bf16.msra.mxu2 %v6899_v48  ;;  %2756 = vmatpush.bf16.msrb.mxu0 %v7539_v49  ;;  %v7636_v48 = vld [vmem:[#allocation9 + $0x5f8] sm:$0xf0]  ;;  %v7223_v49 = vor.u32 %v9852_v34, %v7220_v35  ;;  %v10126_v34 = vld [vmem:[#allocation12 + $0x328] sm:$0xf0] }
 0x207   :  { %v9772_v35 = vld [vmem:[#allocation9 + $0x1c] sm:$0xf] }
 0x208   :  { %2796 = vmatpush.bf16.msrb.mxu3 %v7351_v45  ;;  %2772 = vmatpush.bf16.msrb.mxu1 %v7731_v63  ;;  %v9956_v45 = vld [vmem:[#allocation9 + $0x5dc] sm:$0xf]  ;;  %v10890_v5 = vpop.f32.mrf.mxu2 }
 0x209   :  { %2733 = vmatmul.bf16.vlgmr.msra.gmra.mxu2 %v10836_v50  ;;  %v7639_v61 = vor.u32 %v9956_v45, %v7636_v48  ;;  %v9788_v63 = vld [vmem:[#allocation9 + $0x9c] sm:$0xf]  ;;  %v7767_v45 = vor.u32 %v9988_v26, %v7764_v27 }
 0x20a   :  { %2781 = vmatpush.bf16.msrb.mxu2 %v7127_v56  ;;  %2757 = vmatpush.bf16.msrb.mxu0 %v7507_v0  ;;  %v6999_v56 = vor.u32 %v9796_v43, %v6996_v44  ;;  %v9948_v0 = vld [vmem:[#allocation9 + $0x59c] sm:$0xf]  ;;  %v10077_v43 = vld [vmem:[#allocation12 + $0x1a0] sm:$0xf0]  ;;  %v1094_v44 = vperm.slane %v10897_v41, 1 }
 0x20b   :  { %v7732_v58 = vld [vmem:[#allocation9 + $0x6b8] sm:$0xf0]  ;;  %v8095_v62 = vor.u32 %v10077_v43, %v8094_v42  ;;  %v8766_v43 = vld [vmem:[#allocation12 + $0x6c8] sm:$0xf] }
 0x20c   :  { %2797 = vmatpush.bf16.msrb.mxu3 %v7319_v57  ;;  %2773 = vmatpush.bf16.msrb.mxu1 %v7699_v11  ;;  %v6964_v57 = vld [vmem:[#allocation9 + $0xb8] sm:$0xf0]  ;;  %v10892_v6 = vpop.f32.mrf.mxu0 }
 0x20d   :  { %v6967_v8 = vor.u32 %v9788_v63, %v6964_v57  ;;  %v9996_v11 = vld [vmem:[#allocation9 + $0x71c] sm:$0xf] }
 0x20e   :  { %2782 = vmatpush.bf16.msrb.mxu2 %v7095_v4  ;;  %2758 = vmatpush.bf16.msrb.mxu0 %v7475_v16  ;;  %v9836_v4 = vld [vmem:[#allocation9 + $0x21c] sm:$0xf]  ;;  %v8318_v16 = vld [vmem:[#allocation12 + $0x348] sm:$0xf]  ;;  %v7799_v23 = vor.u32 %v9996_v11, %v7796_v13  ;;  %v8234_v13 = vld [vmem:[#allocation12 + $0x2a0] sm:$0xf] }
 0x20f   :  { %v7159_v22 = vor.u32 %v9836_v4, %v7156_v9  ;;  %v8319_v25 = vor.u32 %v10133_v12, %v8318_v16  ;;  %v10119_v63 = vld [vmem:[#allocation12 + $0x2f0] sm:$0xf0]  ;;  %v10112_v16 = vld [vmem:[#allocation12 + $0x2b8] sm:$0xf0] }
 0x210   :  { %2798 = vmatpush.bf16.msrb.mxu3 %v7287_v15  ;;  %2774 = vmatpush.bf16.msrb.mxu1 %v7667_v30  ;;  %v7607_v15 = vor.u32 %v9948_v0, %v7604_v1  ;;  %v6935_v30 = vor.u32 %v9780_v18, %v6932_v19  ;;  %v10902_v60 = vpop.f32.mrf.mxu2  ;;  %v9924_v57 = vld [vmem:[#allocation9 + $0x4dc] sm:$0xf]  ;;  %v8066_v1 = vld [vmem:[#allocation12 + $0x150] sm:$0xf]  ;;  %v8038_v19 = vld [vmem:[#allocation12 + $0x118] sm:$0xf] }
 0x211   :  { %v7508_v0 = vld [vmem:[#allocation9 + $0x4f8] sm:$0xf0] }
 0x212   :  { %2783 = vmatpush.bf16.msrb.mxu2 %v7063_v20  ;;  %2759 = vmatpush.bf16.msrb.mxu0 %v7443_v36  ;;  %v9940_v20 = vld [vmem:[#allocation9 + $0x55c] sm:$0xf]  ;;  %v10895_v36 = vpop.f32.mrf.mxu3 }
 0x213   :  { %2775 = vmatmul.bf16.vlgmr.msrb.gmra.mxu1 %v10839_v17  ;;  %v9972_v9 = vld [vmem:[#allocation9 + $0x65c] sm:$0xf] }
 0x214   :  { %2799 = vmatpush.bf16.msrb.mxu3 %v7255_v31  ;;  %2823 = vmatpush.bf16.msra.mxu1 %v7895_v33  ;;  %v7575_v31 = vor.u32 %v9940_v20, %v7572_v21  ;;  %v8290_v33 = vld [vmem:[#allocation12 + $0x310] sm:$0xf]  ;;  %v7700_v11 = vld [vmem:[#allocation9 + $0x678] sm:$0xf0]  ;;  %v1093_v21 = vperm.slane %v10897_v41, 0 }
 0x215   :  { %v8291_v48 = vor.u32 %v10126_v34, %v8290_v33  ;;  %v9916_v12 = vld [vmem:[#allocation9 + $0x49c] sm:$0xf]  ;;  %v10105_v33 = vld [vmem:[#allocation12 + $0x280] sm:$0xf0] }
 0x216   :  { %2784 = vmatpush.bf16.msrb.mxu2 %v7031_v37  ;;  %2760 = vmatpush.bf16.msrb.mxu0 %v7411_v53  ;;  %v6900_v37 = vld [vmem:[#allocation9 + $0x38] sm:$0xf0]  ;;  %v7543_v53 = vor.u32 %v9932_v39, %v7540_v40  ;;  %v8010_v39 = vld [vmem:[#allocation12 + $0xe0] sm:$0xf]  ;;  %v2401_v40 = vadd.f32 %v10871_v54, %v1093_v21  ;;  %v8178_v54 = vld [vmem:[#allocation12 + $0x230] sm:$0xf] }
 0x217   :  { %v7476_v18 = vld [vmem:[#allocation9 + $0x4b8] sm:$0xf0] }
 0x218   :  { %2800 = vmatpush.bf16.msrb.mxu3 %v7223_v49  ;;  %2824 = vmatpush.bf16.msra.mxu1 %v7863_v51  ;;  %v10900_v49 = vpop.f32.mrf.mxu1  ;;  %v6903_v51 = vor.u32 %v9772_v35, %v6900_v37  ;;  %v10063_v20 = vld [vmem:[#allocation12 + $0x130] sm:$0xf0]  ;;  %v7479_v27 = vor.u32 %v9916_v12, %v7476_v18  ;;  %v8150_v18 = vld [vmem:[#allocation12 + $0x1f8] sm:$0xf] }
 0x219   :  { %2761 = vmatmul.bf16.vlgmr.msrb.gmra.mxu0 %v10843_v46  ;;  %v9964_v26 = vld [vmem:[#allocation9 + $0x61c] sm:$0xf]  ;;  %v8039_v35 = vor.u32 %v10063_v20, %v8038_v19  ;;  %v7954_v19 = vld [vmem:[#allocation12 + $0x70] sm:$0xf] }
 0x21a   :  { %2785 = vmatpush.bf16.msrb.mxu2 %v6999_v56  ;;  %2809 = vmatpush.bf16.msra.mxu0 %v7639_v61  ;;  %v9980_v56 = vld [vmem:[#allocation9 + $0x69c] sm:$0xf]  ;;  %v10904_v61 = vpop.f32.mrf.mxu0 }
 0x21b   :  { %v7735_v4 = vor.u32 %v9980_v56, %v7732_v58  ;;  %v9908_v37 = vld [vmem:[#allocation9 + $0x45c] sm:$0xf] }
 0x21c   :  { %2801 = vmatpush.bf16.msrb.mxu3 %v7191_v3  ;;  %2825 = vmatpush.bf16.msra.mxu1 %v7831_v7  ;;  %v10070_v3 = vld [vmem:[#allocation12 + $0x168] sm:$0xf0]  ;;  %v8263_v7 = vor.u32 %v10119_v63, %v8262_v59 }
 0x21d   :  { %v10098_v59 = vld [vmem:[#allocation12 + $0x248] sm:$0xf0] }
 0x21e   :  { %2786 = vmatpush.bf16.msrb.mxu2 %v6967_v8  ;;  %2810 = vmatpush.bf16.msra.mxu0 %v7607_v15  ;;  %v7511_v8 = vor.u32 %v9924_v57, %v7508_v0  ;;  %v2455_v15 = vadd.f32 %v10881_v28, %v1094_v44  ;;  %v8235_v28 = vor.u32 %v10112_v16, %v8234_v13  ;;  %v7412_v0 = vld [vmem:[#allocation9 + $0x438] sm:$0xf0]  ;;  %v10238_v13 = vld [vmem:[#allocation12 + $0x6a8] sm:$0xf0] }
 0x220   :  { %2802 = vmatpush.bf16.msrb.mxu3 %v7159_v22  ;;  %2826 = vmatpush.bf16.msra.mxu1 %v7799_v23  ;;  %v2457_v22 = vadd.f32 %v10890_v5, %v1094_v44  ;;  %v10910_v23 = vpop.f32.mrf.mxu3  ;;  %v2469_v34 = vadd.f32 %v10885_v52, %v2455_v15  ;;  %v7444_v5 = vld [vmem:[#allocation9 + $0x478] sm:$0xf0]  ;;  %v10915_v42 = vpop.f32.mrf.mxu1  ;;  %v10245_v44 = vld [vmem:[#allocation12 + $0x6e0] sm:$0xf0]  ;;  %v8179_v15 = vor.u32 %v10098_v59, %v8178_v54  ;;  %v1095_v54 = vperm.slane %v10897_v41, 2 }
 0x221   :  { %v7447_v58 = vor.u32 %v9908_v37, %v7444_v5  ;;  %v8767_v57 = vor.u32 %v10245_v44, %v8766_v43  ;;  %v1096_v43 = vperm.slane %v10897_v41, 3 }
 0x222   :  { %2787 = vmatpush.bf16.msrb.mxu2 %v6935_v30  ;;  %2811 = vmatpush.bf16.msra.mxu0 %v7575_v31  ;;  %v7668_v30 = vld [vmem:[#allocation9 + $0x638] sm:$0xf0]  ;;  %v8206_v31 = vld [vmem:[#allocation12 + $0x268] sm:$0xf] }
 0x223   :  { %2803 = vmatmul.bf16.vlgmr.msrb.gmra.mxu3 %v10832_v32  ;;  %v8067_v32 = vor.u32 %v10070_v3, %v8066_v1  ;;  %v7671_v52 = vor.u32 %v9964_v26, %v7668_v30  ;;  %v8207_v56 = vor.u32 %v10105_v33, %v8206_v31  ;;  %v2399_v1 = vadd.f32 %v10864_v14, %v1093_v21  ;;  %v10042_v21 = vld [vmem:[#allocation12 + $0x88] sm:$0xf0] }
 0x224   :  { %5739 = vmatpush.bf16.msra.mxu3 %v8319_v25  ;;  %2827 = vmatpush.bf16.msra.mxu1 %v7767_v45  ;;  %v7703_v25 = vor.u32 %v9972_v9, %v7700_v11  ;;  %v2483_v45 = vadd.f32 %v10892_v6, %v2469_v34  ;;  %v9900_v6 = vld [vmem:[#allocation9 + $0x41c] sm:$0xf]  ;;  %v2415_v3 = vadd.f32 %v10876_v10, %v2401_v40  ;;  %v8738_v11 = vld [vmem:[#allocation12 + $0x690] sm:$0xf]  ;;  %v8122_v34 = vld [vmem:[#allocation12 + $0x1c0] sm:$0xf] }
 0x225   :  { %v2413_v20 = vadd.f32 %v10867_v38, %v2399_v1  ;;  %v10084_v38 = vld [vmem:[#allocation12 + $0x1d8] sm:$0xf0] }
 0x226   :  { %2788 = vmatpush.bf16.msrb.mxu2 %v6903_v51  ;;  %2812 = vmatpush.bf16.msra.mxu0 %v7543_v53  ;;  %v10919_v51 = vpop.f32.mrf.mxu2  ;;  %v10921_v53 = vpop.f32.mrf.mxu0  ;;  %v10927_v9 = vadd.f32 %v10888_v2, %v2483_v45  ;;  %v10091_v2 = vld [vmem:[#allocation12 + $0x210] sm:$0xf0]  ;;  %v8123_v59 = vor.u32 %v10084_v38, %v8122_v34  ;;  %v10210_v34 = vld [vmem:[#allocation12 + $0x5c8] sm:$0xf0] }
 0x227   :  { %v2427_v30 = vadd.f32 %v10873_v55, %v2413_v20  ;;  %v8151_v33 = vor.u32 %v10091_v2, %v8150_v18  ;;  %v8486_v55 = vld [vmem:[#allocation12 + $0x498] sm:$0xf]  ;;  %v10175_v45 = vld [vmem:[#allocation12 + $0x4b0] sm:$0xf0]  ;;  %v2513_v2 = vadd.f32 %v10919_v51, %v1095_v54  ;;  %v2511_v51 = vadd.f32 %v10902_v60, %v1095_v54 }
 0x228   :  { %5740 = vmatpush.bf16.msra.mxu3 %v8291_v48  ;;  %2828 = vmatpush.bf16.msra.mxu1 %v7735_v4  ;;  %v2471_v48 = vadd.f32 %v10895_v36, %v2457_v22  ;;  %v7982_v36 = vld [vmem:[#allocation12 + $0xa8] sm:$0xf]  ;;  %v10049_v4 = vld [vmem:[#allocation12 + $0xc0] sm:$0xf0]  ;;  %v10931_v14 = vpop.f32.mrf.mxu3  ;;  %v8514_v22 = vld [vmem:[#allocation12 + $0x4d0] sm:$0xf]  ;;  %v10937_v31 = vpop.f32.mrf.mxu1 }
 0x229   :  { %2789 = vmatmul.bf16.vlgmr.msrb.gmra.mxu2 %v10836_v50  ;;  %v10056_v50 = vld [vmem:[#allocation12 + $0xf8] sm:$0xf0]  ;;  %v7983_v10 = vor.u32 %v10049_v4, %v7982_v36  ;;  %v2854_v26 = vmul.f32 0.2, %v10927_v9  ;;  %vm2838_vm13 = vcmp.gt.f32.partialorder %v10927_v9, 0.0 }
 0x22a   :  { %5725 = vmatpush.bf16.msra.mxu2 %v8095_v62  ;;  %2813 = vmatpush.bf16.msra.mxu0 %v7511_v8  ;;  %v2485_v62 = vadd.f32 %v10904_v61, %v2471_v48  ;;  %v8011_v63 = vor.u32 %v10056_v50, %v8010_v39  ;;  %v10189_v8 = vld [vmem:[#allocation12 + $0x520] sm:$0xf0]  ;;  %v2429_v61 = vadd.f32 %v10883_v29, %v2415_v3  ;;  %v10035_v50 = vld [vmem:[#allocation12 + $0x50] sm:$0xf0]  ;;  %v8682_v48 = vld [vmem:[#allocation12 + $0x620] sm:$0xf] }
 0x22b   :  { %v8739_v29 = vor.u32 %v10238_v13, %v8738_v11  ;;  %v7955_v39 = vor.u32 %v10042_v21, %v7954_v19  ;;  %v10028_v36 = vld [vmem:[#allocation12 + $0x18] sm:$0xf0]  ;;  %v8458_v3 = vld [vmem:[#allocation12 + $0x460] sm:$0xf]  ;;  %v2870_v11 = vsel %vm2838_vm13, %v10927_v9, %v2854_v26  ;;  %v10301_v13 = vld [vmem:[#allocation12 + $0x8a0] sm:$0xf0] }
 0x22c   :  { %5741 = vmatpush.bf16.msra.mxu3 %v8263_v7  ;;  %2829 = vmatpush.bf16.msra.mxu1 %v7703_v25  ;;  %v8542_v7 = vld [vmem:[#allocation12 + $0x508] sm:$0xf]  ;;  %v2499_v16 = vadd.f32 %v10900_v49, %v2485_v62  ;;  %v10182_v25 = vld [vmem:[#allocation12 + $0x4e8] sm:$0xf0]  ;;  %v10168_v4 = vld [vmem:[#allocation12 + $0x478] sm:$0xf0] }
 0x22d   :  { %v8543_v12 = vor.u32 %v10189_v8, %v8542_v7  ;;  %v8515_v40 = vor.u32 %v10182_v25, %v8514_v22  ;;  %v8990_v7 = vld [vmem:[#allocation12 + $0x888] sm:$0xf] }
 0x22e   :  { %5726 = vmatpush.bf16.msra.mxu2 %v8067_v32  ;;  %2814 = vmatpush.bf16.msra.mxu0 %v7479_v27  ;;  %v7415_v32 = vor.u32 %v9900_v6, %v7412_v0  ;;  %v2566_v49 = vpop.f32.mrf.mxu2  ;;  %v10231_v27 = vld [vmem:[#allocation12 + $0x670] sm:$0xf0]  ;;  %v2862_v37 = vmul.f32 0.2, %v2499_v16  ;;  %v10942_v5 = vpop.f32.mrf.mxu0  ;;  %vm2846_vm12 = vcmp.gt.f32.partialorder %v2499_v16, 0.0  ;;  %v8991_v22 = vor.u32 %v10301_v13, %v8990_v7 }
 0x22f   :  { %v7898_v0 = vld [vmem:[#allocation12] sm:$0xf]  ;;  %v8430_v26 = vld [vmem:[#allocation12 + $0x428] sm:$0xf]  ;;  %v10280_v13 = vld [vmem:[#allocation12 + $0x7f8] sm:$0xf0] }
 0x230   :  { %5742 = vmatpush.bf16.msra.mxu3 %v8235_v28  ;;  %2830 = vmatpush.bf16.msra.mxu1 %v7671_v52  ;;  %v8710_v28 = vld [vmem:[#allocation12 + $0x658] sm:$0xf]  ;;  %v9214_v52 = vld [vmem:[#allocation12 + $0xa48] sm:$0xf]  ;;  %v7899_v9 = vor.u32 %v10028_v36, %v7898_v0  ;;  %v8906_v7 = vld [vmem:[#allocation12 + $0x7e0] sm:$0xf] }
 0x231   :  { %v8711_v44 = vor.u32 %v10231_v27, %v8710_v28  ;;  %v8962_v28 = vld [vmem:[#allocation12 + $0x850] sm:$0xf] }
 0x232   :  { %5727 = vmatpush.bf16.msra.mxu2 %v8039_v35  ;;  %2815 = vmatpush.bf16.msra.mxu0 %v7447_v58  ;;  %v7926_v35 = vld [vmem:[#allocation12 + $0x38] sm:$0xf]  ;;  %v2441_v58 = vadd.f32 %v10869_v47, %v2427_v30  ;;  %v2567_v47 = vadd.f32 %v2566_v49, %v1096_v43  ;;  %v10161_v49 = vld [vmem:[#allocation12 + $0x440] sm:$0xf0]  ;;  %v10294_v30 = vld [vmem:[#allocation12 + $0x868] sm:$0xf0] }
 0x233   :  { %2831 = vmatmul.bf16.vlgmr.msra.gmra.mxu1 %v10839_v17  ;;  %v10940_v17 = vadd.f32 %v10879_v24, %v2429_v61  ;;  %v10224_v24 = vld [vmem:[#allocation12 + $0x638] sm:$0xf0]  ;;  %v7927_v6 = vor.u32 %v10035_v50, %v7926_v35  ;;  %v8654_v61 = vld [vmem:[#allocation12 + $0x5e8] sm:$0xf] }
 0x234   :  { %5743 = vmatpush.bf16.msra.mxu3 %v8207_v56  ;;  %5767 = vmatpush.bf16.msrb.mxu1 %v8767_v57  ;;  %v10357_v56 = vld [vmem:[#allocation12 + $0xa60] sm:$0xf0]  ;;  %v2580_v57 = vpop.f32.mrf.mxu3  ;;  %v8683_v1 = vor.u32 %v10224_v24, %v8682_v48  ;;  %vm2837_vm14 = vcmp.gt.f32.partialorder %v2441_v58, 0.0  ;;  %v2853_v18 = vmul.f32 0.2, %v2441_v58 }
 0x235   :  { %v2861_v62 = vmul.f32 0.2, %v10940_v17  ;;  %v9215_v8 = vor.u32 %v10357_v56, %v9214_v52  ;;  %vm2845_vm15 = vcmp.gt.f32.partialorder %v10940_v17, 0.0  ;;  %v2581_v21 = vadd.f32 %v2580_v57, %v2567_v47  ;;  %v8402_v48 = vld [vmem:[#allocation12 + $0x3f0] sm:$0xf] }
 0x236   :  { %5728 = vmatpush.bf16.msra.mxu2 %v8011_v63  ;;  %2816 = vmatpush.bf16.msra.mxu0 %v7415_v32  ;;  %v2878_v63 = vsel %vm2846_vm12, %v2499_v16, %v2862_v37  ;;  %v2608_v16 = vpop.f32.mrf.mxu1  ;;  %v2568_v19 = vpop.f32.mrf.mxu2  ;;  %v2869_v50 = vsel %vm2837_vm14, %v2441_v58, %v2853_v18  ;;  %v10154_v24 = vld [vmem:[#allocation12 + $0x408] sm:$0xf0]  ;;  %v8934_v52 = vld [vmem:[#allocation12 + $0x818] sm:$0xf]  ;;  %v10287_v58 = vld [vmem:[#allocation12 + $0x830] sm:$0xf0] }
 0x237   :  { %v10957_v32 = vpack.c.bf16 %v2878_v63, %v2870_v11  ;;  %v2594_v20 = vpop.f32.mrf.mxu0  ;;  %v2877_v27 = vsel %vm2845_vm15, %v10940_v17, %v2861_v62  ;;  %v2569_v35 = vadd.f32 %v2568_v19, %v1096_v43  ;;  %v8431_v17 = vor.u32 %v10161_v49, %v8430_v26  ;;  %v10329_v18 = vld [vmem:[#allocation12 + $0x980] sm:$0xf0] }
 0x238   :  { %5744 = vmatpush.bf16.msra.mxu3 %v8179_v15  ;;  %5768 = vmatpush.bf16.msrb.mxu1 %v8739_v29  ;;  %v10217_v15 = vld [vmem:[#allocation12 + $0x600] sm:$0xf0]  ;;  %v8459_v29 = vor.u32 %v10168_v4, %v8458_v3  ;;  %v2595_v37 = vadd.f32 %v2594_v20, %v2581_v21  ;;  %v10969_v60 = vpack.c.bf16 %v2877_v27, %v2869_v50  ;;  %v8374_v3 = vld [vmem:[#allocation12 + $0x3b8] sm:$0xf]  ;;  %v10147_v4 = vld [vmem:[#allocation12 + $0x3d0] sm:$0xf0] }
 0x239   :  { %2817 = vmatmul.bf16.vlgmr.msra.gmra.mxu0 %v10843_v46  ;;  %v8487_v46 = vor.u32 %v10175_v45, %v8486_v55  ;;  %v8655_v25 = vor.u32 %v10217_v15, %v8654_v61  ;;  %v2527_v55 = vadd.f32 %v10931_v14, %v2513_v2  ;;  %v2525_v43 = vadd.f32 %v10910_v23, %v2511_v51  ;;  %v10203_v14 = vld [vmem:[#allocation12 + $0x590] sm:$0xf0]  ;;  %v8570_v61 = vld [vmem:[#allocation12 + $0x540] sm:$0xf]  ;;  %v10196_v15 = vld [vmem:[#allocation12 + $0x558] sm:$0xf0] }
 0x23a   :  { %5729 = vmatpush.bf16.msra.mxu2 %v7983_v10  ;;  %5753 = vmatpush.bf16.msrb.mxu0 %v8543_v12  ;;  %v9186_v10 = vld [vmem:[#allocation12 + $0xa10] sm:$0xf]  ;;  %v10350_v12 = vld [vmem:[#allocation12 + $0xa28] sm:$0xf0]  ;;  %v2609_v63 = vadd.f32 %v2608_v16, %v2595_v37  ;;  %v8403_v47 = vor.u32 %v10154_v24, %v8402_v48  ;;  %v8375_v19 = vor.u32 %v10147_v4, %v8374_v3  ;;  %v8346_v20 = vld [vmem:[#allocation12 + $0x380] sm:$0xf] }
 0x23b   :  { %v9187_v38 = vor.u32 %v10350_v12, %v9186_v10  ;;  %v2541_v56 = vadd.f32 %v10942_v5, %v2527_v55  ;;  %v2539_v0 = vadd.f32 %v10921_v53, %v2525_v43  ;;  %v8935_v5 = vor.u32 %v10287_v58, %v8934_v52  ;;  %v9102_v12 = vld [vmem:[#allocation12 + $0x968] sm:$0xf]  ;;  %v10140_v21 = vld [vmem:[#allocation12 + $0x398] sm:$0xf0]  ;;  %v10273_v26 = vld [vmem:[#allocation12 + $0x7c0] sm:$0xf0] }
 0x23c   :  { %5745 = vmatpush.bf16.msra.mxu3 %v8151_v33  ;;  %5769 = vmatpush.bf16.msrb.mxu1 %v8711_v44  ;;  %v8626_v33 = vld [vmem:[#allocation12 + $0x5b0] sm:$0xf]  ;;  %v8963_v44 = vor.u32 %v10294_v30, %v8962_v28  ;;  %v2582_v54 = vpop.f32.mrf.mxu3  ;;  %v2856_v53 = vmul.f32 0.2, %v2609_v63  ;;  %vm2840_vm0 = vcmp.gt.f32.partialorder %v2609_v63, 0.0  ;;  %v9103_v49 = vor.u32 %v10329_v18, %v9102_v12 }
 0x23d   :  { %v8627_v45 = vor.u32 %v10210_v34, %v8626_v33  ;;  %v2583_v57 = vadd.f32 %v2582_v54, %v2569_v35  ;;  %v2553_v2 = vadd.f32 %v10915_v42, %v2539_v0  ;;  %v9074_v27 = vld [vmem:[#allocation12 + $0x930] sm:$0xf]  ;;  %v10322_v51 = vld [vmem:[#allocation12 + $0x948] sm:$0xf0]  ;;  %v8347_v34 = vor.u32 %v10140_v21, %v8346_v20  ;;  %v10413_v35 = vld [vmem:[#allocation12 + $0xc20] sm:$0xf0] }
 0x23e   :  { %5730 = vmatpush.bf16.msra.mxu2 %v7955_v39  ;;  %5754 = vmatpush.bf16.msrb.mxu0 %v8515_v40  ;;  %v9158_v39 = vld [vmem:[#allocation12 + $0x9d8] sm:$0xf]  ;;  %v10343_v40 = vld [vmem:[#allocation12 + $0x9f0] sm:$0xf0]  ;;  %v2610_v11 = vpop.f32.mrf.mxu1  ;;  %v2872_v28 = vsel %vm2840_vm0, %v2609_v63, %v2856_v53  ;;  %v8850_v50 = vld [vmem:[#allocation12 + $0x770] sm:$0xf] }
 0x23f   :  { %v9159_v62 = vor.u32 %v10343_v40, %v9158_v39  ;;  %v2596_v36 = vpop.f32.mrf.mxu0  ;;  %v2855_v30 = vmul.f32 0.2, %v2553_v2  ;;  %vm2839_vm3 = vcmp.gt.f32.partialorder %v2553_v2, 0.0  ;;  %v10266_v55 = vld [vmem:[#allocation12 + $0x788] sm:$0xf0] }
 0x240   :  { %5746 = vmatpush.bf16.msra.mxu3 %v8123_v59  ;;  %5770 = vmatpush.bf16.msrb.mxu1 %v8683_v1  ;;  %v8598_v59 = vld [vmem:[#allocation12 + $0x578] sm:$0xf]  ;;  %v2597_v23 = vadd.f32 %v2596_v36, %v2583_v57  ;;  %v9410_v48 = vld [vmem:[#allocation12 + $0xbd0] sm:$0xf]  ;;  %v10406_v24 = vld [vmem:[#allocation12 + $0xbe8] sm:$0xf0]  ;;  %v8851_v54 = vor.u32 %v10266_v55, %v8850_v50 }
 0x241   :  { %v8599_v1 = vor.u32 %v10203_v14, %v8598_v59  ;;  %v2871_v52 = vsel %vm2839_vm3, %v2553_v2, %v2855_v30  ;;  %v8822_v58 = vld [vmem:[#allocation12 + $0x738] sm:$0xf]  ;;  %v9411_v59 = vor.u32 %v10406_v24, %v9410_v48  ;;  %v10259_v14 = vld [vmem:[#allocation12 + $0x750] sm:$0xf0]  ;;  %v10308_v0 = vld [vmem:[#allocation12 + $0x8d8] sm:$0xf0] }
 0x242   :  { %5731 = vmatpush.bf16.msra.mxu2 %v7927_v6  ;;  %5755 = vmatpush.bf16.msrb.mxu0 %v8487_v46  ;;  %v9130_v6 = vld [vmem:[#allocation12 + $0x9a0] sm:$0xf]  ;;  %v10336_v46 = vld [vmem:[#allocation12 + $0x9b8] sm:$0xf0]  ;;  %v2611_v10 = vadd.f32 %v2610_v11, %v2597_v23  ;;  %v9382_v63 = vld [vmem:[#allocation12 + $0xb98] sm:$0xf]  ;;  %v8823_v23 = vor.u32 %v10259_v14, %v8822_v58 }
 0x243   :  { %5747 = vmatmul.bf16.vlgmr.msra.gmra.mxu3 %v10957_v32  ;;  %v9131_v16 = vor.u32 %v10336_v46, %v9130_v6  ;;  %v10399_v57 = vld [vmem:[#allocation12 + $0xbb0] sm:$0xf0]  ;;  %v1097_v6 = vperm.slane %v10897_v41, 4  ;;  %v9018_v46 = vld [vmem:[#allocation12 + $0x8c0] sm:$0xf] }
 0x244   :  { %5795 = vmatpush.bf16.msrb.mxu3 %v9215_v8  ;;  %5771 = vmatpush.bf16.msrb.mxu1 %v8655_v25  ;;  %v2555_v8 = vadd.f32 %v10937_v31, %v2541_v56  ;;  %vm2848_vm1 = vcmp.gt.f32.partialorder %v2611_v10, 0.0  ;;  %v8907_v31 = vor.u32 %v10280_v13, %v8906_v7  ;;  %v8878_v25 = vld [vmem:[#allocation12 + $0x7a8] sm:$0xf]  ;;  %v10130_v36 = vld [vmem:[#allocation12 + $0x34c] sm:$0xf]  ;;  %v9019_v7 = vor.u32 %v10308_v0, %v9018_v46 }
 0x245   :  { %v8879_v37 = vor.u32 %v10273_v26, %v8878_v25  ;;  %v8794_v3 = vld [vmem:[#allocation12 + $0x700] sm:$0xf]  ;;  %v10252_v4 = vld [vmem:[#allocation12 + $0x718] sm:$0xf0]  ;;  %v10074_v11 = vld [vmem:[#allocation12 + $0x18c] sm:$0xf] }
 0x246   :  { %5732 = vmatpush.bf16.msra.mxu2 %v7899_v9  ;;  %5756 = vmatpush.bf16.msrb.mxu0 %v8459_v29  ;;  %v2864_v9 = vmul.f32 0.2, %v2611_v10  ;;  %v8571_v29 = vor.u32 %v10196_v15, %v8570_v61  ;;  %vm2847_vm2 = vcmp.gt.f32.partialorder %v2555_v8, 0.0  ;;  %v8096_v13 = vld [vmem:[#allocation12 + $0x1a4] sm:$0xf0]  ;;  %v8795_v18 = vor.u32 %v10252_v4, %v8794_v3 }
 0x247   :  { %v10123_v15 = vld [vmem:[#allocation12 + $0x314] sm:$0xf]  ;;  %v9354_v53 = vld [vmem:[#allocation12 + $0xb60] sm:$0xf]  ;;  %v8068_v21 = vld [vmem:[#allocation12 + $0x16c] sm:$0xf0] }
 0x248   :  { %5796 = vmatpush.bf16.msrb.mxu3 %v9187_v38  ;;  %5772 = vmatpush.bf16.msrb.mxu1 %v8627_v45  ;;  %v2880_v42 = vsel %vm2848_vm1, %v2611_v10, %v2864_v9  ;;  %v9438_v38 = vld [vmem:[#allocation12 + $0xc08] sm:$0xf]  ;;  %v10315_v45 = vld [vmem:[#allocation12 + $0x910] sm:$0xf0]  ;;  %v10392_v10 = vld [vmem:[#allocation12 + $0xb78] sm:$0xf0]  ;;  %v8099_v9 = vor.u32 %v10074_v11, %v8096_v13 }
 0x249   :  { %5733 = vmatmul.bf16.vlgmr.msra.gmra.mxu2 %v10969_v60  ;;  %v10978_v33 = vpack.c.bf16 %v2880_v42, %v2872_v28  ;;  %v9439_v39 = vor.u32 %v10413_v35, %v9438_v38  ;;  %v9355_v2 = vor.u32 %v10392_v10, %v9354_v53  ;;  %v10116_v25 = vld [vmem:[#allocation12 + $0x2dc] sm:$0xf]  ;;  %v8264_v26 = vld [vmem:[#allocation12 + $0x2f4] sm:$0xf0]  ;;  %v10385_v28 = vld [vmem:[#allocation12 + $0xb40] sm:$0xf0] }
 0x24a   :  { %5781 = vmatpush.bf16.msrb.mxu2 %v8991_v22  ;;  %5757 = vmatpush.bf16.msrb.mxu0 %v8431_v17  ;;  %v2863_v22 = vmul.f32 0.2, %v2555_v8  ;;  %v9075_v17 = vor.u32 %v10322_v51, %v9074_v27  ;;  %v8040_v38 = vld [vmem:[#allocation12 + $0x134] sm:$0xf0]  ;;  %v8267_v35 = vor.u32 %v10116_v25, %v8264_v26  ;;  %v9298_v50 = vld [vmem:[#allocation12 + $0xaf0] sm:$0xf] }
 0x24b   :  { %v10378_v55 = vld [vmem:[#allocation12 + $0xb08] sm:$0xf0]  ;;  %v10095_v3 = vld [vmem:[#allocation12 + $0x234] sm:$0xf]  ;;  %v8180_v4 = vld [vmem:[#allocation12 + $0x24c] sm:$0xf0] }
 0x24c   :  { %5797 = vmatpush.bf16.msrb.mxu3 %v9159_v62  ;;  %5773 = vmatpush.bf16.msrb.mxu1 %v8599_v1  ;;  %v2879_v40 = vsel %vm2847_vm2, %v2555_v8, %v2863_v22  ;;  %v2622_v43 = vpop.f32.mrf.mxu2  ;;  %v2636_v1 = vpop.f32.mrf.mxu3  ;;  %v10462_v25 = vld [vmem:[#allocation12 + $0xda8] sm:$0xf0]  ;;  %v10179_v26 = vld [vmem:[#allocation12 + $0x4d4] sm:$0xf] }
 0x24d   :  { %v10982_v56 = vpack.c.bf16 %v2879_v40, %v2871_v52  ;;  %v2623_v8 = vadd.f32 %v2622_v43, %v1097_v6  ;;  %v8236_v40 = vld [vmem:[#allocation12 + $0x2bc] sm:$0xf0]  ;;  %v10053_v43 = vld [vmem:[#allocation12 + $0xe4] sm:$0xf] }
 0x24e   :  { %5782 = vmatpush.bf16.msrb.mxu2 %v8963_v44  ;;  %5758 = vmatpush.bf16.msrb.mxu0 %v8403_v47  ;;  %v9046_v44 = vld [vmem:[#allocation12 + $0x8f8] sm:$0xf]  ;;  %v8320_v47 = vld [vmem:[#allocation12 + $0x364] sm:$0xf0] }
 0x24f   :  { %v9047_v62 = vor.u32 %v10315_v45, %v9046_v44  ;;  %v8323_v61 = vor.u32 %v10130_v36, %v8320_v47  ;;  %v9299_v45 = vor.u32 %v10378_v55, %v9298_v50  ;;  %v10046_v47 = vld [vmem:[#allocation12 + $0xac] sm:$0xf]  ;;  %v10172_v50 = vld [vmem:[#allocation12 + $0x49c] sm:$0xf]  ;;  %v1098_v55 = vperm.slane %v10897_v41, 5 }
 0x250   :  { %5798 = vmatpush.bf16.msrb.mxu3 %v9131_v16  ;;  %5774 = vmatpush.bf16.msrb.mxu1 %v8571_v29  ;;  %v8292_v16 = vld [vmem:[#allocation12 + $0x32c] sm:$0xf0]  ;;  %v2664_v12 = vpop.f32.mrf.mxu1  ;;  %v10067_v29 = vld [vmem:[#allocation12 + $0x154] sm:$0xf] }
 0x251   :  { %v8295_v22 = vor.u32 %v10123_v15, %v8292_v16  ;;  %v8071_v30 = vor.u32 %v10067_v29, %v8068_v21  ;;  %v9662_v15 = vld [vmem:[#allocation12 + $0xdc8] sm:$0xf]  ;;  %v10469_v16 = vld [vmem:[#allocation12 + $0xde0] sm:$0xf0]  ;;  %v10088_v29 = vld [vmem:[#allocation12 + $0x1fc] sm:$0xf] }
 0x252   :  { %5783 = vmatpush.bf16.msrb.mxu2 %v8935_v5  ;;  %5759 = vmatpush.bf16.msrb.mxu0 %v8375_v19  ;;  %v9383_v5 = vor.u32 %v10399_v57, %v9382_v63  ;;  %v9270_v63 = vld [vmem:[#allocation12 + $0xab8] sm:$0xf]  ;;  %v10371_v57 = vld [vmem:[#allocation12 + $0xad0] sm:$0xf0] }
 0x253   :  { %5775 = vmatmul.bf16.vlgmr.msrb.gmra.mxu1 %v10978_v33  ;;  %v9271_v0 = vor.u32 %v10371_v57, %v9270_v63  ;;  %v8152_v21 = vld [vmem:[#allocation12 + $0x214] sm:$0xf0]  ;;  %v10448_v63 = vld [vmem:[#allocation12 + $0xd38] sm:$0xf0]  ;;  %v10165_v57 = vld [vmem:[#allocation12 + $0x464] sm:$0xf] }
 0x254   :  { %5799 = vmatpush.bf16.msrb.mxu3 %v9103_v49  ;;  %v2624_v19 = vpop.f32.mrf.mxu2  ;;  %v9326_v49 = vld [vmem:[#allocation12 + $0xb28] sm:$0xf] }
 0x255   :  { %v2625_v42 = vadd.f32 %v2624_v19, %v1097_v6  ;;  %v9327_v51 = vor.u32 %v10385_v28, %v9326_v49  ;;  %v10039_v19 = vld [vmem:[#allocation12 + $0x74] sm:$0xf] }
 0x256   :  { %5784 = vmatpush.bf16.msrb.mxu2 %v8907_v31  ;;  %5760 = vmatpush.bf16.msrb.mxu0 %v8347_v34  ;;  %v2650_v20 = vpop.f32.mrf.mxu0  ;;  %v2637_v31 = vadd.f32 %v2636_v1, %v2623_v8  ;;  %v10060_v34 = vld [vmem:[#allocation12 + $0x11c] sm:$0xf] }
 0x257   :  { %v8043_v24 = vor.u32 %v10060_v34, %v8040_v38  ;;  %v10364_v8 = vld [vmem:[#allocation12 + $0xa98] sm:$0xf0]  ;;  %v8155_v34 = vor.u32 %v10088_v29, %v8152_v21  ;;  %v10081_v38 = vld [vmem:[#allocation12 + $0x1c4] sm:$0xf]  ;;  %v10151_v29 = vld [vmem:[#allocation12 + $0x3f4] sm:$0xf] }
 0x258   :  { %5800 = vmatpush.bf16.msrb.mxu3 %v9075_v17  ;;  %v2651_v27 = vadd.f32 %v2650_v20, %v2637_v31  ;;  %v2666_v14 = vpop.f32.mrf.mxu1  ;;  %v7956_v20 = vld [vmem:[#allocation12 + $0x8c] sm:$0xf0] }
 0x259   :  { %5761 = vmatmul.bf16.vlgmr.msrb.gmra.mxu0 %v10982_v56  ;;  %v7959_v28 = vor.u32 %v10039_v19, %v7956_v20  ;;  %v9522_v19 = vld [vmem:[#allocation12 + $0xcb0] sm:$0xf] }
 0x25a   :  { %5785 = vmatpush.bf16.msrb.mxu2 %v8879_v37  ;;  %5809 = vmatpush.bf16.msra.mxu0 %v9439_v39  ;;  %v10109_v37 = vld [vmem:[#allocation12 + $0x2a4] sm:$0xf]  ;;  %v2638_v39 = vpop.f32.mrf.mxu3  ;;  %v2665_v17 = vadd.f32 %v2664_v12, %v2651_v27  ;;  %v9663_v12 = vor.u32 %v10469_v16, %v9662_v15  ;;  %v8404_v21 = vld [vmem:[#allocation12 + $0x40c] sm:$0xf0] }
 0x25b   :  { %v2639_v44 = vadd.f32 %v2638_v39, %v2625_v42  ;;  %v8239_v58 = vor.u32 %v10109_v37, %v8236_v40  ;;  %v10032_v42 = vld [vmem:[#allocation12 + $0x3c] sm:$0xf]  ;;  %v9606_v39 = vld [vmem:[#allocation12 + $0xd58] sm:$0xf]  ;;  %v10455_v40 = vld [vmem:[#allocation12 + $0xd70] sm:$0xf0] }
 0x25c   :  { %5801 = vmatpush.bf16.msrb.mxu3 %v9047_v62  ;;  %v8208_v62 = vld [vmem:[#allocation12 + $0x284] sm:$0xf0]  ;;  %v2857_v6 = vmul.f32 0.2, %v2665_v17  ;;  %vm2841_vm4 = vcmp.gt.f32.partialorder %v2665_v17, 0.0  ;;  %5823 = vmatpush.bf16.msra.mxu1 %v9663_v12 }
 0x25d   :  { %v10284_v12 = vld [vmem:[#allocation12 + $0x81c] sm:$0xf] }
 0x25e   :  { %5786 = vmatpush.bf16.msrb.mxu2 %v8851_v54  ;;  %5810 = vmatpush.bf16.msra.mxu0 %v9411_v59  ;;  %v2652_v48 = vpop.f32.mrf.mxu0  ;;  %v8012_v54 = vld [vmem:[#allocation12 + $0xfc] sm:$0xf0]  ;;  %v10102_v59 = vld [vmem:[#allocation12 + $0x26c] sm:$0xf]  ;;  %v2873_v11 = vsel %vm2841_vm4, %v2665_v17, %v2857_v6  ;;  %v9607_v17 = vor.u32 %v10455_v40, %v9606_v39  ;;  %v8880_v39 = vld [vmem:[#allocation12 + $0x7c4] sm:$0xf0] }
 0x25f   :  { %v2653_v52 = vadd.f32 %v2652_v48, %v2639_v44  ;;  %v8015_v36 = vor.u32 %v10053_v43, %v8012_v54  ;;  %v8211_v1 = vor.u32 %v10102_v59, %v8208_v62  ;;  %v8488_v44 = vld [vmem:[#allocation12 + $0x4b4] sm:$0xf0]  ;;  %v8992_v59 = vld [vmem:[#allocation12 + $0x8a4] sm:$0xf0]  ;;  %v9578_v62 = vld [vmem:[#allocation12 + $0xd20] sm:$0xf] }
 0x260   :  { %5802 = vmatpush.bf16.msrb.mxu3 %v9019_v7  ;;  %v9242_v7 = vld [vmem:[#allocation12 + $0xa80] sm:$0xf]  ;;  %v8491_v48 = vor.u32 %v10172_v50, %v8488_v44  ;;  %v9579_v6 = vor.u32 %v10448_v63, %v9578_v62  ;;  %v8376_v50 = vld [vmem:[#allocation12 + $0x3d4] sm:$0xf0] }
 0x261   :  { %v2667_v46 = vadd.f32 %v2666_v14, %v2653_v52  ;;  %v7900_v52 = vld [vmem:[#allocation12 + $0x1c] sm:$0xf0] }
 0x262   :  { %5787 = vmatpush.bf16.msrb.mxu2 %v8823_v23  ;;  %5811 = vmatpush.bf16.msra.mxu0 %v9383_v5  ;;  %v7984_v23 = vld [vmem:[#allocation12 + $0xc4] sm:$0xf0]  ;;  %v8348_v62 = vld [vmem:[#allocation12 + $0x39c] sm:$0xf0] }
 0x263   :  { %vm2849_vm5 = vcmp.gt.f32.partialorder %v2667_v46, 0.0  ;;  %v2865_v5 = vmul.f32 0.2, %v2667_v46  ;;  %v7987_v10 = vor.u32 %v10046_v47, %v7984_v23 }
 0x264   :  { %5851 = vmatpush.bf16.msra.mxu3 %v8323_v61  ;;  %v9243_v61 = vor.u32 %v10364_v8, %v9242_v7  ;;  %v9550_v7 = vld [vmem:[#allocation12 + $0xce8] sm:$0xf]  ;;  %v10441_v8 = vld [vmem:[#allocation12 + $0xd00] sm:$0xf0] }
 0x265   :  { %v2881_v13 = vsel %vm2849_vm5, %v2667_v46, %v2865_v5  ;;  %v8460_v46 = vld [vmem:[#allocation12 + $0x47c] sm:$0xf0] }
 0x266   :  { %5788 = vmatpush.bf16.msrb.mxu2 %v8795_v18  ;;  %5812 = vmatpush.bf16.msra.mxu0 %v9355_v2  ;;  %v10986_v53 = vpack.c.bf16 %v2881_v13, %v2873_v11  ;;  %v10186_v18 = vld [vmem:[#allocation12 + $0x50c] sm:$0xf]  ;;  %v8544_v2 = vld [vmem:[#allocation12 + $0x524] sm:$0xf0]  ;;  %v2692_v54 = vpop.f32.mrf.mxu3  ;;  %v8463_v47 = vor.u32 %v10165_v57, %v8460_v46  ;;  %v9551_v13 = vor.u32 %v10441_v8, %v9550_v7 }
 0x267   :  { %v8547_v31 = vor.u32 %v10186_v18, %v8544_v2  ;;  %v10158_v11 = vld [vmem:[#allocation12 + $0x42c] sm:$0xf]  ;;  %v8936_v18 = vld [vmem:[#allocation12 + $0x834] sm:$0xf0] }
 0x268   :  { %5852 = vmatpush.bf16.msra.mxu3 %v8295_v22  ;;  %v9634_v22 = vld [vmem:[#allocation12 + $0xd90] sm:$0xf] }
 0x269   :  { %5789 = vmatmul.bf16.vlgmr.msrb.gmra.mxu2 %v10986_v53  ;;  %v9635_v27 = vor.u32 %v10462_v25, %v9634_v22 }
 0x26a   :  { %5837 = vmatpush.bf16.msra.mxu2 %v8099_v9  ;;  %5813 = vmatpush.bf16.msra.mxu0 %v9327_v51  ;;  %v8183_v9 = vor.u32 %v10095_v3, %v8180_v4  ;;  %v8516_v51 = vld [vmem:[#allocation12 + $0x4ec] sm:$0xf0] }
 0x26b   :  { %v8519_v37 = vor.u32 %v10179_v26, %v8516_v51  ;;  %5824 = vmatpush.bf16.msra.mxu1 %v9635_v27  ;;  %v8964_v3 = vld [vmem:[#allocation12 + $0x86c] sm:$0xf0]  ;;  %v8908_v27 = vld [vmem:[#allocation12 + $0x7fc] sm:$0xf0] }
 0x26c   :  { %5853 = vmatpush.bf16.msra.mxu3 %v8267_v35  ;;  %v2678_v49 = vpop.f32.mrf.mxu2  ;;  %v8124_v35 = vld [vmem:[#allocation12 + $0x1dc] sm:$0xf0] }
 0x26d   :  { %v8127_v43 = vor.u32 %v10081_v38, %v8124_v35  ;;  %v2679_v14 = vadd.f32 %v2678_v49, %v1098_v55  ;;  %v8407_v49 = vor.u32 %v10151_v29, %v8404_v21  ;;  %v10144_v38 = vld [vmem:[#allocation12 + $0x3bc] sm:$0xf]  ;;  %v10249_v29 = vld [vmem:[#allocation12 + $0x704] sm:$0xf]  ;;  %v8796_v21 = vld [vmem:[#allocation12 + $0x71c] sm:$0xf0] }
 0x26e   :  { %5838 = vmatpush.bf16.msra.mxu2 %v8071_v30  ;;  %5814 = vmatpush.bf16.msra.mxu0 %v9299_v45  ;;  %v7928_v30 = vld [vmem:[#allocation12 + $0x54] sm:$0xf0]  ;;  %v2694_v20 = vpop.f32.mrf.mxu3 }
 0x26f   :  { %v7931_v45 = vor.u32 %v10032_v42, %v7928_v30  ;;  %5825 = vmatpush.bf16.msra.mxu1 %v9607_v17  ;;  %v2693_v4 = vadd.f32 %v2692_v54, %v2679_v14  ;;  %v10277_v42 = vld [vmem:[#allocation12 + $0x7e4] sm:$0xf]  ;;  %v9494_v30 = vld [vmem:[#allocation12 + $0xc78] sm:$0xf] }
 0x270   :  { %5854 = vmatpush.bf16.msra.mxu3 %v8239_v58  ;;  %v10298_v58 = vld [vmem:[#allocation12 + $0x88c] sm:$0xf]  ;;  %v8911_v44 = vor.u32 %v10277_v42, %v8908_v27  ;;  %v10137_v14 = vld [vmem:[#allocation12 + $0x384] sm:$0xf] }
 0x271   :  { %v10221_v27 = vld [vmem:[#allocation12 + $0x624] sm:$0xf] }
 0x272   :  { %5839 = vmatpush.bf16.msra.mxu2 %v8043_v24  ;;  %5815 = vmatpush.bf16.msra.mxu0 %v9271_v0  ;;  %v10025_v24 = vld [vmem:[#allocation12 + $0x4] sm:$0xf]  ;;  %v2720_v0 = vpop.f32.mrf.mxu1 }
 0x273   :  { %v7903_v41 = vor.u32 %v10025_v24, %v7900_v52  ;;  %5826 = vmatpush.bf16.msra.mxu1 %v9579_v6  ;;  %v8379_v24 = vor.u32 %v10144_v38, %v8376_v50  ;;  %v8852_v6 = vld [vmem:[#allocation12 + $0x78c] sm:$0xf0] }
 0x274   :  { %5855 = vmatpush.bf16.msra.mxu3 %v8211_v1  ;;  %v2680_v23 = vpop.f32.mrf.mxu2  ;;  %v10291_v1 = vld [vmem:[#allocation12 + $0x854] sm:$0xf] }
 0x275   :  { %v2681_v15 = vadd.f32 %v2680_v23, %v1098_v55  ;;  %v10347_v23 = vld [vmem:[#allocation12 + $0xa14] sm:$0xf] }
 0x276   :  { %5840 = vmatpush.bf16.msra.mxu2 %v8015_v36  ;;  %5816 = vmatpush.bf16.msra.mxu0 %v9243_v61  ;;  %v8995_v36 = vor.u32 %v10298_v58, %v8992_v59  ;;  %v2706_v5 = vpop.f32.mrf.mxu0  ;;  %v8432_v61 = vld [vmem:[#allocation12 + $0x444] sm:$0xf0]  ;;  %v10420_v59 = vld [vmem:[#allocation12 + $0xc58] sm:$0xf0] }
 0x277   :  { %v2707_v16 = vadd.f32 %v2706_v5, %v2693_v4  ;;  %v8435_v2 = vor.u32 %v10158_v11, %v8432_v61  ;;  %5827 = vmatpush.bf16.msra.mxu1 %v9551_v13  ;;  %v2695_v25 = vadd.f32 %v2694_v20, %v2681_v15  ;;  %v9188_v5 = vld [vmem:[#allocation12 + $0xa2c] sm:$0xf0]  ;;  %v10235_v4 = vld [vmem:[#allocation12 + $0x694] sm:$0xf]  ;;  %v10256_v11 = vld [vmem:[#allocation12 + $0x73c] sm:$0xf] }
 0x278   :  { %5856 = vmatpush.bf16.msra.mxu3 %v8183_v9  ;;  %v8939_v9 = vor.u32 %v10284_v12, %v8936_v18  ;;  %v9191_v8 = vor.u32 %v10347_v23, %v9188_v5  ;;  %v8740_v13 = vld [vmem:[#allocation12 + $0x6ac] sm:$0xf0]  ;;  %v8824_v15 = vld [vmem:[#allocation12 + $0x754] sm:$0xf0]  ;;  %v10228_v18 = vld [vmem:[#allocation12 + $0x65c] sm:$0xf] }
 0x279   :  { %v2721_v22 = vadd.f32 %v2720_v0, %v2707_v16  ;;  %v8351_v0 = vor.u32 %v10137_v14, %v8348_v62  ;;  %v10340_v16 = vld [vmem:[#allocation12 + $0x9dc] sm:$0xf]  ;;  %v8743_v12 = vor.u32 %v10235_v4, %v8740_v13 }
 0x27a   :  { %5841 = vmatpush.bf16.msra.mxu2 %v7987_v10  ;;  %5865 = vmatpush.bf16.msrb.mxu0 %v8547_v31  ;;  %v8967_v10 = vor.u32 %v10291_v1, %v8964_v3  ;;  %v10434_v31 = vld [vmem:[#allocation12 + $0xcc8] sm:$0xf0]  ;;  %v2722_v35 = vpop.f32.mrf.mxu1  ;;  %v8768_v1 = vld [vmem:[#allocation12 + $0x6e4] sm:$0xf0]  ;;  %v10312_v5 = vld [vmem:[#allocation12 + $0x8fc] sm:$0xf] }
 0x27b   :  { %v9523_v26 = vor.u32 %v10434_v31, %v9522_v19  ;;  %v2858_v55 = vmul.f32 0.2, %v2721_v22  ;;  %vm2842_vm6 = vcmp.gt.f32.partialorder %v2721_v22, 0.0  ;;  %v10994_v19 = vld [vmem:[#allocation10] sm:$0xff] }
 0x27c   :  { %5857 = vmatpush.bf16.msra.mxu3 %v8155_v34  ;;  %v10427_v34 = vld [vmem:[#allocation12 + $0xc90] sm:$0xf0]  ;;  %v1099_v20 = vperm.slane %v10994_v19, 6 }
 0x27d   :  { %5828 = vmatpush.bf16.msra.mxu1 %v9523_v26  ;;  %v9495_v40 = vor.u32 %v10427_v34, %v9494_v30  ;;  %v2874_v63 = vsel %vm2842_vm6, %v2721_v22, %v2858_v55  ;;  %v10333_v22 = vld [vmem:[#allocation12 + $0x9a4] sm:$0xf]  ;;  %v8799_v34 = vor.u32 %v10249_v29, %v8796_v21  ;;  %v8074_v55 = vld [vmem:[#allocation12 + $0x158] sm:$0xf]  ;;  %v7990_v29 = vld [vmem:[#allocation12 + $0xb0] sm:$0xf] }
 0x27e   :  { %5842 = vmatpush.bf16.msra.mxu2 %v7959_v28  ;;  %5866 = vmatpush.bf16.msrb.mxu0 %v8519_v37  ;;  %v2708_v28 = vpop.f32.mrf.mxu0  ;;  %v10270_v37 = vld [vmem:[#allocation12 + $0x7ac] sm:$0xf] }
 0x27f   :  { %v2709_v51 = vadd.f32 %v2708_v28, %v2695_v25  ;;  %v8883_v54 = vor.u32 %v10270_v37, %v8880_v39  ;;  %v9132_v25 = vld [vmem:[#allocation12 + $0x9bc] sm:$0xf0]  ;;  %v10078_v28 = vld [vmem:[#allocation12 + $0x1a8] sm:$0xf0]  ;;  %v9104_v39 = vld [vmem:[#allocation12 + $0x984] sm:$0xf0] }
 0x280   :  { %5858 = vmatpush.bf16.msra.mxu3 %v8127_v43  ;;  %v9466_v43 = vld [vmem:[#allocation12 + $0xc40] sm:$0xf]  ;;  %v9135_v38 = vor.u32 %v10333_v22, %v9132_v25  ;;  %v10326_v37 = vld [vmem:[#allocation12 + $0x96c] sm:$0xf] }
 0x281   :  { %v2723_v17 = vadd.f32 %v2722_v35, %v2709_v51  ;;  %5829 = vmatpush.bf16.msra.mxu1 %v9495_v40  ;;  %v9467_v46 = vor.u32 %v10420_v59, %v9466_v43  ;;  %v8684_v51 = vld [vmem:[#allocation12 + $0x63c] sm:$0xf0]  ;;  %v9107_v43 = vor.u32 %v10326_v37, %v9104_v39  ;;  %v9076_v59 = vld [vmem:[#allocation12 + $0x94c] sm:$0xf0] }
 0x282   :  { %5843 = vmatpush.bf16.msra.mxu2 %v7931_v45  ;;  %5867 = vmatpush.bf16.msrb.mxu0 %v8491_v48  ;;  %v10354_v45 = vld [vmem:[#allocation12 + $0xa4c] sm:$0xf]  ;;  %v9216_v48 = vld [vmem:[#allocation12 + $0xa64] sm:$0xf0]  ;;  %v8687_v40 = vor.u32 %v10221_v27, %v8684_v51 }
 0x283   :  { %vm2850_vm7 = vcmp.gt.f32.partialorder %v2723_v17, 0.0  ;;  %v2866_v52 = vmul.f32 0.2, %v2723_v17  ;;  %v9219_v58 = vor.u32 %v10354_v45, %v9216_v48  ;;  %v10214_v48 = vld [vmem:[#allocation12 + $0x5ec] sm:$0xf] }
 0x285   :  { %v2882_v57 = vsel %vm2850_vm7, %v2723_v17, %v2866_v52  ;;  %5830 = vmatpush.bf16.msra.mxu1 %v9467_v46  ;;  %v10071_v17 = vld [vmem:[#allocation12 + $0x170] sm:$0xf0]  ;;  %v8628_v46 = vld [vmem:[#allocation12 + $0x5cc] sm:$0xf0] }
 0x286   :  { %5844 = vmatpush.bf16.msra.mxu2 %v7903_v41  ;;  %5868 = vmatpush.bf16.msrb.mxu0 %v8463_v47  ;;  %v10263_v41 = vld [vmem:[#allocation12 + $0x774] sm:$0xf]  ;;  %v10991_v47 = vpack.c.bf16 %v2882_v57, %v2874_v63  ;;  %v2748_v42 = vpop.f32.mrf.mxu3  ;;  %v8046_v57 = vld [vmem:[#allocation12 + $0x120] sm:$0xf] }
 0x287   :  { %v8855_v7 = vor.u32 %v10263_v41, %v8852_v6  ;;  %v10064_v41 = vld [vmem:[#allocation12 + $0x138] sm:$0xf0]  ;;  %v10207_v6 = vld [vmem:[#allocation12 + $0x5b4] sm:$0xf] }
 0x288   :  { %5803 = vmatmul.bf16.vlgmr.msrb.gmra.mxu3 %v10991_v47  ;;  %v8047_v23 = vor.u32 %v10064_v41, %v8046_v57  ;;  %v8270_v57 = vld [vmem:[#allocation12 + $0x2e0] sm:$0xf]  ;;  %v10120_v41 = vld [vmem:[#allocation12 + $0x2f8] sm:$0xf0] }
 0x289   :  { %5845 = vmatmul.bf16.vlgmr.msra.gmra.mxu2 %v10969_v60  ;;  %5907 = vmatpush.bf16.msrb.mxu3 %v9219_v58  ;;  %v10319_v58 = vld [vmem:[#allocation12 + $0x934] sm:$0xf] }
 0x28a   :  { %5893 = vmatpush.bf16.msrb.mxu2 %v8995_v36  ;;  %5869 = vmatpush.bf16.msrb.mxu0 %v8435_v2  ;;  %v10242_v36 = vld [vmem:[#allocation12 + $0x6cc] sm:$0xf]  ;;  %v8712_v2 = vld [vmem:[#allocation12 + $0x674] sm:$0xf0] }
 0x28b   :  { %v8771_v3 = vor.u32 %v10242_v36, %v8768_v1  ;;  %v8715_v26 = vor.u32 %v10228_v18, %v8712_v2  ;;  %v9048_v1 = vld [vmem:[#allocation12 + $0x914] sm:$0xf0]  ;;  %v9020_v18 = vld [vmem:[#allocation12 + $0x8dc] sm:$0xf0] }
 0x28c   :  { %v2734_v61 = vpop.f32.mrf.mxu2 }
 0x28d   :  { %5879 = vmatpush.bf16.msrb.mxu1 %v8771_v3  ;;  %5908 = vmatpush.bf16.msrb.mxu3 %v9191_v8  ;;  %v2735_v30 = vadd.f32 %v2734_v61, %v1099_v20  ;;  %v8631_v3 = vor.u32 %v10207_v6, %v8628_v46  ;;  %v8018_v8 = vld [vmem:[#allocation12 + $0xe8] sm:$0xf]  ;;  %v10200_v61 = vld [vmem:[#allocation12 + $0x57c] sm:$0xf]  ;;  %v1100_v6 = vperm.slane %v10994_v19, 7 }
 0x28e   :  { %5894 = vmatpush.bf16.msrb.mxu2 %v8967_v10  ;;  %5870 = vmatpush.bf16.msrb.mxu0 %v8407_v49  ;;  %v9160_v10 = vld [vmem:[#allocation12 + $0x9f4] sm:$0xf0]  ;;  %v8102_v49 = vld [vmem:[#allocation12 + $0x190] sm:$0xf]  ;;  %v2750_v36 = vpop.f32.mrf.mxu3 }
 0x28f   :  { %v9163_v31 = vor.u32 %v10340_v16, %v9160_v10  ;;  %v8103_v35 = vor.u32 %v10078_v28, %v8102_v49  ;;  %v2749_v52 = vadd.f32 %v2748_v42, %v2735_v30  ;;  %v9051_v10 = vor.u32 %v10312_v5, %v9048_v1  ;;  %v8326_v49 = vld [vmem:[#allocation12 + $0x350] sm:$0xf]  ;;  %v10134_v28 = vld [vmem:[#allocation12 + $0x368] sm:$0xf0]  ;;  %v10193_v42 = vld [vmem:[#allocation12 + $0x544] sm:$0xf] }
 0x290   :  { %v2776_v50 = vpop.f32.mrf.mxu1  ;;  %v8572_v30 = vld [vmem:[#allocation12 + $0x55c] sm:$0xf0]  ;;  %v8327_v39 = vor.u32 %v10134_v28, %v8326_v49  ;;  %v7906_v5 = vld [vmem:[#allocation12 + $0x8] sm:$0xf]  ;;  %v10029_v1 = vld [vmem:[#allocation12 + $0x20] sm:$0xf0] }
 0x291   :  { %5880 = vmatpush.bf16.msrb.mxu1 %v8743_v12  ;;  %5909 = vmatpush.bf16.msrb.mxu3 %v9163_v31  ;;  %v10305_v12 = vld [vmem:[#allocation12 + $0x8c4] sm:$0xf]  ;;  %v9440_v31 = vld [vmem:[#allocation12 + $0xc24] sm:$0xf0]  ;;  %v10375_v28 = vld [vmem:[#allocation12 + $0xaf4] sm:$0xf] }
 0x292   :  { %5895 = vmatpush.bf16.msrb.mxu2 %v8939_v9  ;;  %5871 = vmatpush.bf16.msrb.mxu0 %v8379_v24  ;;  %v8827_v9 = vor.u32 %v10256_v11, %v8824_v15  ;;  %v8656_v24 = vld [vmem:[#allocation12 + $0x604] sm:$0xf0]  ;;  %v10057_v11 = vld [vmem:[#allocation12 + $0x100] sm:$0xf0]  ;;  %v8600_v15 = vld [vmem:[#allocation12 + $0x594] sm:$0xf0]  ;;  %v9023_v51 = vor.u32 %v10305_v12, %v9020_v18 }
 0x293   :  { %v8659_v14 = vor.u32 %v10214_v48, %v8656_v24  ;;  %v8603_v21 = vor.u32 %v10200_v61, %v8600_v15  ;;  %v10127_v48 = vld [vmem:[#allocation12 + $0x330] sm:$0xf0]  ;;  %v8575_v24 = vor.u32 %v10193_v42, %v8572_v30  ;;  %v7907_v15 = vor.u32 %v10029_v1, %v7906_v5  ;;  %v9300_v30 = vld [vmem:[#allocation12 + $0xb0c] sm:$0xf0]  ;;  %v10466_v1 = vld [vmem:[#allocation12 + $0xdcc] sm:$0xf] }
 0x295   :  { %5881 = vmatpush.bf16.msrb.mxu1 %v8715_v26  ;;  %5910 = vmatpush.bf16.msrb.mxu3 %v9135_v38  ;;  %v10050_v26 = vld [vmem:[#allocation12 + $0xc8] sm:$0xf0] }
 0x296   :  { %5896 = vmatpush.bf16.msrb.mxu2 %v8911_v44  ;;  %5872 = vmatpush.bf16.msrb.mxu0 %v8351_v0  ;;  %v2736_v44 = vpop.f32.mrf.mxu2  ;;  %v2762_v45 = vpop.f32.mrf.mxu0  ;;  %v9079_v0 = vor.u32 %v10319_v58, %v9076_v59  ;;  %v10396_v59 = vld [vmem:[#allocation12 + $0xb9c] sm:$0xf] }
 0x297   :  { %v2737_v62 = vadd.f32 %v2736_v44, %v1099_v20  ;;  %v2763_v63 = vadd.f32 %v2762_v45, %v2749_v52  ;;  %v8019_v20 = vor.u32 %v10057_v11, %v8018_v8  ;;  %v9412_v44 = vld [vmem:[#allocation12 + $0xbec] sm:$0xf0]  ;;  %v8298_v45 = vld [vmem:[#allocation12 + $0x318] sm:$0xf] }
 0x298   :  { %5859 = vmatmul.bf16.vlgmr.msra.gmra.mxu3 %v10957_v32  ;;  %v2778_v2 = vpop.f32.mrf.mxu1  ;;  %v8299_v58 = vor.u32 %v10127_v48, %v8298_v45  ;;  %v8998_v11 = vld [vmem:[#allocation12 + $0x890] sm:$0xf] }
 0x299   :  { %5882 = vmatpush.bf16.msrb.mxu1 %v8687_v40  ;;  %5911 = vmatpush.bf16.msrb.mxu3 %v9107_v43  ;;  %v2777_v4 = vadd.f32 %v2776_v50, %v2763_v63  ;;  %v10403_v40 = vld [vmem:[#allocation12 + $0xbd4] sm:$0xf]  ;;  %v7962_v50 = vld [vmem:[#allocation12 + $0x78] sm:$0xf] }
 0x29a   :  { %5897 = vmatpush.bf16.msrb.mxu2 %v8883_v54  ;;  %v8075_v54 = vor.u32 %v10071_v17, %v8074_v55  ;;  %v10043_v55 = vld [vmem:[#allocation12 + $0x90] sm:$0xf0]  ;;  %v9384_v63 = vld [vmem:[#allocation12 + $0xbb4] sm:$0xf0] }
 0x29b   :  { %v2859_v22 = vmul.f32 0.2, %v2777_v4  ;;  %vm2843_vm8 = vcmp.gt.f32.partialorder %v2777_v4, 0.0  ;;  %v7963_v52 = vor.u32 %v10043_v55, %v7962_v50  ;;  %v10368_v55 = vld [vmem:[#allocation12 + $0xabc] sm:$0xf] }
 0x29d   :  { %5883 = vmatpush.bf16.msrb.mxu1 %v8659_v14  ;;  %5912 = vmatpush.bf16.msrb.mxu3 %v9079_v0  ;;  %v2875_v38 = vsel %vm2843_vm8, %v2777_v4, %v2859_v22  ;;  %v7934_v14 = vld [vmem:[#allocation12 + $0x40] sm:$0xf]  ;;  %v9387_v0 = vor.u32 %v10396_v59, %v9384_v63  ;;  %v8242_v4 = vld [vmem:[#allocation12 + $0x2a8] sm:$0xf]  ;;  %v10295_v22 = vld [vmem:[#allocation12 + $0x870] sm:$0xf0] }
 0x29e   :  { %5898 = vmatpush.bf16.msrb.mxu2 %v8855_v7  ;;  %v2751_v7 = vadd.f32 %v2750_v36, %v2737_v62  ;;  %v2764_v13 = vpop.f32.mrf.mxu0  ;;  %v10036_v62 = vld [vmem:[#allocation12 + $0x58] sm:$0xf0]  ;;  %v8271_v36 = vor.u32 %v10120_v41, %v8270_v57  ;;  %v10281_v59 = vld [vmem:[#allocation12 + $0x800] sm:$0xf0] }
 0x29f   :  { %v7935_v46 = vor.u32 %v10036_v62, %v7934_v14  ;;  %v10361_v62 = vld [vmem:[#allocation12 + $0xa84] sm:$0xf] }
 0x2a0   :  { %v2765_v16 = vadd.f32 %v2764_v13, %v2751_v7  ;;  %v10113_v7 = vld [vmem:[#allocation12 + $0x2c0] sm:$0xf0]  ;;  %v10302_v13 = vld [vmem:[#allocation12 + $0x8a8] sm:$0xf0] }
 0x2a1   :  { %5884 = vmatpush.bf16.msrb.mxu1 %v8631_v3  ;;  %5913 = vmatpush.bf16.msrb.mxu3 %v9051_v10  ;;  %v9356_v3 = vld [vmem:[#allocation12 + $0xb7c] sm:$0xf0]  ;;  %v10382_v10 = vld [vmem:[#allocation12 + $0xb2c] sm:$0xf]  ;;  %v8999_v18 = vor.u32 %v10302_v13, %v8998_v11 }
 0x2a2   :  { %5899 = vmatpush.bf16.msrb.mxu2 %v8827_v9  ;;  %v10410_v9 = vld [vmem:[#allocation12 + $0xc0c] sm:$0xf]  ;;  %v2779_v25 = vadd.f32 %v2778_v2, %v2765_v16  ;;  %v8243_v16 = vor.u32 %v10113_v7, %v8242_v4  ;;  %v9328_v2 = vld [vmem:[#allocation12 + $0xb44] sm:$0xf0]  ;;  %v8550_v4 = vld [vmem:[#allocation12 + $0x510] sm:$0xf] }
 0x2a3   :  { %v9443_v37 = vor.u32 %v10410_v9, %v9440_v31  ;;  %v10106_v9 = vld [vmem:[#allocation12 + $0x288] sm:$0xf0] }
 0x2a4   :  { %vm2851_vm9 = vcmp.gt.f32.partialorder %v2779_v25, 0.0  ;;  %v2867_v27 = vmul.f32 0.2, %v2779_v25  ;;  %v10190_v7 = vld [vmem:[#allocation12 + $0x528] sm:$0xf0] }
 0x2a5   :  { %5885 = vmatpush.bf16.msrb.mxu1 %v8603_v21  ;;  %5914 = vmatpush.bf16.msrb.mxu3 %v9023_v51  ;;  %v8970_v21 = vld [vmem:[#allocation12 + $0x858] sm:$0xf]  ;;  %v10274_v13 = vld [vmem:[#allocation12 + $0x7c8] sm:$0xf0] }
 0x2a6   :  { %5900 = vmatpush.bf16.msrb.mxu2 %v8799_v34  ;;  %v7991_v34 = vor.u32 %v10050_v26, %v7990_v29  ;;  %v2804_v8 = vpop.f32.mrf.mxu3  ;;  %v9331_v26 = vor.u32 %v10382_v10, %v9328_v2  ;;  %v8971_v51 = vor.u32 %v10295_v22, %v8970_v21  ;;  %v10183_v21 = vld [vmem:[#allocation12 + $0x4f0] sm:$0xf0] }
 0x2a8   :  { %5915 = vmatmul.bf16.vlgmr.msrb.gmra.mxu3 %v10991_v47 }
 0x2a9   :  { %5901 = vmatmul.bf16.vlgmr.msrb.gmra.mxu2 %v10986_v53  ;;  %5963 = vmatpush.bf16.msra.mxu3 %v8327_v39 }
 0x2aa   :  { %5949 = vmatpush.bf16.msra.mxu2 %v8103_v35  ;;  %v2883_v35 = vsel %vm2851_vm9, %v2779_v25, %v2867_v27  ;;  %5886 = vmatpush.bf16.msrb.mxu1 %v8575_v24  ;;  %v9272_v24 = vld [vmem:[#allocation12 + $0xad4] sm:$0xf0] }
 0x2ab   :  { %v10999_v17 = vpack.c.bf16 %v2883_v35, %v2875_v38  ;;  %v10099_v38 = vld [vmem:[#allocation12 + $0x250] sm:$0xf0]  ;;  %v8942_v35 = vld [vmem:[#allocation12 + $0x820] sm:$0xf]  ;;  %v9275_v57 = vor.u32 %v10368_v55, %v9272_v24 }
 0x2ac   :  { %v2790_v43 = vpop.f32.mrf.mxu2  ;;  %v9166_v55 = vld [vmem:[#allocation12 + $0x9e0] sm:$0xf] }
 0x2ad   :  { %5817 = vmatmul.bf16.vlgmr.msra.gmra.mxu0 %v10999_v17  ;;  %5964 = vmatpush.bf16.msra.mxu3 %v8299_v58  ;;  %v2791_v61 = vadd.f32 %v2790_v43, %v1100_v6  ;;  %v10092_v43 = vld [vmem:[#allocation12 + $0x218] sm:$0xf0]  ;;  %v8914_v58 = vld [vmem:[#allocation12 + $0x7e8] sm:$0xf] }
 0x2ae   :  { %5950 = vmatpush.bf16.msra.mxu2 %v8075_v54  ;;  %5921 = vmatpush.bf16.msra.mxu0 %v9443_v37  ;;  %v9415_v54 = vor.u32 %v10403_v40, %v9412_v44  ;;  %v10288_v37 = vld [vmem:[#allocation12 + $0x838] sm:$0xf0]  ;;  %v2806_v39 = vpop.f32.mrf.mxu3  ;;  %v9303_v40 = vor.u32 %v10375_v28, %v9300_v30  ;;  %v8915_v5 = vor.u32 %v10281_v59, %v8914_v58  ;;  %v9194_v28 = vld [vmem:[#allocation12 + $0xa18] sm:$0xf]  ;;  %v10169_v58 = vld [vmem:[#allocation12 + $0x480] sm:$0xf0] }
 0x2af   :  { %v2805_v25 = vadd.f32 %v2804_v8, %v2791_v61  ;;  %v8943_v48 = vor.u32 %v10288_v37, %v8942_v35  ;;  %v8886_v8 = vld [vmem:[#allocation12 + $0x7b0] sm:$0xf]  ;;  %v10176_v35 = vld [vmem:[#allocation12 + $0x4b8] sm:$0xf0] }
 0x2b0   :  { %v2832_v12 = vpop.f32.mrf.mxu1 }
 0x2b1   :  { %5965 = vmatpush.bf16.msra.mxu3 %v8271_v36 }
 0x2b2   :  { %5951 = vmatpush.bf16.msra.mxu2 %v8047_v23  ;;  %5922 = vmatpush.bf16.msra.mxu0 %v9415_v54  ;;  %v10389_v23 = vld [vmem:[#allocation12 + $0xb64] sm:$0xf] }
 0x2b3   :  { %v9359_v19 = vor.u32 %v10389_v23, %v9356_v3  ;;  %v9664_v3 = vld [vmem:[#allocation12 + $0xde4] sm:$0xf0] }
 0x2b4   :  { %v2792_v31 = vpop.f32.mrf.mxu2 }
 0x2b5   :  { %5966 = vmatpush.bf16.msra.mxu3 %v8243_v16  ;;  %v2793_v42 = vadd.f32 %v2792_v31, %v1100_v6  ;;  %v9244_v6 = vld [vmem:[#allocation12 + $0xa9c] sm:$0xf0]  ;;  %v10358_v16 = vld [vmem:[#allocation12 + $0xa68] sm:$0xf0]  ;;  %v10459_v31 = vld [vmem:[#allocation12 + $0xd94] sm:$0xf] }
 0x2b6   :  { %5952 = vmatpush.bf16.msra.mxu2 %v8019_v20  ;;  %5923 = vmatpush.bf16.msra.mxu0 %v9387_v0  ;;  %v8214_v20 = vld [vmem:[#allocation12 + $0x270] sm:$0xf]  ;;  %v2818_v29 = vpop.f32.mrf.mxu0  ;;  %v10085_v0 = vld [vmem:[#allocation12 + $0x1e0] sm:$0xf0]  ;;  %v9247_v61 = vor.u32 %v10361_v62, %v9244_v6 }
 0x2b7   :  { %v8215_v49 = vor.u32 %v10106_v9, %v8214_v20  ;;  %v2819_v27 = vadd.f32 %v2818_v29, %v2805_v25  ;;  %v2807_v45 = vadd.f32 %v2806_v39, %v2793_v42  ;;  %v9667_v20 = vor.u32 %v10466_v1, %v9664_v3  ;;  %v8522_v29 = vld [vmem:[#allocation12 + $0x4d8] sm:$0xf]  ;;  %v9636_v25 = vld [vmem:[#allocation12 + $0xdac] sm:$0xf0]  ;;  %v10351_v42 = vld [vmem:[#allocation12 + $0xa30] sm:$0xf0] }
 0x2b8   :  { %v2834_v63 = vpop.f32.mrf.mxu1  ;;  %v8887_v9 = vor.u32 %v10274_v13, %v8886_v8  ;;  %v9195_v37 = vor.u32 %v10351_v42, %v9194_v28  ;;  %v9608_v39 = vld [vmem:[#allocation12 + $0xd74] sm:$0xf0]  ;;  %v10253_v62 = vld [vmem:[#allocation12 + $0x720] sm:$0xf0]  ;;  %v8104_v6 = vld [vmem:[#allocation12 + $0x1ac] sm:$0xf0] }
 0x2b9   :  { %5967 = vmatpush.bf16.msra.mxu3 %v8215_v49  ;;  %v2833_v44 = vadd.f32 %v2832_v12, %v2819_v27  ;;  %v10267_v49 = vld [vmem:[#allocation12 + $0x790] sm:$0xf0]  ;;  %v8523_v27 = vor.u32 %v10183_v21, %v8522_v29  ;;  %v9110_v8 = vld [vmem:[#allocation12 + $0x970] sm:$0xf]  ;;  %v10068_v13 = vld [vmem:[#allocation12 + $0x15c] sm:$0xf] }
 0x2ba   :  { %5953 = vmatpush.bf16.msra.mxu2 %v7991_v34  ;;  %5924 = vmatpush.bf16.msra.mxu0 %v9359_v19  ;;  %v8186_v34 = vld [vmem:[#allocation12 + $0x238] sm:$0xf]  ;;  %v9222_v19 = vld [vmem:[#allocation12 + $0xa50] sm:$0xf]  ;;  %v10323_v29 = vld [vmem:[#allocation12 + $0x950] sm:$0xf0] }
 0x2bb   :  { %v8187_v50 = vor.u32 %v10099_v38, %v8186_v34  ;;  %v2860_v36 = vmul.f32 0.2, %v2833_v44  ;;  %vm2844_vm10 = vcmp.gt.f32.partialorder %v2833_v44, 0.0  ;;  %v9223_v22 = vor.u32 %v10358_v16, %v9222_v19  ;;  %v10452_v34 = vld [vmem:[#allocation12 + $0xd5c] sm:$0xf] }
 0x2bc   :  { %v8494_v38 = vld [vmem:[#allocation12 + $0x4a0] sm:$0xf]  ;;  %v9611_v24 = vor.u32 %v10452_v34, %v9608_v39  ;;  %v10431_v16 = vld [vmem:[#allocation12 + $0xcb4] sm:$0xf]  ;;  %v10061_v21 = vld [vmem:[#allocation12 + $0x124] sm:$0xf] }
 0x2bd   :  { %5873 = vmatmul.bf16.vlgmr.msrb.gmra.mxu0 %v10982_v56  ;;  %5968 = vmatpush.bf16.msra.mxu3 %v8187_v50  ;;  %v2876_v10 = vsel %vm2844_vm10, %v2833_v44, %v2860_v36  ;;  %v10260_v50 = vld [vmem:[#allocation12 + $0x758] sm:$0xf0]  ;;  %v9496_v28 = vld [vmem:[#allocation12 + $0xc94] sm:$0xf0]  ;;  %v9054_v34 = vld [vmem:[#allocation12 + $0x900] sm:$0xf] }
 0x2be   :  { %5954 = vmatpush.bf16.msra.mxu2 %v7963_v52  ;;  %5925 = vmatpush.bf16.msra.mxu0 %v9331_v26  ;;  %v8158_v52 = vld [vmem:[#allocation12 + $0x200] sm:$0xf]  ;;  %v2820_v54 = vpop.f32.mrf.mxu0  ;;  %v8858_v26 = vld [vmem:[#allocation12 + $0x778] sm:$0xf]  ;;  %v10344_v44 = vld [vmem:[#allocation12 + $0x9f8] sm:$0xf0] }
 0x2bf   :  { %v2821_v14 = vadd.f32 %v2820_v54, %v2807_v45  ;;  %v8159_v41 = vor.u32 %v10092_v43, %v8158_v52  ;;  %v8859_v30 = vor.u32 %v10267_v49, %v8858_v26  ;;  %v8495_v45 = vor.u32 %v10176_v35, %v8494_v38  ;;  %v9580_v43 = vld [vmem:[#allocation12 + $0xd3c] sm:$0xf0]  ;;  %v8466_v54 = vld [vmem:[#allocation12 + $0x468] sm:$0xf]  ;;  %v10424_v49 = vld [vmem:[#allocation12 + $0xc7c] sm:$0xf] }
 0x2c0   :  { %v9167_v59 = vor.u32 %v10344_v44, %v9166_v55  ;;  %v10316_v38 = vld [vmem:[#allocation12 + $0x918] sm:$0xf0]  ;;  %v10054_v35 = vld [vmem:[#allocation12 + $0xec] sm:$0xf]  ;;  %v9499_v39 = vor.u32 %v10424_v49, %v9496_v28  ;;  %v9468_v55 = vld [vmem:[#allocation12 + $0xc5c] sm:$0xf0] }
 0x2c1   :  { %v2835_v23 = vadd.f32 %v2834_v63, %v2821_v14  ;;  %5969 = vmatpush.bf16.msra.mxu3 %v8159_v41  ;;  %v8802_v14 = vld [vmem:[#allocation12 + $0x708] sm:$0xf]  ;;  %v10075_v41 = vld [vmem:[#allocation12 + $0x194] sm:$0xf] }
 0x2c2   :  { %5955 = vmatpush.bf16.msra.mxu2 %v7935_v46  ;;  %5926 = vmatpush.bf16.msra.mxu0 %v9303_v40  ;;  %v8130_v46 = vld [vmem:[#allocation12 + $0x1c8] sm:$0xf]  ;;  %v8830_v40 = vld [vmem:[#allocation12 + $0x740] sm:$0xf]  ;;  %v8803_v36 = vor.u32 %v10253_v62, %v8802_v14  ;;  %v8107_v3 = vor.u32 %v10075_v41, %v8104_v6  ;;  %v10414_v14 = vld [vmem:[#allocation12 + $0xc28] sm:$0xf0] }
 0x2c3   :  { %vm2852_vm11 = vcmp.gt.f32.partialorder %v2835_v23, 0.0  ;;  %v2868_v11 = vmul.f32 0.2, %v2835_v23  ;;  %v8831_v52 = vor.u32 %v10260_v50, %v8830_v40  ;;  %v9138_v63 = vld [vmem:[#allocation12 + $0x9a8] sm:$0xf] }
 0x2c4   :  { %v10417_v50 = vld [vmem:[#allocation12 + $0xc44] sm:$0xf]  ;;  %v8354_v44 = vld [vmem:[#allocation12 + $0x388] sm:$0xf]  ;;  %v10047_v62 = vld [vmem:[#allocation12 + $0xb4] sm:$0xf] }
 0x2c5   :  { %v2884_v12 = vsel %vm2852_vm11, %v2835_v23, %v2868_v11  ;;  %v10438_v23 = vld [vmem:[#allocation12 + $0xcec] sm:$0xf]  ;;  %v10131_v6 = vld [vmem:[#allocation12 + $0x354] sm:$0xf]  ;;  %v8690_v49 = vld [vmem:[#allocation12 + $0x628] sm:$0xf] }
 0x2c6   :  { %5956 = vmatpush.bf16.msra.mxu2 %v7907_v15  ;;  %5927 = vmatpush.bf16.msra.mxu0 %v9275_v57  ;;  %v8131_v15 = vor.u32 %v10085_v0, %v8130_v46  ;;  %v11006_v2 = vpack.c.bf16 %v2884_v12, %v2876_v10  ;;  %v10337_v57 = vld [vmem:[#allocation12 + $0x9c0] sm:$0xf0]  ;;  %v8467_v46 = vor.u32 %v10169_v58, %v8466_v54  ;;  %v10330_v11 = vld [vmem:[#allocation12 + $0x988] sm:$0xf0]  ;;  %v9524_v10 = vld [vmem:[#allocation12 + $0xccc] sm:$0xf0] }
 0x2c7   :  { %v9139_v1 = vor.u32 %v10337_v57, %v9138_v63  ;;  %v9111_v12 = vor.u32 %v10330_v11, %v9110_v8  ;;  %v8774_v54 = vld [vmem:[#allocation12 + $0x6d0] sm:$0xf]  ;;  %v10246_v58 = vld [vmem:[#allocation12 + $0x6e8] sm:$0xf0]  ;;  %v9471_v57 = vor.u32 %v10417_v50, %v9468_v55  ;;  %v10407_v8 = vld [vmem:[#allocation12 + $0xbf0] sm:$0xf0] }
 0x2c8   :  { %5970 = vmatpush.bf16.msra.mxu3 %v8131_v15  ;;  %5831 = vmatmul.bf16.vlgmr.msra.gmra.mxu1 %v11006_v2  ;;  %v7992_v63 = vld [vmem:[#allocation12 + $0xcc] sm:$0xf0]  ;;  %v10040_v11 = vld [vmem:[#allocation12 + $0x7c] sm:$0xf] }
 0x2c9   :  { %5957 = vmatmul.bf16.vlgmr.msra.gmra.mxu2 %v10969_v60  ;;  %5935 = vmatpush.bf16.msra.mxu1 %v9667_v20  ;;  %v8410_v20 = vld [vmem:[#allocation12 + $0x3f8] sm:$0xf]  ;;  %v9000_v50 = vld [vmem:[#allocation12 + $0x8ac] sm:$0xf0] }
 0x2ca   :  { %6005 = vmatpush.bf16.msrb.mxu2 %v8999_v18  ;;  %v8551_v18 = vor.u32 %v10190_v7, %v8550_v4  ;;  %5928 = vmatpush.bf16.msra.mxu0 %v9247_v61  ;;  %v8438_v4 = vld [vmem:[#allocation12 + $0x430] sm:$0xf]  ;;  %v10162_v7 = vld [vmem:[#allocation12 + $0x448] sm:$0xf0]  ;;  %v8076_v61 = vld [vmem:[#allocation12 + $0x174] sm:$0xf0] }
 0x2cb   :  { %5971 = vmatmul.bf16.vlgmr.msra.gmra.mxu3 %v10957_v32  ;;  %v8439_v19 = vor.u32 %v10162_v7, %v8438_v4  ;;  %v9418_v4 = vld [vmem:[#allocation12 + $0xbd8] sm:$0xf] }
 0x2cc   :  { %6019 = vmatpush.bf16.msrb.mxu3 %v9223_v22  ;;  %v8048_v22 = vld [vmem:[#allocation12 + $0x13c] sm:$0xf0] }
 0x2cd   :  { %5929 = vmatmul.bf16.vlgmr.msra.gmra.mxu0 %v10999_v17 }
 0x2ce   :  { %6006 = vmatpush.bf16.msrb.mxu2 %v8971_v51  ;;  %5977 = vmatpush.bf16.msrb.mxu0 %v8551_v18  ;;  %v9639_v51 = vor.u32 %v10459_v31, %v9636_v25  ;;  %v8079_v18 = vor.u32 %v10068_v13, %v8076_v61  ;;  %v9082_v31 = vld [vmem:[#allocation12 + $0x938] sm:$0xf]  ;;  %v9527_v25 = vor.u32 %v10431_v16, %v9524_v10  ;;  %v10124_v61 = vld [vmem:[#allocation12 + $0x31c] sm:$0xf] }
 0x2cf   :  { %v9083_v42 = vor.u32 %v10323_v29, %v9082_v31  ;;  %v7964_v13 = vld [vmem:[#allocation12 + $0x94] sm:$0xf0]  ;;  %v9419_v16 = vor.u32 %v10407_v8, %v9418_v4  ;;  %v10400_v31 = vld [vmem:[#allocation12 + $0xbb8] sm:$0xf0]  ;;  %v10033_v29 = vld [vmem:[#allocation12 + $0x44] sm:$0xf] }
 0x2d0   :  { %5936 = vmatpush.bf16.msra.mxu1 %v9639_v51  ;;  %6020 = vmatpush.bf16.msrb.mxu3 %v9195_v37  ;;  %v8382_v51 = vld [vmem:[#allocation12 + $0x3c0] sm:$0xf]  ;;  %v8020_v37 = vld [vmem:[#allocation12 + $0x104] sm:$0xf0]  ;;  %v7967_v10 = vor.u32 %v10040_v11, %v7964_v13  ;;  %v10285_v4 = vld [vmem:[#allocation12 + $0x824] sm:$0xf] }
 0x2d1   :  { %v8606_v13 = vld [vmem:[#allocation12 + $0x580] sm:$0xf] }
 0x2d2   :  { %6007 = vmatpush.bf16.msrb.mxu2 %v8943_v48  ;;  %5978 = vmatpush.bf16.msrb.mxu0 %v8523_v27  ;;  %v10445_v48 = vld [vmem:[#allocation12 + $0xd24] sm:$0xf]  ;;  %v8051_v27 = vor.u32 %v10061_v21, %v8048_v22  ;;  %v7936_v21 = vld [vmem:[#allocation12 + $0x5c] sm:$0xf0] }
 0x2d3   :  { %v9583_v0 = vor.u32 %v10445_v48, %v9580_v43  ;;  %v8023_v48 = vor.u32 %v10054_v35, %v8020_v37  ;;  %v10309_v43 = vld [vmem:[#allocation12 + $0x8e0] sm:$0xf0]  ;;  %v7908_v35 = vld [vmem:[#allocation12 + $0x24] sm:$0xf0]  ;;  %v10110_v37 = vld [vmem:[#allocation12 + $0x2ac] sm:$0xf] }
 0x2d4   :  { %5937 = vmatpush.bf16.msra.mxu1 %v9611_v24  ;;  %6021 = vmatpush.bf16.msrb.mxu3 %v9167_v59  ;;  %v10141_v24 = vld [vmem:[#allocation12 + $0x3a0] sm:$0xf0]  ;;  %v9446_v59 = vld [vmem:[#allocation12 + $0xc10] sm:$0xf] }
 0x2d5   :  { %v8355_v41 = vor.u32 %v10141_v24, %v8354_v44  ;;  %v10117_v22 = vld [vmem:[#allocation12 + $0x2e4] sm:$0xf]  ;;  %v10218_v24 = vld [vmem:[#allocation12 + $0x608] sm:$0xf0] }
 0x2d6   :  { %6008 = vmatpush.bf16.msrb.mxu2 %v8915_v5  ;;  %5979 = vmatpush.bf16.msrb.mxu0 %v8495_v45  ;;  %v9552_v5 = vld [vmem:[#allocation12 + $0xd04] sm:$0xf0]  ;;  %v9055_v45 = vor.u32 %v10316_v38, %v9054_v34  ;;  %v10026_v38 = vld [vmem:[#allocation12 + $0xc] sm:$0xf] }
 0x2d7   :  { %v9555_v15 = vor.u32 %v10438_v23, %v9552_v5  ;;  %v9447_v23 = vor.u32 %v10414_v14, %v9446_v59  ;;  %v7995_v5 = vor.u32 %v10047_v62, %v7992_v63  ;;  %v10103_v59 = vld [vmem:[#allocation12 + $0x274] sm:$0xf]  ;;  %v8216_v14 = vld [vmem:[#allocation12 + $0x28c] sm:$0xf0]  ;;  %v10292_v62 = vld [vmem:[#allocation12 + $0x85c] sm:$0xf] }
 0x2d8   :  { %5938 = vmatpush.bf16.msra.mxu1 %v9583_v0  ;;  %6022 = vmatpush.bf16.msrb.mxu3 %v9139_v1  ;;  %v8746_v1 = vld [vmem:[#allocation12 + $0x698] sm:$0xf] }
 0x2d9   :  { %5887 = vmatmul.bf16.vlgmr.msrb.gmra.mxu1 %v10978_v33  ;;  %v8972_v63 = vld [vmem:[#allocation12 + $0x874] sm:$0xf0] }
 0x2da   :  { %6009 = vmatpush.bf16.msrb.mxu2 %v8887_v9  ;;  %5980 = vmatpush.bf16.msrb.mxu0 %v8467_v46  ;;  %v10155_v9 = vld [vmem:[#allocation12 + $0x410] sm:$0xf0]  ;;  %v8328_v46 = vld [vmem:[#allocation12 + $0x36c] sm:$0xf0] }
 0x2db   :  { %v8411_v26 = vor.u32 %v10155_v9, %v8410_v20  ;;  %v8331_v7 = vor.u32 %v10131_v6, %v8328_v46  ;;  %v9390_v20 = vld [vmem:[#allocation12 + $0xba0] sm:$0xf]  ;;  %v8634_v6 = vld [vmem:[#allocation12 + $0x5b8] sm:$0xf]  ;;  %v10211_v46 = vld [vmem:[#allocation12 + $0x5d0] sm:$0xf0] }
 0x2dc   :  { %5939 = vmatpush.bf16.msra.mxu1 %v9555_v15  ;;  %6023 = vmatpush.bf16.msrb.mxu3 %v9111_v12  ;;  %v8300_v15 = vld [vmem:[#allocation12 + $0x334] sm:$0xf0]  ;;  %v8718_v12 = vld [vmem:[#allocation12 + $0x660] sm:$0xf]  ;;  %v9391_v28 = vor.u32 %v10400_v31, %v9390_v20  ;;  %v8635_v8 = vor.u32 %v10211_v46, %v8634_v6  ;;  %v10278_v20 = vld [vmem:[#allocation12 + $0x7ec] sm:$0xf] }
 0x2dd   :  { %v8303_v9 = vor.u32 %v10124_v61, %v8300_v15  ;;  %v10204_v61 = vld [vmem:[#allocation12 + $0x598] sm:$0xf0]  ;;  %v9614_v46 = vld [vmem:[#allocation12 + $0xd60] sm:$0xf] }
 0x2de   :  { %6010 = vmatpush.bf16.msrb.mxu2 %v8859_v30  ;;  %5981 = vmatpush.bf16.msrb.mxu0 %v8439_v19  ;;  %v10148_v30 = vld [vmem:[#allocation12 + $0x3d8] sm:$0xf0]  ;;  %v8607_v31 = vor.u32 %v10204_v61, %v8606_v13  ;;  %v9586_v61 = vld [vmem:[#allocation12 + $0xd28] sm:$0xf] }
 0x2df   :  { %v8383_v40 = vor.u32 %v10148_v30, %v8382_v51  ;;  %v9362_v51 = vld [vmem:[#allocation12 + $0xb68] sm:$0xf]  ;;  %v10393_v30 = vld [vmem:[#allocation12 + $0xb80] sm:$0xf0] }
 0x2e0   :  { %5940 = vmatpush.bf16.msra.mxu1 %v9527_v25  ;;  %6024 = vmatpush.bf16.msrb.mxu3 %v9083_v42  ;;  %v8272_v25 = vld [vmem:[#allocation12 + $0x2fc] sm:$0xf0]  ;;  %v7939_v42 = vor.u32 %v10033_v29, %v7936_v21  ;;  %v9363_v44 = vor.u32 %v10393_v30, %v9362_v51  ;;  %v8578_v29 = vld [vmem:[#allocation12 + $0x548] sm:$0xf]  ;;  %v10197_v21 = vld [vmem:[#allocation12 + $0x560] sm:$0xf0] }
 0x2e1   :  { %v8275_v34 = vor.u32 %v10117_v22, %v8272_v25  ;;  %v9250_v25 = vld [vmem:[#allocation12 + $0xa88] sm:$0xf]  ;;  %v9670_v51 = vld [vmem:[#allocation12 + $0xdd0] sm:$0xf]  ;;  %v10470_v30 = vld [vmem:[#allocation12 + $0xde8] sm:$0xf0] }
 0x2e2   :  { %6011 = vmatpush.bf16.msrb.mxu2 %v8831_v52  ;;  %5982 = vmatpush.bf16.msrb.mxu0 %v8411_v26  ;;  %v9026_v52 = vld [vmem:[#allocation12 + $0x8c8] sm:$0xf] }
 0x2e3   :  { %v9027_v0 = vor.u32 %v10309_v43, %v9026_v52 }
 0x2e4   :  { %5941 = vmatpush.bf16.msra.mxu1 %v9499_v39  ;;  %6025 = vmatpush.bf16.msrb.mxu3 %v9055_v45  ;;  %v8244_v39 = vld [vmem:[#allocation12 + $0x2c4] sm:$0xf0]  ;;  %v7911_v45 = vor.u32 %v10026_v38, %v7908_v35  ;;  %v8552_v38 = vld [vmem:[#allocation12 + $0x52c] sm:$0xf0]  ;;  %v10271_v35 = vld [vmem:[#allocation12 + $0x7b4] sm:$0xf] }
 0x2e5   :  { %v8247_v52 = vor.u32 %v10110_v37, %v8244_v39  ;;  %v8579_v37 = vor.u32 %v10197_v21, %v8578_v29  ;;  %v8888_v39 = vld [vmem:[#allocation12 + $0x7cc] sm:$0xf0]  ;;  %v8110_v21 = vld [vmem:[#allocation12 + $0x198] sm:$0xf] }
 0x2e6   :  { %6012 = vmatpush.bf16.msrb.mxu2 %v8803_v36  ;;  %5983 = vmatpush.bf16.msrb.mxu0 %v8383_v40  ;;  %v8775_v36 = vor.u32 %v10246_v58, %v8774_v54  ;;  %v10299_v40 = vld [vmem:[#allocation12 + $0x894] sm:$0xf]  ;;  %v9334_v54 = vld [vmem:[#allocation12 + $0xb30] sm:$0xf]  ;;  %v10386_v58 = vld [vmem:[#allocation12 + $0xb48] sm:$0xf0] }
 0x2e7   :  { %v9003_v43 = vor.u32 %v10299_v40, %v9000_v50  ;;  %v10355_v40 = vld [vmem:[#allocation12 + $0xa54] sm:$0xf]  ;;  %v9224_v50 = vld [vmem:[#allocation12 + $0xa6c] sm:$0xf0] }
 0x2e8   :  { %5942 = vmatpush.bf16.msra.mxu1 %v9471_v57  ;;  %6026 = vmatpush.bf16.msrb.mxu3 %v9027_v0  ;;  %v8219_v0 = vor.u32 %v10103_v59, %v8216_v14  ;;  %v8524_v59 = vld [vmem:[#allocation12 + $0x4f4] sm:$0xf0]  ;;  %v10264_v14 = vld [vmem:[#allocation12 + $0x77c] sm:$0xf] }
 0x2e9   :  { %6013 = vmatmul.bf16.vlgmr.msrb.gmra.mxu2 %v10986_v53 }
 0x2ea   :  { %6061 = vmatpush.bf16.msra.mxu2 %v8107_v3  ;;  %v10239_v3 = vld [vmem:[#allocation12 + $0x6b0] sm:$0xf0]  ;;  %5984 = vmatpush.bf16.msrb.mxu0 %v8355_v41  ;;  %v9335_v41 = vor.u32 %v10386_v58, %v9334_v54  ;;  %v9227_v54 = vor.u32 %v10355_v40, %v9224_v50  ;;  %v10180_v58 = vld [vmem:[#allocation12 + $0x4dc] sm:$0xf]  ;;  %v9530_v50 = vld [vmem:[#allocation12 + $0xcb8] sm:$0xf] }
 0x2eb   :  { %v8747_v19 = vor.u32 %v10239_v3, %v8746_v1  ;;  %6027 = vmatmul.bf16.vlgmr.msrb.gmra.mxu3 %v10991_v47  ;;  %5943 = vmatmul.bf16.vlgmr.msra.gmra.mxu1 %v11006_v2  ;;  %v10096_v1 = vld [vmem:[#allocation12 + $0x23c] sm:$0xf]  ;;  %v8188_v3 = vld [vmem:[#allocation12 + $0x254] sm:$0xf0]  ;;  %v8527_v6 = vor.u32 %v10180_v58, %v8524_v59  ;;  %v8054_v58 = vld [vmem:[#allocation12 + $0x128] sm:$0xf] }
 0x2ec   :  { %5991 = vmatpush.bf16.msrb.mxu1 %v8775_v36  ;;  %6075 = vmatpush.bf16.msra.mxu3 %v8331_v7  ;;  %v8975_v36 = vor.u32 %v10292_v62, %v8972_v63  ;;  %v8944_v7 = vld [vmem:[#allocation12 + $0x83c] sm:$0xf0]  ;;  %v8191_v15 = vor.u32 %v10096_v1, %v8188_v3  ;;  %v8860_v62 = vld [vmem:[#allocation12 + $0x794] sm:$0xf0]  ;;  %v10348_v63 = vld [vmem:[#allocation12 + $0xa1c] sm:$0xf] }
 0x2ed   :  { %5985 = vmatmul.bf16.vlgmr.msrb.gmra.mxu0 %v10982_v56  ;;  %v8496_v1 = vld [vmem:[#allocation12 + $0x4bc] sm:$0xf0]  ;;  %v10257_v3 = vld [vmem:[#allocation12 + $0x744] sm:$0xf] }
 0x2ee   :  { %6062 = vmatpush.bf16.msra.mxu2 %v8079_v18  ;;  %6033 = vmatpush.bf16.msra.mxu0 %v9447_v23  ;;  %v10232_v18 = vld [vmem:[#allocation12 + $0x678] sm:$0xf0]  ;;  %v9306_v23 = vld [vmem:[#allocation12 + $0xaf8] sm:$0xf]  ;;  %v10065_v59 = vld [vmem:[#allocation12 + $0x140] sm:$0xf0] }
 0x2ef   :  { %v8719_v26 = vor.u32 %v10232_v18, %v8718_v12  ;;  %v10089_v12 = vld [vmem:[#allocation12 + $0x204] sm:$0xf]  ;;  %v8160_v18 = vld [vmem:[#allocation12 + $0x21c] sm:$0xf0] }
 0x2f0   :  { %5992 = vmatpush.bf16.msrb.mxu1 %v8747_v19  ;;  %6076 = vmatpush.bf16.msra.mxu3 %v8303_v9  ;;  %v8947_v19 = vor.u32 %v10285_v4, %v8944_v7  ;;  %v8916_v9 = vld [vmem:[#allocation12 + $0x804] sm:$0xf0]  ;;  %v8832_v4 = vld [vmem:[#allocation12 + $0x75c] sm:$0xf0]  ;;  %v10341_v7 = vld [vmem:[#allocation12 + $0x9e4] sm:$0xf] }
 0x2f2   :  { %6063 = vmatpush.bf16.msra.mxu2 %v8051_v27  ;;  %6034 = vmatpush.bf16.msra.mxu0 %v9419_v16  ;;  %v10225_v27 = vld [vmem:[#allocation12 + $0x640] sm:$0xf0]  ;;  %v9278_v16 = vld [vmem:[#allocation12 + $0xac0] sm:$0xf] }
 0x2f3   :  { %v8691_v55 = vor.u32 %v10225_v27, %v8690_v49  ;;  %v10082_v49 = vld [vmem:[#allocation12 + $0x1cc] sm:$0xf]  ;;  %v8132_v27 = vld [vmem:[#allocation12 + $0x1e4] sm:$0xf0] }
 0x2f4   :  { %5993 = vmatpush.bf16.msrb.mxu1 %v8719_v26  ;;  %6077 = vmatpush.bf16.msra.mxu3 %v8275_v34  ;;  %v10365_v26 = vld [vmem:[#allocation12 + $0xaa0] sm:$0xf0]  ;;  %v10187_v34 = vld [vmem:[#allocation12 + $0x514] sm:$0xf] }
 0x2f6   :  { %6064 = vmatpush.bf16.msra.mxu2 %v8023_v48  ;;  %6035 = vmatpush.bf16.msra.mxu0 %v9391_v28  ;;  %v8662_v48 = vld [vmem:[#allocation12 + $0x5f0] sm:$0xf]  ;;  %v8163_v28 = vor.u32 %v10089_v12, %v8160_v18  ;;  %v8468_v12 = vld [vmem:[#allocation12 + $0x484] sm:$0xf0]  ;;  %v10250_v18 = vld [vmem:[#allocation12 + $0x70c] sm:$0xf] }
 0x2f7   :  { %v8663_v57 = vor.u32 %v10218_v24, %v8662_v48  ;;  %v8555_v48 = vor.u32 %v10187_v34, %v8552_v38  ;;  %v9642_v24 = vld [vmem:[#allocation12 + $0xd98] sm:$0xf]  ;;  %v10327_v34 = vld [vmem:[#allocation12 + $0x974] sm:$0xf]  ;;  %v9112_v38 = vld [vmem:[#allocation12 + $0x98c] sm:$0xf0] }
 0x2f8   :  { %5994 = vmatpush.bf16.msrb.mxu1 %v8691_v55  ;;  %6078 = vmatpush.bf16.msra.mxu3 %v8247_v52  ;;  %v9251_v55 = vor.u32 %v10365_v26, %v9250_v25  ;;  %v10463_v52 = vld [vmem:[#allocation12 + $0xdb0] sm:$0xf0]  ;;  %v9558_v26 = vld [vmem:[#allocation12 + $0xcf0] sm:$0xf] }
 0x2fa   :  { %6065 = vmatpush.bf16.msra.mxu2 %v7995_v5  ;;  %6036 = vmatpush.bf16.msra.mxu0 %v9363_v44  ;;  %v10379_v5 = vld [vmem:[#allocation12 + $0xb10] sm:$0xf0]  ;;  %v9671_v44 = vor.u32 %v10470_v30, %v9670_v51  ;;  %v8440_v51 = vld [vmem:[#allocation12 + $0x44c] sm:$0xf0] }
 0x2fb   :  { %v9307_v11 = vor.u32 %v10379_v5, %v9306_v23  ;;  %v10173_v5 = vld [vmem:[#allocation12 + $0x4a4] sm:$0xf] }
 0x2fc   :  { %5995 = vmatpush.bf16.msrb.mxu1 %v8663_v57  ;;  %6079 = vmatpush.bf16.msra.mxu3 %v8219_v0  ;;  %v9196_v57 = vld [vmem:[#allocation12 + $0xa34] sm:$0xf0]  ;;  %v10456_v0 = vld [vmem:[#allocation12 + $0xd78] sm:$0xf0]  ;;  %v8499_v13 = vor.u32 %v10173_v5, %v8496_v1  ;;  %v10058_v1 = vld [vmem:[#allocation12 + $0x108] sm:$0xf0] }
 0x2fd   :  { %v9199_v23 = vor.u32 %v10348_v63, %v9196_v57  ;;  %v10428_v63 = vld [vmem:[#allocation12 + $0xc98] sm:$0xf0] }
 0x2fe   :  { %6066 = vmatpush.bf16.msra.mxu2 %v7967_v10  ;;  %6037 = vmatpush.bf16.msra.mxu0 %v9335_v41  ;;  %v10372_v10 = vld [vmem:[#allocation12 + $0xad8] sm:$0xf0]  ;;  %v9643_v41 = vor.u32 %v10463_v52, %v9642_v24 }
 0x2ff   :  { %v9279_v22 = vor.u32 %v10372_v10, %v9278_v16  ;;  %v10166_v10 = vld [vmem:[#allocation12 + $0x46c] sm:$0xf]  ;;  %v10320_v52 = vld [vmem:[#allocation12 + $0x93c] sm:$0xf] }
 0x300   :  { %5996 = vmatpush.bf16.msrb.mxu1 %v8635_v8  ;;  %6080 = vmatpush.bf16.msra.mxu3 %v8191_v15  ;;  %v9168_v8 = vld [vmem:[#allocation12 + $0x9fc] sm:$0xf0]  ;;  %v10449_v15 = vld [vmem:[#allocation12 + $0xd40] sm:$0xf0]  ;;  %v8471_v25 = vor.u32 %v10166_v10, %v8468_v12  ;;  %v10411_v12 = vld [vmem:[#allocation12 + $0xc14] sm:$0xf] }
 0x301   :  { %v9171_v16 = vor.u32 %v10341_v7, %v9168_v8  ;;  %v9587_v29 = vor.u32 %v10449_v15, %v9586_v61  ;;  %v10138_v8 = vld [vmem:[#allocation12 + $0x38c] sm:$0xf]  ;;  %v9028_v15 = vld [vmem:[#allocation12 + $0x8e4] sm:$0xf0] }
 0x302   :  { %6067 = vmatpush.bf16.msra.mxu2 %v7939_v42  ;;  %6038 = vmatpush.bf16.msra.mxu0 %v9307_v11  ;;  %v8919_v42 = vor.u32 %v10278_v20, %v8916_v9  ;;  %v9615_v11 = vor.u32 %v10456_v0, %v9614_v46  ;;  %v8804_v20 = vld [vmem:[#allocation12 + $0x724] sm:$0xf0]  ;;  %v10334_v9 = vld [vmem:[#allocation12 + $0x9ac] sm:$0xf]  ;;  %v8055_v46 = vor.u32 %v10065_v59, %v8054_v58  ;;  %v10313_v0 = vld [vmem:[#allocation12 + $0x904] sm:$0xf] }
 0x303   :  { %v10037_v58 = vld [vmem:[#allocation12 + $0x60] sm:$0xf0]  ;;  %v8278_v59 = vld [vmem:[#allocation12 + $0x2e8] sm:$0xf] }
 0x304   :  { %5997 = vmatpush.bf16.msrb.mxu1 %v8607_v31  ;;  %6081 = vmatpush.bf16.msra.mxu3 %v8163_v28  ;;  %v9140_v31 = vld [vmem:[#allocation12 + $0x9c4] sm:$0xf0]  ;;  %v8807_v28 = vor.u32 %v10250_v18, %v8804_v20  ;;  %v9448_v18 = vld [vmem:[#allocation12 + $0xc2c] sm:$0xf0]  ;;  %v7998_v20 = vld [vmem:[#allocation12 + $0xb8] sm:$0xf] }
 0x306   :  { %6068 = vmatpush.bf16.msra.mxu2 %v7911_v45  ;;  %6039 = vmatpush.bf16.msra.mxu0 %v9279_v22  ;;  %v8135_v45 = vor.u32 %v10082_v49, %v8132_v27  ;;  %v10079_v22 = vld [vmem:[#allocation12 + $0x1b0] sm:$0xf0]  ;;  %v10442_v49 = vld [vmem:[#allocation12 + $0xd08] sm:$0xf0] }
 0x307   :  { %v10159_v27 = vld [vmem:[#allocation12 + $0x434] sm:$0xf]  ;;  %v8111_v30 = vor.u32 %v10079_v22, %v8110_v21 }
 0x308   :  { %5998 = vmatpush.bf16.msrb.mxu1 %v8579_v37  ;;  %6082 = vmatpush.bf16.msra.mxu3 %v8135_v45  ;;  %v8082_v37 = vld [vmem:[#allocation12 + $0x160] sm:$0xf]  ;;  %v8443_v40 = vor.u32 %v10159_v27, %v8440_v51  ;;  %v10152_v45 = vld [vmem:[#allocation12 + $0x3fc] sm:$0xf]  ;;  %v10135_v21 = vld [vmem:[#allocation12 + $0x370] sm:$0xf0] }
 0x309   :  { %6069 = vmatmul.bf16.vlgmr.msra.gmra.mxu2 %v10969_v60 }
 0x30a   :  { %6117 = vmatpush.bf16.msrb.mxu2 %v9003_v43  ;;  %v8891_v43 = vor.u32 %v10271_v35, %v8888_v39  ;;  %6040 = vmatpush.bf16.msra.mxu0 %v9251_v55  ;;  %v9559_v35 = vor.u32 %v10442_v49, %v9558_v26  ;;  %v10072_v39 = vld [vmem:[#allocation12 + $0x178] sm:$0xf0]  ;;  %v10435_v55 = vld [vmem:[#allocation12 + $0xcd0] sm:$0xf0]  ;;  %v9451_v49 = vor.u32 %v10411_v12, %v9448_v18  ;;  %v9336_v18 = vld [vmem:[#allocation12 + $0xb4c] sm:$0xf0] }
 0x30b   :  { %5999 = vmatmul.bf16.vlgmr.msrb.gmra.mxu1 %v10978_v33  ;;  %6083 = vmatmul.bf16.vlgmr.msra.gmra.mxu3 %v10957_v32  ;;  %v8083_v24 = vor.u32 %v10072_v39, %v8082_v37  ;;  %v8306_v37 = vld [vmem:[#allocation12 + $0x320] sm:$0xf]  ;;  %v10128_v39 = vld [vmem:[#allocation12 + $0x338] sm:$0xf0]  ;;  %v10383_v12 = vld [vmem:[#allocation12 + $0xb34] sm:$0xf] }
 0x30c   :  { %6047 = vmatpush.bf16.msra.mxu1 %v9671_v44  ;;  %6131 = vmatpush.bf16.msrb.mxu3 %v9227_v54  ;;  %v9115_v44 = vor.u32 %v10327_v34, %v9112_v38  ;;  %v9531_v54 = vor.u32 %v10435_v55, %v9530_v50  ;;  %v9420_v34 = vld [vmem:[#allocation12 + $0xbf4] sm:$0xf0]  ;;  %v7970_v38 = vld [vmem:[#allocation12 + $0x80] sm:$0xf]  ;;  %v10229_v55 = vld [vmem:[#allocation12 + $0x664] sm:$0xf] }
 0x30d   :  { %6041 = vmatmul.bf16.vlgmr.msra.gmra.mxu0 %v10999_v17 }
 0x30e   :  { %6118 = vmatpush.bf16.msrb.mxu2 %v8975_v36  ;;  %6089 = vmatpush.bf16.msrb.mxu0 %v8555_v48  ;;  %v8863_v36 = vor.u32 %v10264_v14, %v8860_v62  ;;  %v8412_v48 = vld [vmem:[#allocation12 + $0x414] sm:$0xf0]  ;;  %v9502_v62 = vld [vmem:[#allocation12 + $0xc80] sm:$0xf] }
 0x30f   :  { %v8415_v14 = vor.u32 %v10152_v45, %v8412_v48  ;;  %v9503_v5 = vor.u32 %v10428_v63, %v9502_v62  ;;  %v11021_v45 = vpop.f32.mrf.mxu2  ;;  %v11025_v62 = vpop.f32.mrf.mxu3 }
 0x310   :  { %6048 = vmatpush.bf16.msra.mxu1 %v9643_v41  ;;  %6132 = vmatpush.bf16.msrb.mxu3 %v9199_v23  ;;  %v10145_v41 = vld [vmem:[#allocation12 + $0x3c4] sm:$0xf]  ;;  %v8026_v23 = vld [vmem:[#allocation12 + $0xf0] sm:$0xf] }
 0x311   :  { %v8027_v10 = vor.u32 %v10058_v1, %v8026_v23  ;;  %v9364_v23 = vld [vmem:[#allocation12 + $0xb84] sm:$0xf0]  ;;  %v10030_v1 = vld [vmem:[#allocation12 + $0x28] sm:$0xf0] }
 0x312   :  { %6119 = vmatpush.bf16.msrb.mxu2 %v8947_v19  ;;  %6090 = vmatpush.bf16.msrb.mxu0 %v8527_v6  ;;  %v8835_v19 = vor.u32 %v10257_v3, %v8832_v4  ;;  %v8384_v6 = vld [vmem:[#allocation12 + $0x3dc] sm:$0xf0]  ;;  %v9474_v3 = vld [vmem:[#allocation12 + $0xc48] sm:$0xf]  ;;  %v10421_v4 = vld [vmem:[#allocation12 + $0xc60] sm:$0xf0] }
 0x313   :  { %v8387_v7 = vor.u32 %v10145_v41, %v8384_v6  ;;  %v10222_v41 = vld [vmem:[#allocation12 + $0x62c] sm:$0xf]  ;;  %v8692_v6 = vld [vmem:[#allocation12 + $0x644] sm:$0xf0] }
 0x314   :  { %6049 = vmatpush.bf16.msra.mxu1 %v9615_v11  ;;  %6133 = vmatpush.bf16.msrb.mxu3 %v9171_v16  ;;  %v8356_v11 = vld [vmem:[#allocation12 + $0x3a4] sm:$0xf0]  ;;  %v8776_v16 = vld [vmem:[#allocation12 + $0x6ec] sm:$0xf0] }
 0x315   :  { %v8359_v22 = vor.u32 %v10138_v8, %v8356_v11  ;;  %v8695_v8 = vor.u32 %v10222_v41, %v8692_v6  ;;  %v9006_v11 = vld [vmem:[#allocation12 + $0x898] sm:$0xf]  ;;  %v10282_v6 = vld [vmem:[#allocation12 + $0x808] sm:$0xf0] }
 0x316   :  { %6120 = vmatpush.bf16.msrb.mxu2 %v8919_v42  ;;  %6091 = vmatpush.bf16.msrb.mxu0 %v8499_v13  ;;  %v9143_v42 = vor.u32 %v10334_v9, %v9140_v31  ;;  %v10306_v13 = vld [vmem:[#allocation12 + $0x8cc] sm:$0xf]  ;;  %v9475_v9 = vor.u32 %v10421_v4, %v9474_v3  ;;  %v10051_v31 = vld [vmem:[#allocation12 + $0xd0] sm:$0xf0]  ;;  %v8250_v3 = vld [vmem:[#allocation12 + $0x2b0] sm:$0xf] }
 0x317   :  { %v9031_v26 = vor.u32 %v10306_v13, %v9028_v15  ;;  %v7999_v27 = vor.u32 %v10051_v31, %v7998_v20  ;;  %v10114_v4 = vld [vmem:[#allocation12 + $0x2c8] sm:$0xf0]  ;;  %v10303_v13 = vld [vmem:[#allocation12 + $0x8b0] sm:$0xf0] }
 0x318   :  { %6050 = vmatpush.bf16.msra.mxu1 %v9587_v29  ;;  %6134 = vmatpush.bf16.msrb.mxu3 %v9143_v42  ;;  %v8334_v29 = vld [vmem:[#allocation12 + $0x358] sm:$0xf]  ;;  %v10215_v15 = vld [vmem:[#allocation12 + $0x5f4] sm:$0xf]  ;;  %v9007_v20 = vor.u32 %v10303_v13, %v9006_v11  ;;  %v9672_v13 = vld [vmem:[#allocation12 + $0xdec] sm:$0xf0] }
 0x319   :  { %v8748_v42 = vld [vmem:[#allocation12 + $0x6b4] sm:$0xf0]  ;;  %v8335_v51 = vor.u32 %v10135_v21, %v8334_v29  ;;  %v10107_v31 = vld [vmem:[#allocation12 + $0x290] sm:$0xf0]  ;;  %v11030_v29 = vpop.f32.mrf.mxu2 }
 0x31a   :  { %6121 = vmatpush.bf16.msrb.mxu2 %v8891_v43  ;;  %6092 = vmatpush.bf16.msrb.mxu0 %v8471_v25  ;;  %v9084_v43 = vld [vmem:[#allocation12 + $0x954] sm:$0xf0]  ;;  %v10467_v11 = vld [vmem:[#allocation12 + $0xdd4] sm:$0xf] }
 0x31b   :  { %v9087_v57 = vor.u32 %v10320_v52, %v9084_v43  ;;  %v10397_v52 = vld [vmem:[#allocation12 + $0xba4] sm:$0xf]  ;;  %v9392_v43 = vld [vmem:[#allocation12 + $0xbbc] sm:$0xf0] }
 0x31c   :  { %6051 = vmatpush.bf16.msra.mxu1 %v9559_v35  ;;  %6135 = vmatpush.bf16.msrb.mxu3 %v9115_v44  ;;  %v10044_v35 = vld [vmem:[#allocation12 + $0x98] sm:$0xf0]  ;;  %v8720_v44 = vld [vmem:[#allocation12 + $0x67c] sm:$0xf0] }
 0x31d   :  { %v7971_v48 = vor.u32 %v10044_v35, %v7970_v38  ;;  %v8723_v63 = vor.u32 %v10229_v55, %v8720_v44  ;;  %v8194_v38 = vld [vmem:[#allocation12 + $0x240] sm:$0xf]  ;;  %v10100_v35 = vld [vmem:[#allocation12 + $0x258] sm:$0xf0]  ;;  %v10201_v55 = vld [vmem:[#allocation12 + $0x584] sm:$0xf] }
 0x31e   :  { %6122 = vmatpush.bf16.msrb.mxu2 %v8863_v36  ;;  %6093 = vmatpush.bf16.msrb.mxu0 %v8443_v40  ;;  %v9056_v36 = vld [vmem:[#allocation12 + $0x91c] sm:$0xf0] }
 0x31f   :  { %v9059_v61 = vor.u32 %v10313_v0, %v9056_v36  ;;  %v10390_v36 = vld [vmem:[#allocation12 + $0xb6c] sm:$0xf]  ;;  %v8608_v44 = vld [vmem:[#allocation12 + $0x59c] sm:$0xf0] }
 0x320   :  { %6052 = vmatpush.bf16.msra.mxu1 %v9531_v54  ;;  %6136 = vmatpush.bf16.msrb.mxu3 %v9087_v57  ;;  %v7942_v54 = vld [vmem:[#allocation12 + $0x48] sm:$0xf]  ;;  %v9395_v57 = vor.u32 %v10397_v52, %v9392_v43  ;;  %v10369_v52 = vld [vmem:[#allocation12 + $0xac4] sm:$0xf]  ;;  %v9280_v43 = vld [vmem:[#allocation12 + $0xadc] sm:$0xf0]  ;;  %v8611_v41 = vor.u32 %v10201_v55, %v8608_v44 }
 0x321   :  { %v10453_v44 = vld [vmem:[#allocation12 + $0xd64] sm:$0xf] }
 0x322   :  { %6123 = vmatpush.bf16.msrb.mxu2 %v8835_v19  ;;  %6094 = vmatpush.bf16.msrb.mxu0 %v8415_v14  ;;  %v10243_v19 = vld [vmem:[#allocation12 + $0x6d4] sm:$0xf]  ;;  %v10121_v14 = vld [vmem:[#allocation12 + $0x300] sm:$0xf0] }
 0x323   :  { %v8779_v25 = vor.u32 %v10243_v19, %v8776_v16  ;;  %v8279_v0 = vor.u32 %v10121_v14, %v8278_v59  ;;  %v8664_v19 = vld [vmem:[#allocation12 + $0x60c] sm:$0xf0]  ;;  %v8166_v59 = vld [vmem:[#allocation12 + $0x208] sm:$0xf]  ;;  %v10093_v14 = vld [vmem:[#allocation12 + $0x220] sm:$0xf0] }
 0x324   :  { %6053 = vmatpush.bf16.msra.mxu1 %v9503_v5  ;;  %6137 = vmatpush.bf16.msrb.mxu3 %v9059_v61  ;;  %v7914_v5 = vld [vmem:[#allocation12 + $0x10] sm:$0xf]  ;;  %v9367_v61 = vor.u32 %v10390_v36, %v9364_v23  ;;  %v8667_v21 = vor.u32 %v10215_v15, %v8664_v19  ;;  %v9283_v36 = vor.u32 %v10369_v52, %v9280_v43  ;;  %v10362_v23 = vld [vmem:[#allocation12 + $0xa8c] sm:$0xf]  ;;  %v8558_v15 = vld [vmem:[#allocation12 + $0x518] sm:$0xf] }
 0x325   :  { %v7915_v16 = vor.u32 %v10030_v1, %v7914_v5  ;;  %v9252_v5 = vld [vmem:[#allocation12 + $0xaa4] sm:$0xf0]  ;;  %v8138_v1 = vld [vmem:[#allocation12 + $0x1d0] sm:$0xf]  ;;  %v10191_v19 = vld [vmem:[#allocation12 + $0x530] sm:$0xf0] }
 0x326   :  { %6124 = vmatpush.bf16.msrb.mxu2 %v8807_v28  ;;  %6095 = vmatpush.bf16.msrb.mxu0 %v8387_v7  ;;  %v10236_v28 = vld [vmem:[#allocation12 + $0x69c] sm:$0xf]  ;;  %v11028_v7 = vpop.f32.mrf.mxu0 }
 0x327   :  { %v8751_v40 = vor.u32 %v10236_v28, %v8748_v42  ;;  %v8636_v28 = vld [vmem:[#allocation12 + $0x5d4] sm:$0xf0]  ;;  %v11032_v42 = vpop.f32.mrf.mxu3 }
 0x328   :  { %6054 = vmatpush.bf16.msra.mxu1 %v9475_v9  ;;  %6138 = vmatpush.bf16.msrb.mxu3 %v9031_v26  ;;  %v8222_v9 = vld [vmem:[#allocation12 + $0x278] sm:$0xf]  ;;  %v9339_v26 = vor.u32 %v10383_v12, %v9336_v18  ;;  %v10275_v12 = vld [vmem:[#allocation12 + $0x7d0] sm:$0xf0] }
 0x329   :  { %6125 = vmatmul.bf16.vlgmr.msrb.gmra.mxu2 %v10986_v53  ;;  %v9230_v18 = vld [vmem:[#allocation12 + $0xa58] sm:$0xf] }
 0x32a   :  { %6173 = vmatpush.bf16.msra.mxu2 %v8111_v30  ;;  %v10404_v30 = vld [vmem:[#allocation12 + $0xbdc] sm:$0xf]  ;;  %6096 = vmatpush.bf16.msrb.mxu0 %v8359_v22  ;;  %v8978_v22 = vld [vmem:[#allocation12 + $0x860] sm:$0xf] }
 0x32b   :  { %v9423_v50 = vor.u32 %v10404_v30, %v9420_v34  ;;  %6055 = vmatmul.bf16.vlgmr.msra.gmra.mxu1 %v11006_v2  ;;  %6139 = vmatmul.bf16.vlgmr.msrb.gmra.mxu3 %v10991_v47  ;;  %v9308_v30 = vld [vmem:[#allocation12 + $0xb14] sm:$0xf0] }
 0x32c   :  { %6103 = vmatpush.bf16.msrb.mxu1 %v8779_v25  ;;  %6187 = vmatpush.bf16.msra.mxu3 %v8335_v51  ;;  %v10296_v25 = vld [vmem:[#allocation12 + $0x878] sm:$0xf0] }
 0x32d   :  { %6097 = vmatmul.bf16.vlgmr.msrb.gmra.mxu0 %v10982_v56  ;;  %v10376_v51 = vld [vmem:[#allocation12 + $0xafc] sm:$0xf]  ;;  %v8979_v34 = vor.u32 %v10296_v25, %v8978_v22  ;;  %v8559_v25 = vor.u32 %v10191_v19, %v8558_v15  ;;  %v10254_v15 = vld [vmem:[#allocation12 + $0x728] sm:$0xf0]  ;;  %v9146_v19 = vld [vmem:[#allocation12 + $0x9b0] sm:$0xf] }
 0x32e   :  { %6174 = vmatpush.bf16.msra.mxu2 %v8083_v24  ;;  %6145 = vmatpush.bf16.msra.mxu0 %v9451_v49  ;;  %v8307_v24 = vor.u32 %v10128_v39, %v8306_v37  ;;  %v10208_v49 = vld [vmem:[#allocation12 + $0x5bc] sm:$0xf]  ;;  %v8950_v39 = vld [vmem:[#allocation12 + $0x828] sm:$0xf] }
 0x32f   :  { %v8639_v37 = vor.u32 %v10208_v49, %v8636_v28  ;;  %v9644_v49 = vld [vmem:[#allocation12 + $0xdb4] sm:$0xf0] }
 0x330   :  { %6104 = vmatpush.bf16.msrb.mxu1 %v8751_v40  ;;  %6188 = vmatpush.bf16.msra.mxu3 %v8307_v24  ;;  %v10289_v40 = vld [vmem:[#allocation12 + $0x840] sm:$0xf0]  ;;  %v8195_v24 = vor.u32 %v10100_v35, %v8194_v38  ;;  %v10268_v38 = vld [vmem:[#allocation12 + $0x798] sm:$0xf0]  ;;  %v9202_v35 = vld [vmem:[#allocation12 + $0xa20] sm:$0xf] }
 0x332   :  { %6175 = vmatpush.bf16.msra.mxu2 %v8055_v46  ;;  %6146 = vmatpush.bf16.msra.mxu0 %v9423_v50  ;;  %v7943_v46 = vor.u32 %v10037_v58, %v7942_v54  ;;  %v9311_v50 = vor.u32 %v10376_v51, %v9308_v30  ;;  %v11037_v54 = vpop.f32.mrf.mxu1  ;;  %v8951_v58 = vor.u32 %v10289_v40, %v8950_v39  ;;  %v8530_v51 = vld [vmem:[#allocation12 + $0x4e0] sm:$0xf]  ;;  %v10184_v30 = vld [vmem:[#allocation12 + $0x4f8] sm:$0xf0] }
 0x333   :  { %v8531_v55 = vor.u32 %v10184_v30, %v8530_v51  ;;  %v9118_v30 = vld [vmem:[#allocation12 + $0x978] sm:$0xf] }
 0x334   :  { %6105 = vmatpush.bf16.msrb.mxu1 %v8723_v63  ;;  %6189 = vmatpush.bf16.msra.mxu3 %v8279_v0  ;;  %v8922_v63 = vld [vmem:[#allocation12 + $0x7f0] sm:$0xf]  ;;  %v8580_v0 = vld [vmem:[#allocation12 + $0x564] sm:$0xf0] }
 0x336   :  { %6176 = vmatpush.bf16.msra.mxu2 %v8027_v10  ;;  %6147 = vmatpush.bf16.msra.mxu0 %v9395_v57  ;;  %v8251_v10 = vor.u32 %v10114_v4, %v8250_v3  ;;  %v11039_v57 = vpop.f32.mrf.mxu2  ;;  %v11041_v3 = vpop.f32.mrf.mxu3  ;;  %v8167_v4 = vor.u32 %v10093_v14, %v8166_v59  ;;  %v10177_v59 = vld [vmem:[#allocation12 + $0x4c0] sm:$0xf0]  ;;  %v8838_v14 = vld [vmem:[#allocation12 + $0x748] sm:$0xf] }
 0x338   :  { %6106 = vmatpush.bf16.msrb.mxu1 %v8695_v8  ;;  %6190 = vmatpush.bf16.msra.mxu3 %v8251_v10  ;;  %v10086_v8 = vld [vmem:[#allocation12 + $0x1e8] sm:$0xf0] }
 0x339   :  { %v8139_v22 = vor.u32 %v10086_v8, %v8138_v1  ;;  %v8474_v8 = vld [vmem:[#allocation12 + $0x470] sm:$0xf] }
 0x33a   :  { %6177 = vmatpush.bf16.msra.mxu2 %v7999_v27  ;;  %6148 = vmatpush.bf16.msra.mxu0 %v9367_v61  ;;  %v8223_v27 = vor.u32 %v10107_v31, %v8222_v9  ;;  %v8923_v61 = vor.u32 %v10282_v6, %v8922_v63  ;;  %v9255_v9 = vor.u32 %v10362_v23, %v9252_v5  ;;  %v11045_v39 = vpop.f32.mrf.mxu1  ;;  %v9174_v6 = vld [vmem:[#allocation12 + $0x9e8] sm:$0xf]  ;;  %v10446_v23 = vld [vmem:[#allocation12 + $0xd2c] sm:$0xf] }
 0x33b   :  { %v9675_v31 = vor.u32 %v10467_v11, %v9672_v13  ;;  %v9588_v5 = vld [vmem:[#allocation12 + $0xd44] sm:$0xf0]  ;;  %v10170_v11 = vld [vmem:[#allocation12 + $0x488] sm:$0xf0]  ;;  %v8810_v13 = vld [vmem:[#allocation12 + $0x710] sm:$0xf] }
 0x33c   :  { %6107 = vmatpush.bf16.msrb.mxu1 %v8667_v21  ;;  %6191 = vmatpush.bf16.msra.mxu3 %v8223_v27 }
 0x33e   :  { %6178 = vmatpush.bf16.msra.mxu2 %v7971_v48  ;;  %6149 = vmatpush.bf16.msra.mxu0 %v9339_v26  ;;  %v11035_v48 = vpop.f32.mrf.mxu0  ;;  %v10460_v26 = vld [vmem:[#allocation12 + $0xd9c] sm:$0xf]  ;;  %v11049_v63 = vpop.f32.mrf.mxu3 }
 0x33f   :  { %v9647_v40 = vor.u32 %v10460_v26, %v9644_v49  ;;  %v8446_v49 = vld [vmem:[#allocation12 + $0x438] sm:$0xf] }
 0x340   :  { %6108 = vmatpush.bf16.msrb.mxu1 %v8639_v37  ;;  %6192 = vmatpush.bf16.msra.mxu3 %v8195_v24  ;;  %v10352_v37 = vld [vmem:[#allocation12 + $0xa38] sm:$0xf0]  ;;  %v9616_v24 = vld [vmem:[#allocation12 + $0xd7c] sm:$0xf0] }
 0x341   :  { %v9203_v43 = vor.u32 %v10352_v37, %v9202_v35  ;;  %v10069_v35 = vld [vmem:[#allocation12 + $0x164] sm:$0xf]  ;;  %v8084_v37 = vld [vmem:[#allocation12 + $0x17c] sm:$0xf0] }
 0x342   :  { %6179 = vmatpush.bf16.msra.mxu2 %v7943_v46  ;;  %v10194_v46 = vld [vmem:[#allocation12 + $0x54c] sm:$0xf]  ;;  %6150 = vmatpush.bf16.msra.mxu0 %v9311_v50  ;;  %v11047_v50 = vpop.f32.mrf.mxu2 }
 0x343   :  { %v8583_v10 = vor.u32 %v10194_v46, %v8580_v0  ;;  %v10345_v46 = vld [vmem:[#allocation12 + $0xa00] sm:$0xf0]  ;;  %v9619_v0 = vor.u32 %v10453_v44, %v9616_v24  ;;  %v10432_v44 = vld [vmem:[#allocation12 + $0xcbc] sm:$0xf]  ;;  %v9532_v24 = vld [vmem:[#allocation12 + $0xcd4] sm:$0xf0] }
 0x344   :  { %6109 = vmatpush.bf16.msrb.mxu1 %v8611_v41  ;;  %6193 = vmatpush.bf16.msra.mxu3 %v8167_v4  ;;  %v10261_v41 = vld [vmem:[#allocation12 + $0x760] sm:$0xf0]  ;;  %v9175_v4 = vor.u32 %v10345_v46, %v9174_v6  ;;  %v10324_v6 = vld [vmem:[#allocation12 + $0x958] sm:$0xf0] }
 0x345   :  { %v8839_v1 = vor.u32 %v10261_v41, %v8838_v14  ;;  %v8087_v14 = vor.u32 %v10069_v35, %v8084_v37  ;;  %v9090_v41 = vld [vmem:[#allocation12 + $0x940] sm:$0xf] }
 0x346   :  { %6180 = vmatpush.bf16.msra.mxu2 %v7915_v16  ;;  %v8894_v16 = vld [vmem:[#allocation12 + $0x7b8] sm:$0xf]  ;;  %6151 = vmatpush.bf16.msra.mxu0 %v9283_v36  ;;  %v11043_v21 = vpop.f32.mrf.mxu0 }
 0x347   :  { %v8895_v28 = vor.u32 %v10275_v12, %v8894_v16  ;;  %v10338_v16 = vld [vmem:[#allocation12 + $0x9c8] sm:$0xf0]  ;;  %v9591_v12 = vor.u32 %v10446_v23, %v9588_v5  ;;  %v8056_v23 = vld [vmem:[#allocation12 + $0x144] sm:$0xf0] }
 0x348   :  { %6110 = vmatpush.bf16.msrb.mxu1 %v8583_v10  ;;  %6194 = vmatpush.bf16.msra.mxu3 %v8139_v22  ;;  %v11056_v10 = vpop.f32.mrf.mxu1  ;;  %v9560_v22 = vld [vmem:[#allocation12 + $0xd0c] sm:$0xf0]  ;;  %v9147_v26 = vor.u32 %v10338_v16, %v9146_v19  ;;  %v8390_v19 = vld [vmem:[#allocation12 + $0x3c8] sm:$0xf]  ;;  %v10149_v16 = vld [vmem:[#allocation12 + $0x3e0] sm:$0xf0] }
 0x349   :  { %6181 = vmatmul.bf16.vlgmr.msra.gmra.mxu2 %v10969_v60 }
 0x34a   :  { %6229 = vmatpush.bf16.msrb.mxu2 %v9007_v20  ;;  %v10359_v20 = vld [vmem:[#allocation12 + $0xa70] sm:$0xf0]  ;;  %6152 = vmatpush.bf16.msra.mxu0 %v9255_v9  ;;  %v8475_v9 = vor.u32 %v10170_v11, %v8474_v8  ;;  %v10425_v8 = vld [vmem:[#allocation12 + $0xc84] sm:$0xf]  ;;  %v9504_v11 = vld [vmem:[#allocation12 + $0xc9c] sm:$0xf0] }
 0x34b   :  { %v9231_v27 = vor.u32 %v10359_v20, %v9230_v18  ;;  %6111 = vmatmul.bf16.vlgmr.msrb.gmra.mxu1 %v10978_v33  ;;  %6195 = vmatmul.bf16.vlgmr.msra.gmra.mxu3 %v10957_v32  ;;  %v10076_v18 = vld [vmem:[#allocation12 + $0x19c] sm:$0xf]  ;;  %v8112_v20 = vld [vmem:[#allocation12 + $0x1b4] sm:$0xf0] }
 0x34c   :  { %6159 = vmatpush.bf16.msra.mxu1 %v9675_v31  ;;  %v10439_v31 = vld [vmem:[#allocation12 + $0xcf4] sm:$0xf]  ;;  %v8115_v51 = vor.u32 %v10076_v18, %v8112_v20  ;;  %v9062_v18 = vld [vmem:[#allocation12 + $0x908] sm:$0xf]  ;;  %v10317_v20 = vld [vmem:[#allocation12 + $0x920] sm:$0xf0] }
 0x34d   :  { %6243 = vmatpush.bf16.msrb.mxu3 %v9231_v27  ;;  %6153 = vmatmul.bf16.vlgmr.msra.gmra.mxu0 %v10999_v17  ;;  %v5846_v27 = vpop.f32.mrf.mxu2  ;;  %v9063_v37 = vor.u32 %v10317_v20, %v9062_v18  ;;  %v10240_v18 = vld [vmem:[#allocation12 + $0x6b8] sm:$0xf0] }
 0x34e   :  { %6230 = vmatpush.bf16.msrb.mxu2 %v8979_v34  ;;  %v8866_v34 = vld [vmem:[#allocation12 + $0x780] sm:$0xf]  ;;  %6201 = vmatpush.bf16.msrb.mxu0 %v8559_v25  ;;  %v8811_v25 = vor.u32 %v10254_v15, %v8810_v13  ;;  %v9091_v15 = vor.u32 %v10324_v6, %v9090_v41 }
 0x34f   :  { %v8867_v52 = vor.u32 %v10268_v38, %v8866_v34  ;;  %v10331_v34 = vld [vmem:[#allocation12 + $0x990] sm:$0xf0]  ;;  %v9563_v38 = vor.u32 %v10439_v31, %v9560_v22  ;;  %v9507_v31 = vor.u32 %v10425_v8, %v9504_v11  ;;  %v8028_v22 = vld [vmem:[#allocation12 + $0x10c] sm:$0xf0] }
 0x350   :  { %6160 = vmatpush.bf16.msra.mxu1 %v9647_v40  ;;  %v5860_v40 = vpop.f32.mrf.mxu3  ;;  %v11060_v46 = vpop.f32.mrf.mxu1 }
 0x351   :  { %6244 = vmatpush.bf16.msrb.mxu3 %v9203_v43  ;;  %v9119_v43 = vor.u32 %v10331_v34, %v9118_v30  ;;  %v8362_v30 = vld [vmem:[#allocation12 + $0x390] sm:$0xf]  ;;  %v10142_v34 = vld [vmem:[#allocation12 + $0x3a8] sm:$0xf0] }
 0x352   :  { %6231 = vmatpush.bf16.msrb.mxu2 %v8951_v58  ;;  %v8502_v58 = vld [vmem:[#allocation12 + $0x4a8] sm:$0xf]  ;;  %6202 = vmatpush.bf16.msrb.mxu0 %v8531_v55  ;;  %v8363_v8 = vor.u32 %v10142_v34, %v8362_v30  ;;  %v8308_v30 = vld [vmem:[#allocation12 + $0x33c] sm:$0xf0] }
 0x353   :  { %v8503_v36 = vor.u32 %v10177_v59, %v8502_v58  ;;  %v8418_v58 = vld [vmem:[#allocation12 + $0x400] sm:$0xf]  ;;  %v10156_v59 = vld [vmem:[#allocation12 + $0x418] sm:$0xf0] }
 0x354   :  { %6161 = vmatpush.bf16.msra.mxu1 %v9619_v0  ;;  %v9535_v0 = vor.u32 %v10432_v44, %v9532_v24  ;;  %v8782_v44 = vld [vmem:[#allocation12 + $0x6d8] sm:$0xf]  ;;  %v10247_v24 = vld [vmem:[#allocation12 + $0x6f0] sm:$0xf0] }
 0x355   :  { %6245 = vmatpush.bf16.msrb.mxu3 %v9175_v4  ;;  %v8419_v4 = vor.u32 %v10156_v59, %v8418_v58  ;;  %v9454_v59 = vld [vmem:[#allocation12 + $0xc18] sm:$0xf]  ;;  %v8783_v11 = vor.u32 %v10247_v24, %v8782_v44  ;;  %v9398_v24 = vld [vmem:[#allocation12 + $0xba8] sm:$0xf] }
 0x356   :  { %6232 = vmatpush.bf16.msrb.mxu2 %v8923_v61  ;;  %v11054_v61 = vpop.f32.mrf.mxu0  ;;  %6203 = vmatpush.bf16.msrb.mxu0 %v8503_v36  ;;  %v10062_v36 = vld [vmem:[#allocation12 + $0x12c] sm:$0xf] }
 0x358   :  { %6162 = vmatpush.bf16.msra.mxu1 %v9591_v12  ;;  %v8059_v12 = vor.u32 %v10062_v36, %v8056_v23  ;;  %v5888_v6 = vpop.f32.mrf.mxu1  ;;  %v8000_v36 = vld [vmem:[#allocation12 + $0xd4] sm:$0xf0]  ;;  %v10132_v23 = vld [vmem:[#allocation12 + $0x35c] sm:$0xf] }
 0x359   :  { %6246 = vmatpush.bf16.msrb.mxu3 %v9147_v26  ;;  %v9476_v26 = vld [vmem:[#allocation12 + $0xc64] sm:$0xf0] }
 0x35a   :  { %6233 = vmatpush.bf16.msrb.mxu2 %v8895_v28  ;;  %v10163_v28 = vld [vmem:[#allocation12 + $0x450] sm:$0xf0]  ;;  %6204 = vmatpush.bf16.msrb.mxu0 %v8475_v9 }
 0x35b   :  { %v8447_v55 = vor.u32 %v10163_v28, %v8446_v49  ;;  %v10055_v9 = vld [vmem:[#allocation12 + $0xf4] sm:$0xf]  ;;  %v5848_v28 = vpop.f32.mrf.mxu2 }
 0x35c   :  { %6163 = vmatpush.bf16.msra.mxu1 %v9563_v38  ;;  %v9034_v38 = vld [vmem:[#allocation12 + $0x8d0] sm:$0xf]  ;;  %v8031_v58 = vor.u32 %v10055_v9, %v8028_v22  ;;  %v9426_v22 = vld [vmem:[#allocation12 + $0xbe0] sm:$0xf] }
 0x35d   :  { %6247 = vmatpush.bf16.msrb.mxu3 %v9119_v43  ;;  %v5862_v43 = vpop.f32.mrf.mxu3 }
 0x35e   :  { %6234 = vmatpush.bf16.msrb.mxu2 %v8867_v52  ;;  %v11058_v52 = vld [vmem:[#allocation13] sm:$0xff]  ;;  %6205 = vmatpush.bf16.msrb.mxu0 %v8447_v55  ;;  %v10310_v55 = vld [vmem:[#allocation12 + $0x8e8] sm:$0xf0] }
 0x35f   :  { %v3407_v5 = vperm.slane %v11058_v52, 0  ;;  %v3408_v13 = vperm.slane %v11058_v52, 1 }
 0x360   :  { %6164 = vmatpush.bf16.msra.mxu1 %v9535_v0  ;;  %v5890_v52 = vpop.f32.mrf.mxu1 }
 0x361   :  { %v5735_v49 = vadd.f32 %v11021_v45, %v3407_v5  ;;  %v5847_v35 = vadd.f32 %v5846_v27, %v3408_v13  ;;  %6248 = vmatpush.bf16.msrb.mxu3 %v9091_v15  ;;  %v10048_v45 = vld [vmem:[#allocation12 + $0xbc] sm:$0xf] }
 0x362   :  { %6235 = vmatpush.bf16.msrb.mxu2 %v8839_v1  ;;  %v5874_v1 = vpop.f32.mrf.mxu0  ;;  %6206 = vmatpush.bf16.msrb.mxu0 %v8419_v4  ;;  %v8336_v4 = vld [vmem:[#allocation12 + $0x374] sm:$0xf0]  ;;  %v8003_v9 = vor.u32 %v10048_v45, %v8000_v36 }
 0x363   :  { %v5861_v41 = vadd.f32 %v5860_v40, %v5847_v35  ;;  %v5749_v27 = vadd.f32 %v11025_v62, %v5735_v49  ;;  %v5737_v62 = vadd.f32 %v11030_v29, %v3407_v5  ;;  %v5902_v34 = vpop.f32.mrf.mxu2 }
 0x364   :  { %6165 = vmatpush.bf16.msra.mxu1 %v9507_v31  ;;  %v8339_v31 = vor.u32 %v10132_v23, %v8336_v4  ;;  %v8698_v4 = vld [vmem:[#allocation12 + $0x630] sm:$0xf] }
 0x365   :  { %v5875_v15 = vadd.f32 %v5874_v1, %v5861_v41  ;;  %6249 = vmatpush.bf16.msrb.mxu3 %v9063_v37  ;;  %v5763_v20 = vadd.f32 %v11028_v7, %v5749_v27  ;;  %v7972_v1 = vld [vmem:[#allocation12 + $0x9c] sm:$0xf0]  ;;  %v8726_v37 = vld [vmem:[#allocation12 + $0x668] sm:$0xf]  ;;  %v10226_v27 = vld [vmem:[#allocation12 + $0x648] sm:$0xf0] }
 0x366   :  { %6236 = vmatpush.bf16.msrb.mxu2 %v8811_v25  ;;  %v10418_v25 = vld [vmem:[#allocation12 + $0xc4c] sm:$0xf] }
 0x367   :  { %v9479_v0 = vor.u32 %v10418_v25, %v9476_v26  ;;  %v10408_v25 = vld [vmem:[#allocation12 + $0xbf8] sm:$0xf0]  ;;  %v10041_v26 = vld [vmem:[#allocation12 + $0x84] sm:$0xf]  ;;  %v5889_v49 = vadd.f32 %v5888_v6, %v5875_v15  ;;  %v5777_v44 = vadd.f32 %v11037_v54, %v5763_v20  ;;  %v8280_v6 = vld [vmem:[#allocation12 + $0x304] sm:$0xf0] }
 0x368   :  { %v9427_v35 = vor.u32 %v10408_v25, %v9426_v22  ;;  %v7975_v29 = vor.u32 %v10041_v26, %v7972_v1  ;;  %v7916_v20 = vld [vmem:[#allocation12 + $0x2c] sm:$0xf0]  ;;  %v8699_v22 = vor.u32 %v10226_v27, %v8698_v4  ;;  %v10300_v25 = vld [vmem:[#allocation12 + $0x89c] sm:$0xf]  ;;  %v9008_v26 = vld [vmem:[#allocation12 + $0x8b4] sm:$0xf0] }
 0x369   :  { %6237 = vmatmul.bf16.vlgmr.msrb.gmra.mxu2 %v10986_v53  ;;  %6166 = vmatpush.bf16.msra.mxu1 %v9479_v0  ;;  %v5903_v41 = vadd.f32 %v5902_v34, %v5889_v49  ;;  %v5791_v54 = vadd.f32 %v11039_v57, %v5777_v44  ;;  %v5916_v0 = vpop.f32.mrf.mxu3  ;;  %v10394_v57 = vld [vmem:[#allocation12 + $0xb88] sm:$0xf0]  ;;  %v8670_v49 = vld [vmem:[#allocation12 + $0x5f8] sm:$0xf]  ;;  %v10219_v1 = vld [vmem:[#allocation12 + $0x610] sm:$0xf0] }
 0x36a   :  { %6285 = vmatpush.bf16.msra.mxu2 %v8115_v51  ;;  %v8391_v51 = vor.u32 %v10149_v16, %v8390_v19  ;;  %v9035_v19 = vor.u32 %v10310_v55, %v9034_v38  ;;  %v5876_v40 = vpop.f32.mrf.mxu0  ;;  %v5849_v38 = vadd.f32 %v5848_v28, %v3408_v13  ;;  %v10233_v55 = vld [vmem:[#allocation12 + $0x680] sm:$0xf0]  ;;  %v7944_v13 = vld [vmem:[#allocation12 + $0x64] sm:$0xf0]  ;;  %v10118_v28 = vld [vmem:[#allocation12 + $0x2ec] sm:$0xf] }
 0x36b   :  { %v8727_v36 = vor.u32 %v10233_v55, %v8726_v37  ;;  %v8283_v15 = vor.u32 %v10118_v28, %v8280_v6  ;;  %v9011_v55 = vor.u32 %v10300_v25, %v9008_v26  ;;  %v10104_v44 = vld [vmem:[#allocation12 + $0x27c] sm:$0xf]  ;;  %v9314_v6 = vld [vmem:[#allocation12 + $0xb00] sm:$0xf]  ;;  %v10286_v4 = vld [vmem:[#allocation12 + $0x82c] sm:$0xf] }
 0x36c   :  { %6207 = vmatpush.bf16.msrb.mxu0 %v8391_v51  ;;  %v10125_v51 = vld [vmem:[#allocation12 + $0x324] sm:$0xf]  ;;  %6250 = vmatpush.bf16.msrb.mxu3 %v9035_v19  ;;  %v5863_v45 = vadd.f32 %v5862_v43, %v5849_v38  ;;  %v9370_v19 = vld [vmem:[#allocation12 + $0xb70] sm:$0xf]  ;;  %v9342_v38 = vld [vmem:[#allocation12 + $0xb38] sm:$0xf] }
 0x36d   :  { %6215 = vmatpush.bf16.msrb.mxu1 %v8783_v11  ;;  %v8311_v5 = vor.u32 %v10125_v51, %v8308_v30  ;;  %v5904_v51 = vpop.f32.mrf.mxu2  ;;  %v8952_v27 = vld [vmem:[#allocation12 + $0x844] sm:$0xf0]  ;;  %v8924_v25 = vld [vmem:[#allocation12 + $0x80c] sm:$0xf0] }
 0x36e   :  { %6286 = vmatpush.bf16.msra.mxu2 %v8087_v14  ;;  %v10415_v14 = vld [vmem:[#allocation12 + $0xc30] sm:$0xf0]  ;;  %6167 = vmatmul.bf16.vlgmr.msra.gmra.mxu1 %v11006_v2  ;;  %v8586_v26 = vld [vmem:[#allocation12 + $0x550] sm:$0xf] }
 0x36f   :  { %v9455_v16 = vor.u32 %v10415_v14, %v9454_v59  ;;  %v10034_v59 = vld [vmem:[#allocation12 + $0x4c] sm:$0xf]  ;;  %v5751_v14 = vadd.f32 %v11032_v42, %v5737_v62  ;;  %6251 = vmatmul.bf16.vlgmr.msrb.gmra.mxu3 %v10991_v47  ;;  %v5877_v42 = vadd.f32 %v5876_v40, %v5863_v45  ;;  %v9371_v62 = vor.u32 %v10394_v57, %v9370_v19  ;;  %v8642_v45 = vld [vmem:[#allocation12 + $0x5c0] sm:$0xf] }
 0x370   :  { %6208 = vmatpush.bf16.msrb.mxu0 %v8363_v8  ;;  %6299 = vmatpush.bf16.msra.mxu3 %v8339_v31  ;;  %v5805_v8 = vadd.f32 %v11041_v3, %v5791_v54  ;;  %v7947_v11 = vor.u32 %v10034_v59, %v7944_v13  ;;  %v8252_v31 = vld [vmem:[#allocation12 + $0x2cc] sm:$0xf0]  ;;  %v8980_v59 = vld [vmem:[#allocation12 + $0x87c] sm:$0xf0]  ;;  %v10380_v54 = vld [vmem:[#allocation12 + $0xb18] sm:$0xf0] }
 0x371   :  { %v5765_v23 = vadd.f32 %v11035_v48, %v5751_v14  ;;  %v5918_v13 = vpop.f32.mrf.mxu3 }
 0x372   :  { %6287 = vmatpush.bf16.msra.mxu2 %v8059_v12  ;;  %v8754_v12 = vld [vmem:[#allocation12 + $0x6a0] sm:$0xf]  ;;  %v5819_v48 = vadd.f32 %v11043_v21, %v5805_v8  ;;  %v5930_v40 = vpop.f32.mrf.mxu0  ;;  %v10387_v21 = vld [vmem:[#allocation12 + $0xb50] sm:$0xf0]  ;;  %v8614_v8 = vld [vmem:[#allocation12 + $0x588] sm:$0xf] }
 0x373   :  { %v8755_v7 = vor.u32 %v10240_v18, %v8754_v12  ;;  %6209 = vmatmul.bf16.vlgmr.msrb.gmra.mxu0 %v10982_v56  ;;  %v5891_v12 = vadd.f32 %v5890_v52, %v5877_v42  ;;  %v5917_v18 = vadd.f32 %v5916_v0, %v5903_v41  ;;  %v5779_v3 = vadd.f32 %v11045_v39, %v5765_v23  ;;  %v10212_v41 = vld [vmem:[#allocation12 + $0x5d8] sm:$0xf0]  ;;  %v8196_v23 = vld [vmem:[#allocation12 + $0x25c] sm:$0xf0] }
 0x374   :  { %6257 = vmatpush.bf16.msra.mxu0 %v9455_v16  ;;  %6300 = vmatpush.bf16.msra.mxu3 %v8311_v5  ;;  %v10027_v16 = vld [vmem:[#allocation12 + $0x14] sm:$0xf]  ;;  %v5833_v30 = vadd.f32 %v11056_v10, %v5819_v48  ;;  %v5944_v5 = vpop.f32.mrf.mxu1  ;;  %v9343_v10 = vor.u32 %v10387_v21, %v9342_v38  ;;  %v8140_v38 = vld [vmem:[#allocation12 + $0x1ec] sm:$0xf0]  ;;  %v9678_v21 = vld [vmem:[#allocation12 + $0xdd8] sm:$0xf] }
 0x375   :  { %6216 = vmatpush.bf16.msrb.mxu1 %v8755_v7  ;;  %v7919_v34 = vor.u32 %v10027_v16, %v7916_v20  ;;  %v5931_v37 = vadd.f32 %v5930_v40, %v5917_v18  ;;  %v5793_v39 = vadd.f32 %v11047_v50, %v5779_v3  ;;  %v9286_v16 = vld [vmem:[#allocation12 + $0xac8] sm:$0xf]  ;;  %v10090_v20 = vld [vmem:[#allocation12 + $0x20c] sm:$0xf] }
 0x376   :  { %6288 = vmatpush.bf16.msra.mxu2 %v8031_v58  ;;  %v10401_v58 = vld [vmem:[#allocation12 + $0xbc0] sm:$0xf0]  ;;  %10489 = vtanh.f32 %v5833_v30  ;;  %v10198_v3 = vld [vmem:[#allocation12 + $0x568] sm:$0xf0]  ;;  %v10083_v30 = vld [vmem:[#allocation12 + $0x1d4] sm:$0xf] }
 0x377   :  { %v9399_v43 = vor.u32 %v10401_v58, %v9398_v24  ;;  %v8671_v24 = vor.u32 %v10219_v1, %v8670_v49  ;;  %v10293_v58 = vld [vmem:[#allocation12 + $0x864] sm:$0xf]  ;;  %v5945_v14 = vadd.f32 %v5944_v5, %v5931_v37  ;;  %v5807_v52 = vadd.f32 %v11049_v63, %v5793_v39  ;;  %v9258_v1 = vld [vmem:[#allocation12 + $0xa90] sm:$0xf]  ;;  %v8896_v5 = vld [vmem:[#allocation12 + $0x7d4] sm:$0xf0] }
 0x378   :  { %6258 = vmatpush.bf16.msra.mxu0 %v9427_v35  ;;  %6301 = vmatpush.bf16.msra.mxu3 %v8283_v15  ;;  %v5905_v35 = vadd.f32 %v5904_v51, %v5891_v12  ;;  %v8983_v50 = vor.u32 %v10293_v58, %v8980_v59  ;;  %v9315_v63 = vor.u32 %v10380_v54, %v9314_v6  ;;  %v10373_v12 = vld [vmem:[#allocation12 + $0xae0] sm:$0xf0]  ;;  %v10366_v51 = vld [vmem:[#allocation12 + $0xaa8] sm:$0xf0]  ;;  %v9232_v58 = vld [vmem:[#allocation12 + $0xa74] sm:$0xf0] }
 0x379   :  { %6217 = vmatpush.bf16.msrb.mxu1 %v8727_v36  ;;  %10491 = vtanh.f32 %v5945_v14  ;;  %v10097_v36 = vld [vmem:[#allocation12 + $0x244] sm:$0xf]  ;;  %v5821_v42 = vadd.f32 %v11054_v61, %v5807_v52  ;;  %v8955_v61 = vor.u32 %v10286_v4, %v8952_v27  ;;  %v9287_v49 = vor.u32 %v10373_v12, %v9286_v16  ;;  %v10464_v52 = vld [vmem:[#allocation12 + $0xdb8] sm:$0xf0]  ;;  %v8532_v54 = vld [vmem:[#allocation12 + $0x4fc] sm:$0xf0] }
 0x37a   :  { %6289 = vmatpush.bf16.msra.mxu2 %v8003_v9  ;;  %v10111_v9 = vld [vmem:[#allocation12 + $0x2b4] sm:$0xf]  ;;  %v5919_v0 = vadd.f32 %v5918_v13, %v5905_v35  ;;  %v5932_v19 = vpop.f32.mrf.mxu0  ;;  %v8199_v57 = vor.u32 %v10097_v36, %v8196_v23  ;;  %v8587_v39 = vor.u32 %v10198_v3, %v8586_v26  ;;  %v9259_v59 = vor.u32 %v10366_v51, %v9258_v1  ;;  %v10181_v6 = vld [vmem:[#allocation12 + $0x4e4] sm:$0xf]  ;;  %v8868_v36 = vld [vmem:[#allocation12 + $0x79c] sm:$0xf0] }
 0x37b   :  { %v8255_v7 = vor.u32 %v10111_v9, %v8252_v31  ;;  %v5835_v15 = vadd.f32 %v11060_v46, %v5821_v42  ;;  %v8168_v9 = vld [vmem:[#allocation12 + $0x224] sm:$0xf0]  ;;  %v10279_v31 = vld [vmem:[#allocation12 + $0x7f4] sm:$0xf]  ;;  %v10349_v23 = vld [vmem:[#allocation12 + $0xa24] sm:$0xf] }
 0x37c   :  { %6259 = vmatpush.bf16.msra.mxu0 %v9399_v43  ;;  %v8643_v43 = vor.u32 %v10212_v41, %v8642_v45  ;;  %v5933_v18 = vadd.f32 %v5932_v19, %v5919_v0  ;;  %v10490_v48 = vpop.eup %10489  ;;  %v5946_v40 = vpop.f32.mrf.mxu1  ;;  %v10471_v35 = vld [vmem:[#allocation12 + $0xdf0] sm:$0xf0]  ;;  %v8927_v37 = vor.u32 %v10279_v31, %v8924_v25  ;;  %v9650_v41 = vld [vmem:[#allocation12 + $0xda0] sm:$0xf]  ;;  %v8504_v16 = vld [vmem:[#allocation12 + $0x4c4] sm:$0xf0] }
 0x37d   :  { %6218 = vmatpush.bf16.msrb.mxu1 %v8699_v22  ;;  %6302 = vmatpush.bf16.msra.mxu3 %v8255_v7  ;;  %10493 = vtanh.f32 %v5835_v15  ;;  %v8171_v7 = vor.u32 %v10090_v20, %v8168_v9  ;;  %v9679_v14 = vor.u32 %v10471_v35, %v9678_v21  ;;  %v9204_v42 = vld [vmem:[#allocation12 + $0xa3c] sm:$0xf0]  ;;  %v9651_v4 = vor.u32 %v10464_v52, %v9650_v41  ;;  %v10174_v15 = vld [vmem:[#allocation12 + $0x4ac] sm:$0xf]  ;;  %v9176_v20 = vld [vmem:[#allocation12 + $0xa04] sm:$0xf0] }
 0x37e   :  { %6290 = vmatpush.bf16.msra.mxu2 %v7975_v29  ;;  %v8224_v29 = vld [vmem:[#allocation12 + $0x294] sm:$0xf0]  ;;  %v5947_v46 = vadd.f32 %v5946_v40, %v5933_v18  ;;  %v10258_v12 = vld [vmem:[#allocation12 + $0x74c] sm:$0xf]  ;;  %v8840_v18 = vld [vmem:[#allocation12 + $0x764] sm:$0xf0]  ;;  %v8507_v31 = vor.u32 %v10174_v15, %v8504_v16 }
 0x37f   :  { %v8227_v28 = vor.u32 %v10104_v44, %v8224_v29  ;;  %v8560_v44 = vld [vmem:[#allocation12 + $0x534] sm:$0xf0]  ;;  %v10272_v29 = vld [vmem:[#allocation12 + $0x7bc] sm:$0xf]  ;;  %v10450_v40 = vld [vmem:[#allocation12 + $0xd48] sm:$0xf0] }
 0x380   :  { %6260 = vmatpush.bf16.msra.mxu0 %v9371_v62  ;;  %v10492_v62 = vpop.eup %10491  ;;  %10495 = vtanh.f32 %v5947_v46  ;;  %v8899_v13 = vor.u32 %v10272_v29, %v8896_v5  ;;  %v10167_v26 = vld [vmem:[#allocation12 + $0x474] sm:$0xf]  ;;  %v8476_v3 = vld [vmem:[#allocation12 + $0x48c] sm:$0xf0]  ;;  %v9120_v5 = vld [vmem:[#allocation12 + $0x994] sm:$0xf0] }
 0x381   :  { %6219 = vmatpush.bf16.msrb.mxu1 %v8671_v24  ;;  %6303 = vmatpush.bf16.msra.mxu3 %v8227_v28  ;;  %v10356_v24 = vld [vmem:[#allocation12 + $0xa5c] sm:$0xf]  ;;  %v8812_v46 = vld [vmem:[#allocation12 + $0x72c] sm:$0xf0]  ;;  %v10443_v21 = vld [vmem:[#allocation12 + $0xd10] sm:$0xf0] }
 0x382   :  { %6291 = vmatpush.bf16.msra.mxu2 %v7947_v11  ;;  %v10205_v11 = vld [vmem:[#allocation12 + $0x5a0] sm:$0xf0]  ;;  %v9235_v28 = vor.u32 %v10356_v24, %v9232_v58  ;;  %v9148_v1 = vld [vmem:[#allocation12 + $0x9cc] sm:$0xf0]  ;;  %v8090_v58 = vld [vmem:[#allocation12 + $0x168] sm:$0xf] }
 0x383   :  { %v8615_v22 = vor.u32 %v10205_v11, %v8614_v8  ;;  %v10494_v0 = vpop.eup %10493  ;;  %v9622_v8 = vld [vmem:[#allocation12 + $0xd68] sm:$0xf]  ;;  %v10457_v11 = vld [vmem:[#allocation12 + $0xd80] sm:$0xf0]  ;;  %v10059_v16 = vld [vmem:[#allocation12 + $0x110] sm:$0xf0] }
 0x384   :  { %6261 = vmatpush.bf16.msra.mxu0 %v9343_v10  ;;  %v8143_v10 = vor.u32 %v10083_v30, %v8140_v38  ;;  %v9623_v9 = vor.u32 %v10457_v11, %v9622_v8  ;;  %v8118_v30 = vld [vmem:[#allocation12 + $0x1a0] sm:$0xf]  ;;  %v9566_v38 = vld [vmem:[#allocation12 + $0xcf8] sm:$0xf]  ;;  %v10153_v52 = vld [vmem:[#allocation12 + $0x404] sm:$0xf] }
 0x385   :  { %6220 = vmatpush.bf16.msrb.mxu1 %v8643_v43  ;;  %6304 = vmatpush.bf16.msra.mxu3 %v8199_v57  ;;  %v9207_v57 = vor.u32 %v10349_v23, %v9204_v42  ;;  %v9567_v24 = vor.u32 %v10443_v21, %v9566_v38  ;;  %v9510_v42 = vld [vmem:[#allocation12 + $0xc88] sm:$0xf]  ;;  %v10314_v11 = vld [vmem:[#allocation12 + $0x90c] sm:$0xf] }
 0x386   :  { %6292 = vmatpush.bf16.msra.mxu2 %v7919_v34  ;;  %v6523_v34 = vpack.c.bf16 %v10492_v62, %v10490_v48  ;;  %v10496_v43 = vpop.eup %10495  ;;  %v9594_v48 = vld [vmem:[#allocation12 + $0xd30] sm:$0xf]  ;;  %v10251_v62 = vld [vmem:[#allocation12 + $0x714] sm:$0xf]  ;;  %v9064_v15 = vld [vmem:[#allocation12 + $0x924] sm:$0xf0] }
 0x387   :  { %v6527_v27 = vpack.c.bf16 %v10496_v43, %v10494_v0  ;;  %v9595_v51 = vor.u32 %v10450_v40, %v9594_v48  ;;  %v8815_v35 = vor.u32 %v10251_v62, %v8812_v46  ;;  %v8062_v0 = vld [vmem:[#allocation12 + $0x130] sm:$0xf]  ;;  %v10429_v43 = vld [vmem:[#allocation12 + $0xca0] sm:$0xf0]  ;;  %v9067_v48 = vor.u32 %v10314_v11, %v9064_v15  ;;  %v9456_v62 = vld [vmem:[#allocation12 + $0xc34] sm:$0xf0] }
 0x388   :  { %6262 = vmatpush.bf16.msra.mxu0 %v9315_v63  ;;  %6531 = vst [vmem:[%s11199_s9] sm:$0xff] %v6523_v34  ;;  %v8535_v63 = vor.u32 %v10181_v6, %v8532_v54  ;;  %v10080_v34 = vld [vmem:[#allocation12 + $0x1b8] sm:$0xf0]  ;;  %v10321_v6 = vld [vmem:[#allocation12 + $0x944] sm:$0xf]  ;;  %v9092_v54 = vld [vmem:[#allocation12 + $0x95c] sm:$0xf0] }
 0x389   :  { %6293 = vmatmul.bf16.vlgmr.msra.gmra.mxu2 %v10969_v60  ;;  %6221 = vmatpush.bf16.msrb.mxu1 %v8615_v22  ;;  %6535 = vst [vmem:[%s11199_s9 + $0x1c] sm:$0xff] %v6527_v27  ;;  %v8843_v22 = vor.u32 %v10258_v12, %v8840_v18  ;;  %v8119_v29 = vor.u32 %v10080_v34, %v8118_v30  ;;  %v10146_v27 = vld [vmem:[#allocation12 + $0x3cc] sm:$0xf]  ;;  %v9482_v12 = vld [vmem:[#allocation12 + $0xc50] sm:$0xf] }
 0x38a   :  { %6341 = vmatpush.bf16.msrb.mxu2 %v9011_v55  ;;  %v10188_v55 = vld [vmem:[#allocation12 + $0x51c] sm:$0xf]  ;;  %6305 = vmatpush.bf16.msra.mxu3 %v8171_v7  ;;  %v8479_v7 = vor.u32 %v10167_v26, %v8476_v3  ;;  %v10422_v18 = vld [vmem:[#allocation12 + $0xc68] sm:$0xf0]  ;;  %v9036_v40 = vld [vmem:[#allocation12 + $0x8ec] sm:$0xf0] }
 0x38b   :  { %v8563_v45 = vor.u32 %v10188_v55, %v8560_v44  ;;  %v10160_v55 = vld [vmem:[#allocation12 + $0x43c] sm:$0xf]  ;;  %v8448_v44 = vld [vmem:[#allocation12 + $0x454] sm:$0xf0]  ;;  %v8006_v46 = vld [vmem:[#allocation12 + $0xc0] sm:$0xf] }
 0x38c   :  { %6263 = vmatpush.bf16.msra.mxu0 %v9287_v49  ;;  %v10335_v49 = vld [vmem:[#allocation12 + $0x9b4] sm:$0xf]  ;;  %v10412_v3 = vld [vmem:[#allocation12 + $0xc1c] sm:$0xf]  ;;  %v9372_v15 = vld [vmem:[#allocation12 + $0xb8c] sm:$0xf0] }
 0x38d   :  { %6222 = vmatpush.bf16.msrb.mxu1 %v8587_v39  ;;  %v10328_v39 = vld [vmem:[#allocation12 + $0x97c] sm:$0xf]  ;;  %v9459_v21 = vor.u32 %v10412_v3, %v9456_v62  ;;  %v10391_v11 = vld [vmem:[#allocation12 + $0xb74] sm:$0xf]  ;;  %v9344_v3 = vld [vmem:[#allocation12 + $0xb54] sm:$0xf0] }
 0x38e   :  { %6342 = vmatpush.bf16.msrb.mxu2 %v8983_v50  ;;  %v10265_v50 = vld [vmem:[#allocation12 + $0x784] sm:$0xf]  ;;  %6306 = vmatpush.bf16.msra.mxu3 %v8143_v10  ;;  %v9538_v10 = vld [vmem:[#allocation12 + $0xcc0] sm:$0xf]  ;;  %v9123_v41 = vor.u32 %v10328_v39, %v9120_v5  ;;  %v10136_v30 = vld [vmem:[#allocation12 + $0x378] sm:$0xf0] }
 0x38f   :  { %v8871_v19 = vor.u32 %v10265_v50, %v8868_v36  ;;  %v10066_v36 = vld [vmem:[#allocation12 + $0x148] sm:$0xf0]  ;;  %v9428_v39 = vld [vmem:[#allocation12 + $0xbfc] sm:$0xf0]  ;;  %v7978_v5 = vld [vmem:[#allocation12 + $0x88] sm:$0xf] }
 0x390   :  { %6264 = vmatpush.bf16.msra.mxu0 %v9259_v59  ;;  %6223 = vmatmul.bf16.vlgmr.msrb.gmra.mxu1 %v10978_v33  ;;  %v10073_v59 = vld [vmem:[#allocation12 + $0x180] sm:$0xf0]  ;;  %v8063_v8 = vor.u32 %v10066_v36, %v8062_v0  ;;  %v8286_v0 = vld [vmem:[#allocation12 + $0x2f0] sm:$0xf]  ;;  %v10122_v36 = vld [vmem:[#allocation12 + $0x308] sm:$0xf0] }
 0x391   :  { %6271 = vmatpush.bf16.msra.mxu1 %v9679_v14  ;;  %6307 = vmatmul.bf16.vlgmr.msra.gmra.mxu3 %v10957_v32  ;;  %v8451_v14 = vor.u32 %v10160_v55, %v8448_v44 }
 0x392   :  { %6343 = vmatpush.bf16.msrb.mxu2 %v8955_v61  ;;  %6355 = vmatpush.bf16.msrb.mxu3 %v9235_v28  ;;  %v10342_v61 = vld [vmem:[#allocation12 + $0x9ec] sm:$0xf]  ;;  %v8091_v28 = vor.u32 %v10073_v59, %v8090_v58  ;;  %v8314_v58 = vld [vmem:[#allocation12 + $0x328] sm:$0xf]  ;;  %v10129_v59 = vld [vmem:[#allocation12 + $0x340] sm:$0xf0] }
 0x393   :  { %6265 = vmatmul.bf16.vlgmr.msra.gmra.mxu0 %v10999_v17  ;;  %v9179_v25 = vor.u32 %v10342_v61, %v9176_v20  ;;  %v10139_v20 = vld [vmem:[#allocation12 + $0x394] sm:$0xf] }
 0x394   :  { %6313 = vmatpush.bf16.msrb.mxu0 %v8563_v45  ;;  %v10436_v45 = vld [vmem:[#allocation12 + $0xcd8] sm:$0xf0] }
 0x395   :  { %6272 = vmatpush.bf16.msra.mxu1 %v9651_v4  ;;  %v9539_v50 = vor.u32 %v10436_v45, %v9538_v10  ;;  %v9095_v4 = vor.u32 %v10321_v6, %v9092_v54  ;;  %v10230_v45 = vld [vmem:[#allocation12 + $0x66c] sm:$0xf]  ;;  %v9400_v6 = vld [vmem:[#allocation12 + $0xbc4] sm:$0xf0]  ;;  %v7950_v54 = vld [vmem:[#allocation12 + $0x50] sm:$0xf] }
 0x396   :  { %6344 = vmatpush.bf16.msrb.mxu2 %v8927_v37  ;;  %6356 = vmatpush.bf16.msrb.mxu3 %v9207_v57  ;;  %v9151_v37 = vor.u32 %v10335_v49, %v9148_v1  ;;  %v9511_v57 = vor.u32 %v10429_v43, %v9510_v42  ;;  %v9483_v49 = vor.u32 %v10422_v18, %v9482_v12  ;;  %v10052_v1 = vld [vmem:[#allocation12 + $0xd8] sm:$0xf0]  ;;  %v10115_v12 = vld [vmem:[#allocation12 + $0x2d0] sm:$0xf0]  ;;  %v11108_v18 = vpop.f32.mrf.mxu3 }
 0x397   :  { %v8007_v55 = vor.u32 %v10052_v1, %v8006_v46  ;;  %v8230_v46 = vld [vmem:[#allocation12 + $0x280] sm:$0xf]  ;;  %v11110_v1 = vpop.f32.mrf.mxu0 }
 0x398   :  { %6314 = vmatpush.bf16.msrb.mxu0 %v8535_v63  ;;  %v8392_v63 = vld [vmem:[#allocation12 + $0x3e4] sm:$0xf0] }
 0x399   :  { %6273 = vmatpush.bf16.msra.mxu1 %v9623_v9  ;;  %v8395_v61 = vor.u32 %v10146_v27, %v8392_v63  ;;  %v8364_v9 = vld [vmem:[#allocation12 + $0x3ac] sm:$0xf0] }
 0x39a   :  { %6345 = vmatpush.bf16.msrb.mxu2 %v8899_v13  ;;  %6357 = vmatpush.bf16.msrb.mxu3 %v9179_v25  ;;  %v8420_v13 = vld [vmem:[#allocation12 + $0x41c] sm:$0xf0]  ;;  %v8784_v25 = vld [vmem:[#allocation12 + $0x6f4] sm:$0xf0]  ;;  %v8367_v34 = vor.u32 %v10139_v20, %v8364_v9  ;;  %v8700_v27 = vld [vmem:[#allocation12 + $0x64c] sm:$0xf0] }
 0x39b   :  { %v8423_v23 = vor.u32 %v10153_v52, %v8420_v13  ;;  %v8315_v13 = vor.u32 %v10129_v59, %v8314_v58  ;;  %v9014_v20 = vld [vmem:[#allocation12 + $0x8a0] sm:$0xf]  ;;  %v10304_v9 = vld [vmem:[#allocation12 + $0x8b8] sm:$0xf0]  ;;  %v8958_v59 = vld [vmem:[#allocation12 + $0x830] sm:$0xf] }
 0x39c   :  { %6315 = vmatpush.bf16.msrb.mxu0 %v8507_v31  ;;  %v10307_v31 = vld [vmem:[#allocation12 + $0x8d4] sm:$0xf]  ;;  %v9015_v62 = vor.u32 %v10304_v9, %v9014_v20  ;;  %v8566_v9 = vld [vmem:[#allocation12 + $0x520] sm:$0xf] }
 0x39d   :  { %6274 = vmatpush.bf16.msra.mxu1 %v9595_v51  ;;  %v8342_v51 = vld [vmem:[#allocation12 + $0x360] sm:$0xf]  ;;  %v9039_v38 = vor.u32 %v10307_v31, %v9036_v40  ;;  %v9375_v31 = vor.u32 %v10391_v11, %v9372_v15  ;;  %v8672_v40 = vld [vmem:[#allocation12 + $0x614] sm:$0xf0] }
 0x39e   :  { %6346 = vmatpush.bf16.msrb.mxu2 %v8871_v19  ;;  %6358 = vmatpush.bf16.msrb.mxu3 %v9151_v37  ;;  %v8034_v19 = vld [vmem:[#allocation12 + $0xf8] sm:$0xf]  ;;  %v8756_v37 = vld [vmem:[#allocation12 + $0x6bc] sm:$0xf0]  ;;  %v8343_v44 = vor.u32 %v10136_v30, %v8342_v51  ;;  %v8986_v30 = vld [vmem:[#allocation12 + $0x868] sm:$0xf] }
 0x39f   :  { %v8035_v26 = vor.u32 %v10059_v16, %v8034_v19  ;;  %v7922_v19 = vld [vmem:[#allocation12 + $0x18] sm:$0xf] }
 0x3a0   :  { %6316 = vmatpush.bf16.msrb.mxu0 %v8479_v7  ;;  %v8258_v16 = vld [vmem:[#allocation12 + $0x2b8] sm:$0xf] }
 0x3a1   :  { %6275 = vmatpush.bf16.msra.mxu1 %v9567_v24  ;;  %v10045_v24 = vld [vmem:[#allocation12 + $0xa0] sm:$0xf0]  ;;  %v8146_v11 = vld [vmem:[#allocation12 + $0x1d8] sm:$0xf] }
 0x3a2   :  { %6347 = vmatpush.bf16.msrb.mxu2 %v8843_v22  ;;  %6359 = vmatpush.bf16.msrb.mxu3 %v9123_v41  ;;  %v10244_v22 = vld [vmem:[#allocation12 + $0x6dc] sm:$0xf]  ;;  %v8728_v41 = vld [vmem:[#allocation12 + $0x684] sm:$0xf0]  ;;  %v7979_v52 = vor.u32 %v10045_v24, %v7978_v5  ;;  %v10101_v5 = vld [vmem:[#allocation12 + $0x260] sm:$0xf0]  ;;  %v11114_v24 = vpop.f32.mrf.mxu1 }
 0x3a3   :  { %v8787_v7 = vor.u32 %v10244_v22, %v8784_v25  ;;  %v8731_v42 = vor.u32 %v10230_v45, %v8728_v41  ;;  %v8259_v25 = vor.u32 %v10115_v12, %v8258_v16  ;;  %v10202_v45 = vld [vmem:[#allocation12 + $0x58c] sm:$0xf]  ;;  %v8616_v41 = vld [vmem:[#allocation12 + $0x5a4] sm:$0xf0]  ;;  %v10087_v16 = vld [vmem:[#allocation12 + $0x1f0] sm:$0xf0] }
 0x3a4   :  { %6317 = vmatpush.bf16.msrb.mxu0 %v8451_v14  ;;  %v10468_v12 = vld [vmem:[#allocation12 + $0xddc] sm:$0xf] }
 0x3a5   :  { %6276 = vmatpush.bf16.msra.mxu1 %v9539_v50  ;;  %v10038_v50 = vld [vmem:[#allocation12 + $0x68] sm:$0xf0] }
 0x3a6   :  { %6348 = vmatpush.bf16.msrb.mxu2 %v8815_v35  ;;  %6360 = vmatpush.bf16.msrb.mxu3 %v9095_v4  ;;  %v10237_v35 = vld [vmem:[#allocation12 + $0x6a4] sm:$0xf]  ;;  %v10223_v4 = vld [vmem:[#allocation12 + $0x634] sm:$0xf]  ;;  %v7951_v63 = vor.u32 %v10038_v50, %v7950_v54  ;;  %v8174_v50 = vld [vmem:[#allocation12 + $0x210] sm:$0xf] }
 0x3a7   :  { %v8759_v14 = vor.u32 %v10237_v35, %v8756_v37 }
 0x3a8   :  { %6318 = vmatpush.bf16.msrb.mxu0 %v8423_v23  ;;  %v11105_v23 = vpop.f32.mrf.mxu2 }
 0x3a9   :  { %6349 = vmatmul.bf16.vlgmr.msrb.gmra.mxu2 %v10986_v53  ;;  %6277 = vmatpush.bf16.msra.mxu1 %v9511_v57  ;;  %v10031_v57 = vld [vmem:[#allocation12 + $0x30] sm:$0xf0] }
 0x3aa   :  { %6397 = vmatpush.bf16.msra.mxu2 %v8119_v29  ;;  %6361 = vmatpush.bf16.msrb.mxu3 %v9067_v48  ;;  %v10405_v29 = vld [vmem:[#allocation12 + $0xbe4] sm:$0xf]  ;;  %v10216_v48 = vld [vmem:[#allocation12 + $0x5fc] sm:$0xf]  ;;  %v7923_v22 = vor.u32 %v10031_v57, %v7922_v19  ;;  %v11121_v19 = vpop.f32.mrf.mxu0 }
 0x3ab   :  { %v9431_v10 = vor.u32 %v10405_v29, %v9428_v39  ;;  %v8675_v51 = vor.u32 %v10216_v48, %v8672_v40  ;;  %v8202_v39 = vld [vmem:[#allocation12 + $0x248] sm:$0xf]  ;;  %v8902_v48 = vld [vmem:[#allocation12 + $0x7c0] sm:$0xf] }
 0x3ac   :  { %6319 = vmatpush.bf16.msrb.mxu0 %v8395_v61  ;;  %v8703_v61 = vor.u32 %v10223_v4, %v8700_v27  ;;  %v10195_v4 = vld [vmem:[#allocation12 + $0x554] sm:$0xf] }
 0x3ad   :  { %6278 = vmatpush.bf16.msra.mxu1 %v9483_v49  ;;  %v10108_v49 = vld [vmem:[#allocation12 + $0x298] sm:$0xf0] }
 0x3ae   :  { %6398 = vmatpush.bf16.msra.mxu2 %v8091_v28  ;;  %6362 = vmatpush.bf16.msrb.mxu3 %v9039_v38  ;;  %v10398_v28 = vld [vmem:[#allocation12 + $0xbac] sm:$0xf]  ;;  %v10209_v38 = vld [vmem:[#allocation12 + $0x5c4] sm:$0xf]  ;;  %v8231_v37 = vor.u32 %v10108_v49, %v8230_v46  ;;  %v11125_v49 = vpop.f32.mrf.mxu1 }
 0x3af   :  { %v9403_v43 = vor.u32 %v10398_v28, %v9400_v6  ;;  %v10370_v28 = vld [vmem:[#allocation12 + $0xacc] sm:$0xf]  ;;  %v9288_v6 = vld [vmem:[#allocation12 + $0xae4] sm:$0xf0] }
 0x3b0   :  { %6320 = vmatpush.bf16.msrb.mxu0 %v8367_v34  ;;  %6279 = vmatmul.bf16.vlgmr.msra.gmra.mxu1 %v11006_v2  ;;  %v10297_v34 = vld [vmem:[#allocation12 + $0x880] sm:$0xf0]  ;;  %v11112_v35 = vpop.f32.mrf.mxu2  ;;  %v9291_v27 = vor.u32 %v10370_v28, %v9288_v6  ;;  %v8510_v28 = vld [vmem:[#allocation12 + $0x4b0] sm:$0xf]  ;;  %v10178_v6 = vld [vmem:[#allocation12 + $0x4c8] sm:$0xf0] }
 0x3b1   :  { %6327 = vmatpush.bf16.msrb.mxu1 %v8787_v7  ;;  %6363 = vmatmul.bf16.vlgmr.msrb.gmra.mxu3 %v10991_v47  ;;  %v8987_v29 = vor.u32 %v10297_v34, %v8986_v30  ;;  %v10461_v34 = vld [vmem:[#allocation12 + $0xda4] sm:$0xf] }
 0x3b2   :  { %6399 = vmatpush.bf16.msra.mxu2 %v8063_v8  ;;  %6411 = vmatpush.bf16.msra.mxu3 %v8343_v44  ;;  %v8287_v8 = vor.u32 %v10122_v36, %v8286_v0  ;;  %v9316_v44 = vld [vmem:[#allocation12 + $0xb1c] sm:$0xf0]  ;;  %v10094_v0 = vld [vmem:[#allocation12 + $0x228] sm:$0xf0]  ;;  %v8930_v36 = vld [vmem:[#allocation12 + $0x7f8] sm:$0xf] }
 0x3b3   :  { %6321 = vmatmul.bf16.vlgmr.msrb.gmra.mxu0 %v10982_v56  ;;  %v8175_v57 = vor.u32 %v10094_v0, %v8174_v50  ;;  %v10262_v0 = vld [vmem:[#allocation12 + $0x768] sm:$0xf0] }
 0x3b4   :  { %6369 = vmatpush.bf16.msra.mxu0 %v9459_v21  ;;  %v8644_v21 = vld [vmem:[#allocation12 + $0x5dc] sm:$0xf0] }
 0x3b5   :  { %6328 = vmatpush.bf16.msrb.mxu1 %v8759_v14  ;;  %v8647_v58 = vor.u32 %v10209_v38, %v8644_v21  ;;  %v10290_v14 = vld [vmem:[#allocation12 + $0x848] sm:$0xf0] }
 0x3b6   :  { %6400 = vmatpush.bf16.msra.mxu2 %v8035_v26  ;;  %6412 = vmatpush.bf16.msra.mxu3 %v8315_v13  ;;  %v10384_v26 = vld [vmem:[#allocation12 + $0xb3c] sm:$0xf]  ;;  %v8203_v13 = vor.u32 %v10101_v5, %v8202_v39  ;;  %v8959_v54 = vor.u32 %v10290_v14, %v8958_v59  ;;  %v9210_v39 = vld [vmem:[#allocation12 + $0xa28] sm:$0xf]  ;;  %v10353_v5 = vld [vmem:[#allocation12 + $0xa40] sm:$0xf0]  ;;  %v11127_v59 = vpop.f32.mrf.mxu0 }
 0x3b7   :  { %v9347_v7 = vor.u32 %v10384_v26, %v9344_v3  ;;  %v10360_v26 = vld [vmem:[#allocation12 + $0xa78] sm:$0xf0] }
 0x3b8   :  { %6370 = vmatpush.bf16.msra.mxu0 %v9431_v10  ;;  %v11119_v15 = vpop.f32.mrf.mxu2 }
 0x3b9   :  { %6329 = vmatpush.bf16.msrb.mxu1 %v8731_v42  ;;  %v8619_v42 = vor.u32 %v10202_v45, %v8616_v41  ;;  %v9624_v45 = vld [vmem:[#allocation12 + $0xd84] sm:$0xf0] }
 0x3ba   :  { %6401 = vmatpush.bf16.msra.mxu2 %v8007_v55  ;;  %6413 = vmatpush.bf16.msra.mxu3 %v8287_v8  ;;  %v10377_v55 = vld [vmem:[#allocation12 + $0xb04] sm:$0xf]  ;;  %v9260_v8 = vld [vmem:[#allocation12 + $0xaac] sm:$0xf0] }
 0x3bb   :  { %v9319_v10 = vor.u32 %v10377_v55, %v9316_v44  ;;  %v10185_v55 = vld [vmem:[#allocation12 + $0x500] sm:$0xf0]  ;;  %v8874_v44 = vld [vmem:[#allocation12 + $0x788] sm:$0xf] }
 0x3bc   :  { %6371 = vmatpush.bf16.msra.mxu0 %v9403_v43  ;;  %v10283_v43 = vld [vmem:[#allocation12 + $0x810] sm:$0xf0] }
 0x3bd   :  { %6330 = vmatpush.bf16.msrb.mxu1 %v8703_v61  ;;  %v9680_v61 = vld [vmem:[#allocation12 + $0xdf4] sm:$0xf0]  ;;  %v8931_v20 = vor.u32 %v10283_v43, %v8930_v36  ;;  %v9182_v36 = vld [vmem:[#allocation12 + $0x9f0] sm:$0xf] }
 0x3be   :  { %6402 = vmatpush.bf16.msra.mxu2 %v7979_v52  ;;  %6414 = vmatpush.bf16.msra.mxu3 %v8259_v25  ;;  %v11117_v52 = vpop.f32.mrf.mxu3  ;;  %v9238_v25 = vld [vmem:[#allocation12 + $0xa60] sm:$0xf] }
 0x3bf   :  { %v9239_v21 = vor.u32 %v10360_v26, %v9238_v25 }
 0x3c0   :  { %6372 = vmatpush.bf16.msra.mxu0 %v9375_v31  ;;  %v10192_v31 = vld [vmem:[#allocation12 + $0x538] sm:$0xf0]  ;;  %v11129_v50 = vpop.f32.mrf.mxu2 }
 0x3c1   :  { %6331 = vmatpush.bf16.msrb.mxu1 %v8675_v51  ;;  %v8147_v51 = vor.u32 %v10087_v16, %v8146_v11  ;;  %v8567_v30 = vor.u32 %v10192_v31, %v8566_v9  ;;  %v10171_v16 = vld [vmem:[#allocation12 + $0x490] sm:$0xf0]  ;;  %v9154_v9 = vld [vmem:[#allocation12 + $0x9b8] sm:$0xf] }
 0x3c2   :  { %6403 = vmatpush.bf16.msra.mxu2 %v7951_v63  ;;  %6415 = vmatpush.bf16.msra.mxu3 %v8231_v37  ;;  %v10363_v63 = vld [vmem:[#allocation12 + $0xa94] sm:$0xf]  ;;  %v8538_v37 = vld [vmem:[#allocation12 + $0x4e8] sm:$0xf] }
 0x3c3   :  { %v9263_v3 = vor.u32 %v10363_v63, %v9260_v8  ;;  %v8539_v14 = vor.u32 %v10185_v55, %v8538_v37  ;;  %v9596_v63 = vld [vmem:[#allocation12 + $0xd4c] sm:$0xf0]  ;;  %v10433_v37 = vld [vmem:[#allocation12 + $0xcc4] sm:$0xf]  ;;  %v9540_v55 = vld [vmem:[#allocation12 + $0xcdc] sm:$0xf0] }
 0x3c4   :  { %6373 = vmatpush.bf16.msra.mxu0 %v9347_v7  ;;  %v9652_v7 = vld [vmem:[#allocation12 + $0xdbc] sm:$0xf0] }
 0x3c5   :  { %6332 = vmatpush.bf16.msrb.mxu1 %v8647_v58  ;;  %v9655_v58 = vor.u32 %v10461_v34, %v9652_v7  ;;  %v9126_v34 = vld [vmem:[#allocation12 + $0x980] sm:$0xf]  ;;  %v10332_v7 = vld [vmem:[#allocation12 + $0x998] sm:$0xf0] }
 0x3c6   :  { %6404 = vmatpush.bf16.msra.mxu2 %v7923_v22  ;;  %6416 = vmatpush.bf16.msra.mxu3 %v8203_v13  ;;  %v10276_v22 = vld [vmem:[#allocation12 + $0x7d8] sm:$0xf0]  ;;  %v11123_v46 = vpop.f32.mrf.mxu3  ;;  %v9211_v13 = vor.u32 %v10353_v5, %v9210_v39  ;;  %v10157_v39 = vld [vmem:[#allocation12 + $0x420] sm:$0xf0] }
 0x3c7   :  { %v8903_v38 = vor.u32 %v10276_v22, %v8902_v48  ;;  %v9568_v22 = vld [vmem:[#allocation12 + $0xd14] sm:$0xf0]  ;;  %v11140_v5 = vld [vmem:[#allocation13] sm:$0xff] }
 0x3c8   :  { %6374 = vmatpush.bf16.msra.mxu0 %v9319_v10  ;;  %v10454_v10 = vld [vmem:[#allocation12 + $0xd6c] sm:$0xf] }
 0x3c9   :  { %6405 = vmatmul.bf16.vlgmr.msra.gmra.mxu2 %v10969_v60  ;;  %v8588_v60 = vld [vmem:[#allocation12 + $0x56c] sm:$0xf0]  ;;  %6333 = vmatpush.bf16.msrb.mxu1 %v8619_v42  ;;  %v10346_v42 = vld [vmem:[#allocation12 + $0xa08] sm:$0xf0]  ;;  %v9627_v43 = vor.u32 %v10454_v10, %v9624_v45  ;;  %v9098_v45 = vld [vmem:[#allocation12 + $0x948] sm:$0xf] }
 0x3ca   :  { %6453 = vmatpush.bf16.msrb.mxu2 %v9015_v62  ;;  %v8591_v40 = vor.u32 %v10195_v4, %v8588_v60  ;;  %v9683_v62 = vor.u32 %v10468_v12, %v9680_v61  ;;  %6417 = vmatpush.bf16.msra.mxu3 %v8175_v57  ;;  %v11134_v4 = vpop.f32.mrf.mxu1  ;;  %v8511_v60 = vor.u32 %v10178_v6, %v8510_v28  ;;  %v8482_v57 = vld [vmem:[#allocation12 + $0x478] sm:$0xf]  ;;  %v10426_v6 = vld [vmem:[#allocation12 + $0xc8c] sm:$0xf] }
 0x3cb   :  { %v9183_v11 = vor.u32 %v10346_v42, %v9182_v36  ;;  %v8818_v12 = vld [vmem:[#allocation12 + $0x718] sm:$0xf]  ;;  %v8483_v48 = vor.u32 %v10171_v16, %v8482_v57  ;;  %v8398_v42 = vld [vmem:[#allocation12 + $0x3d0] sm:$0xf]  ;;  %v10419_v57 = vld [vmem:[#allocation12 + $0xc54] sm:$0xf] }
 0x3cc   :  { %6375 = vmatpush.bf16.msra.mxu0 %v9291_v27  ;;  %v10447_v27 = vld [vmem:[#allocation12 + $0xd34] sm:$0xf] }
 0x3cd   :  { %6334 = vmatpush.bf16.msrb.mxu1 %v8591_v40  ;;  %v9599_v31 = vor.u32 %v10447_v27, %v9596_v63  ;;  %v10440_v40 = vld [vmem:[#allocation12 + $0xcfc] sm:$0xf]  ;;  %v9070_v63 = vld [vmem:[#allocation12 + $0x910] sm:$0xf] }
 0x3ce   :  { %6454 = vmatpush.bf16.msrb.mxu2 %v8987_v29  ;;  %v10269_v29 = vld [vmem:[#allocation12 + $0x7a0] sm:$0xf0]  ;;  %6418 = vmatpush.bf16.msra.mxu3 %v8147_v51  ;;  %v11136_v61 = vpop.f32.mrf.mxu3  ;;  %v6070_v51 = vpop.f32.mrf.mxu2 }
 0x3cf   :  { %v8875_v41 = vor.u32 %v10269_v29, %v8874_v44  ;;  %v9127_v44 = vor.u32 %v10332_v7, %v9126_v34  ;;  %v8426_v29 = vld [vmem:[#allocation12 + $0x408] sm:$0xf]  ;;  %v10416_v34 = vld [vmem:[#allocation12 + $0xc38] sm:$0xf0] }
 0x3d0   :  { %6376 = vmatpush.bf16.msra.mxu0 %v9263_v3  ;;  %6335 = vmatmul.bf16.vlgmr.msrb.gmra.mxu1 %v10978_v33  ;;  %v8454_v3 = vld [vmem:[#allocation12 + $0x440] sm:$0xf]  ;;  %v8427_v28 = vor.u32 %v10157_v39, %v8426_v29  ;;  %v8762_v39 = vld [vmem:[#allocation12 + $0x6a8] sm:$0xf] }
 0x3d1   :  { %6383 = vmatpush.bf16.msra.mxu1 %v9683_v62  ;;  %6419 = vmatmul.bf16.vlgmr.msra.gmra.mxu3 %v10957_v32  ;;  %v10339_v32 = vld [vmem:[#allocation12 + $0x9d0] sm:$0xf0]  ;;  %v10164_v62 = vld [vmem:[#allocation12 + $0x458] sm:$0xf0] }
 0x3d2   :  { %6455 = vmatpush.bf16.msrb.mxu2 %v8959_v54  ;;  %6467 = vmatpush.bf16.msrb.mxu3 %v9239_v21  ;;  %v8846_v54 = vld [vmem:[#allocation12 + $0x750] sm:$0xf]  ;;  %v9155_v26 = vor.u32 %v10339_v32, %v9154_v9  ;;  %v8455_v21 = vor.u32 %v10164_v62, %v8454_v3  ;;  %v11143_v10 = vpop.f32.mrf.mxu1  ;;  %v8370_v9 = vld [vmem:[#allocation12 + $0x398] sm:$0xf]  ;;  %v10143_v32 = vld [vmem:[#allocation12 + $0x3b0] sm:$0xf0] }
 0x3d3   :  { %6377 = vmatmul.bf16.vlgmr.msra.gmra.mxu0 %v10999_v17  ;;  %v8847_v8 = vor.u32 %v10262_v0, %v8846_v54  ;;  %v9512_v54 = vld [vmem:[#allocation12 + $0xca4] sm:$0xf0]  ;;  %v3410_v0 = vperm.slane %v11140_v5, 3  ;;  %v10311_v3 = vld [vmem:[#allocation12 + $0x8f0] sm:$0xf0] }
 0x3d4   :  { %6425 = vmatpush.bf16.msrb.mxu0 %v8567_v30  ;;  %v11138_v30 = vpop.f32.mrf.mxu0  ;;  %v9462_v62 = vld [vmem:[#allocation12 + $0xc20] sm:$0xf] }
 0x3d5   :  { %6384 = vmatpush.bf16.msra.mxu1 %v9655_v58  ;;  %v3409_v58 = vperm.slane %v11140_v5, 2  ;;  %v9463_v29 = vor.u32 %v10416_v34, %v9462_v62  ;;  %v10388_v62 = vld [vmem:[#allocation12 + $0xb58] sm:$0xf0] }
 0x3d6   :  { %6456 = vmatpush.bf16.msrb.mxu2 %v8931_v20  ;;  %6468 = vmatpush.bf16.msrb.mxu3 %v9211_v13  ;;  %v10255_v20 = vld [vmem:[#allocation12 + $0x730] sm:$0xf0]  ;;  %v9543_v13 = vor.u32 %v10433_v37, %v9540_v55  ;;  %v6072_v16 = vpop.f32.mrf.mxu2  ;;  %v8371_v37 = vor.u32 %v10143_v32, %v8370_v9  ;;  %v9378_v9 = vld [vmem:[#allocation12 + $0xb78] sm:$0xf] }
 0x3d7   :  { %v8819_v25 = vor.u32 %v10255_v20, %v8818_v12  ;;  %v9484_v20 = vld [vmem:[#allocation12 + $0xc6c] sm:$0xf0]  ;;  %v10395_v32 = vld [vmem:[#allocation12 + $0xb90] sm:$0xf0] }
 0x3d8   :  { %6426 = vmatpush.bf16.msrb.mxu0 %v8539_v14  ;;  %v6084_v14 = vpop.f32.mrf.mxu3 }
 0x3d9   :  { %6385 = vmatpush.bf16.msra.mxu1 %v9627_v43  ;;  %v10150_v43 = vld [vmem:[#allocation12 + $0x3e8] sm:$0xf0] }
 0x3da   :  { %6457 = vmatpush.bf16.msrb.mxu2 %v8903_v38  ;;  %6469 = vmatpush.bf16.msrb.mxu3 %v9183_v11  ;;  %v9571_v38 = vor.u32 %v10440_v40, %v9568_v22  ;;  %v9515_v11 = vor.u32 %v10426_v6, %v9512_v54  ;;  %v8399_v12 = vor.u32 %v10150_v43, %v8398_v42  ;;  %v9042_v40 = vld [vmem:[#allocation12 + $0x8d8] sm:$0xf]  ;;  %v8790_v22 = vld [vmem:[#allocation12 + $0x6e0] sm:$0xf] }
 0x3db   :  { %v6073_v42 = vadd.f32 %v6072_v16, %v3410_v0 }
 0x3dc   :  { %6427 = vmatpush.bf16.msrb.mxu0 %v8511_v60  ;;  %v5959_v60 = vadd.f32 %v11105_v23, %v3409_v58  ;;  %v6098_v27 = vpop.f32.mrf.mxu0  ;;  %v10248_v23 = vld [vmem:[#allocation12 + $0x6f8] sm:$0xf0] }
 0x3dd   :  { %6386 = vmatpush.bf16.msra.mxu1 %v9599_v31  ;;  %v6071_v31 = vadd.f32 %v6070_v51, %v3410_v0  ;;  %v8791_v51 = vor.u32 %v10248_v23, %v8790_v22  ;;  %v8678_v22 = vld [vmem:[#allocation12 + $0x600] sm:$0xf]  ;;  %v10220_v23 = vld [vmem:[#allocation12 + $0x618] sm:$0xf0] }
 0x3de   :  { %6458 = vmatpush.bf16.msrb.mxu2 %v8875_v41  ;;  %6470 = vmatpush.bf16.msrb.mxu3 %v9155_v26  ;;  %v10325_v41 = vld [vmem:[#allocation12 + $0x960] sm:$0xf0]  ;;  %v6112_v26 = vpop.f32.mrf.mxu1  ;;  %v6126_v6 = vpop.f32.mrf.mxu2 }
 0x3df   :  { %v9099_v36 = vor.u32 %v10325_v41, %v9098_v45  ;;  %v6085_v7 = vadd.f32 %v6084_v14, %v6071_v31  ;;  %v10241_v45 = vld [vmem:[#allocation12 + $0x6c0] sm:$0xf0]  ;;  %v9434_v41 = vld [vmem:[#allocation12 + $0xbe8] sm:$0xf] }
 0x3e0   :  { %6428 = vmatpush.bf16.msrb.mxu0 %v8483_v48 }
 0x3e1   :  { %6387 = vmatpush.bf16.msra.mxu1 %v9571_v38  ;;  %v6099_v55 = vadd.f32 %v6098_v27, %v6085_v7  ;;  %v10234_v27 = vld [vmem:[#allocation12 + $0x688] sm:$0xf0] }
 0x3e2   :  { %6459 = vmatpush.bf16.msrb.mxu2 %v8847_v8  ;;  %6471 = vmatpush.bf16.msrb.mxu3 %v9127_v44  ;;  %v10318_v8 = vld [vmem:[#allocation12 + $0x928] sm:$0xf0]  ;;  %v9043_v44 = vor.u32 %v10311_v3, %v9042_v40  ;;  %v9350_v3 = vld [vmem:[#allocation12 + $0xb40] sm:$0xf] }
 0x3e3   :  { %v9071_v48 = vor.u32 %v10318_v8, %v9070_v63  ;;  %v10402_v63 = vld [vmem:[#allocation12 + $0xbc8] sm:$0xf0] }
 0x3e4   :  { %6429 = vmatpush.bf16.msrb.mxu0 %v8455_v21  ;;  %v6086_v21 = vpop.f32.mrf.mxu3  ;;  %v6100_v54 = vpop.f32.mrf.mxu0 }
 0x3e5   :  { %6388 = vmatpush.bf16.msra.mxu1 %v9543_v13  ;;  %v10409_v13 = vld [vmem:[#allocation12 + $0xc00] sm:$0xf0] }
 0x3e6   :  { %6460 = vmatpush.bf16.msrb.mxu2 %v8819_v25  ;;  %6472 = vmatpush.bf16.msrb.mxu3 %v9099_v36  ;;  %v8763_v36 = vor.u32 %v10241_v45, %v8762_v39  ;;  %v9435_v43 = vor.u32 %v10409_v13, %v9434_v41  ;;  %v10206_v41 = vld [vmem:[#allocation12 + $0x5a8] sm:$0xf0] }
 0x3e8   :  { %6430 = vmatpush.bf16.msrb.mxu0 %v8427_v28  ;;  %v6113_v28 = vadd.f32 %v6112_v26, %v6099_v55 }
 0x3e9   :  { %6461 = vmatmul.bf16.vlgmr.msrb.gmra.mxu2 %v10986_v53  ;;  %v5973_v53 = vadd.f32 %v11108_v18, %v5959_v60  ;;  %6389 = vmatpush.bf16.msra.mxu1 %v9515_v11  ;;  %v9487_v18 = vor.u32 %v10419_v57, %v9484_v20  ;;  %v8734_v60 = vld [vmem:[#allocation12 + $0x670] sm:$0xf]  ;;  %v6114_v57 = vpop.f32.mrf.mxu1  ;;  %v10227_v20 = vld [vmem:[#allocation12 + $0x650] sm:$0xf0] }
 0x3ea   :  { %6473 = vmatpush.bf16.msrb.mxu3 %v9071_v48  ;;  %v6127_v8 = vadd.f32 %v6126_v6, %v6113_v28 }
 0x3eb   :  { %v5987_v25 = vadd.f32 %v11110_v1, %v5973_v53  ;;  %v5961_v1 = vadd.f32 %v11112_v35, %v3409_v58  ;;  %v9406_v58 = vld [vmem:[#allocation12 + $0xbb0] sm:$0xf]  ;;  %v8735_v53 = vor.u32 %v10234_v27, %v8734_v60  ;;  %v8594_v27 = vld [vmem:[#allocation12 + $0x558] sm:$0xf] }
 0x3ec   :  { %6431 = vmatpush.bf16.msrb.mxu0 %v8399_v12  ;;  %v6140_v0 = vpop.f32.mrf.mxu3  ;;  %v8706_v12 = vld [vmem:[#allocation12 + $0x638] sm:$0xf] }
 0x3ed   :  { %v6001_v38 = vadd.f32 %v11114_v24, %v5987_v25  ;;  %6390 = vmatpush.bf16.msra.mxu1 %v9487_v18  ;;  %v5975_v14 = vadd.f32 %v11117_v52, %v5961_v1  ;;  %v6087_v52 = vadd.f32 %v6086_v21, %v6073_v42  ;;  %v6141_v31 = vadd.f32 %v6140_v0, %v6127_v8  ;;  %v6128_v25 = vpop.f32.mrf.mxu2  ;;  %v8622_v1 = vld [vmem:[#allocation12 + $0x590] sm:$0xf]  ;;  %v9686_v8 = vld [vmem:[#allocation12 + $0xde0] sm:$0xf] }
 0x3ee   :  { %6474 = vmatpush.bf16.msrb.mxu3 %v9043_v44  ;;  %v8707_v40 = vor.u32 %v10227_v20, %v8706_v12  ;;  %v9351_v21 = vor.u32 %v10388_v62, %v9350_v3  ;;  %v9322_v44 = vld [vmem:[#allocation12 + $0xb08] sm:$0xf]  ;;  %v8623_v42 = vor.u32 %v10206_v41, %v8622_v1  ;;  %v9490_v62 = vld [vmem:[#allocation12 + $0xc58] sm:$0xf]  ;;  %v3411_v41 = vperm.slane %v11140_v5, 4 }
 0x3ef   :  { %v6015_v24 = vadd.f32 %v11119_v15, %v6001_v38  ;;  %v5989_v35 = vadd.f32 %v11121_v19, %v5975_v14  ;;  %v6101_v16 = vadd.f32 %v6100_v54, %v6087_v52  ;;  %v9407_v19 = vor.u32 %v10402_v63, %v9406_v58  ;;  %v9294_v14 = vld [vmem:[#allocation12 + $0xad0] sm:$0xf]  ;;  %v9266_v58 = vld [vmem:[#allocation12 + $0xa98] sm:$0xf]  ;;  %v10367_v52 = vld [vmem:[#allocation12 + $0xab0] sm:$0xf0] }
 0x3f0   :  { %6432 = vmatpush.bf16.msrb.mxu0 %v8371_v37  ;;  %6391 = vmatmul.bf16.vlgmr.msra.gmra.mxu1 %v11006_v2  ;;  %v8650_v37 = vld [vmem:[#allocation12 + $0x5c8] sm:$0xf] }
 0x3f1   :  { %6439 = vmatpush.bf16.msrb.mxu1 %v8791_v51  ;;  %v6029_v15 = vadd.f32 %v11123_v46, %v6015_v24  ;;  %v6003_v11 = vadd.f32 %v11125_v49, %v5989_v35  ;;  %6475 = vmatmul.bf16.vlgmr.msrb.gmra.mxu3 %v10991_v47  ;;  %v6115_v48 = vadd.f32 %v6114_v57, %v6101_v16  ;;  %v6154_v49 = vpop.f32.mrf.mxu0  ;;  %v6168_v38 = vpop.f32.mrf.mxu1  ;;  %v10213_v51 = vld [vmem:[#allocation12 + $0x5e0] sm:$0xf0]  ;;  %v10374_v24 = vld [vmem:[#allocation12 + $0xae8] sm:$0xf0]  ;;  %v10199_v35 = vld [vmem:[#allocation12 + $0x570] sm:$0xf0] }
 0x3f2   :  { %v9379_v47 = vor.u32 %v10395_v32, %v9378_v9  ;;  %v6155_v34 = vadd.f32 %v6154_v49, %v6141_v31  ;;  %v8651_v45 = vor.u32 %v10213_v51, %v8650_v37  ;;  %v9658_v57 = vld [vmem:[#allocation12 + $0xda8] sm:$0xf]  ;;  %v9630_v9 = vld [vmem:[#allocation12 + $0xd70] sm:$0xf]  ;;  %v10458_v32 = vld [vmem:[#allocation12 + $0xd88] sm:$0xf0] }
 0x3f3   :  { %6433 = vmatmul.bf16.vlgmr.msrb.gmra.mxu0 %v10982_v56  ;;  %v6043_v56 = vadd.f32 %v11127_v59, %v6029_v15  ;;  %v6017_v46 = vadd.f32 %v11129_v50, %v6003_v11  ;;  %v6129_v7 = vadd.f32 %v6128_v25, %v6115_v48  ;;  %v8679_v59 = vor.u32 %v10220_v23, %v8678_v22  ;;  %v9602_v48 = vld [vmem:[#allocation12 + $0xd38] sm:$0xf]  ;;  %v9574_v49 = vld [vmem:[#allocation12 + $0xd00] sm:$0xf]  ;;  %v9546_v22 = vld [vmem:[#allocation12 + $0xcc8] sm:$0xf] }
 0x3f4   :  { %6481 = vmatpush.bf16.msra.mxu0 %v9463_v29  ;;  %v6169_v50 = vadd.f32 %v6168_v38, %v6155_v34  ;;  %v6142_v55 = vpop.f32.mrf.mxu3  ;;  %v10381_v29 = vld [vmem:[#allocation12 + $0xb20] sm:$0xf0]  ;;  %v8595_v15 = vor.u32 %v10199_v35, %v8594_v27  ;;  %v9267_v11 = vor.u32 %v10367_v52, %v9266_v58  ;;  %v9631_v31 = vor.u32 %v10458_v32, %v9630_v9  ;;  %v9518_v25 = vld [vmem:[#allocation12 + $0xc90] sm:$0xf] }
 0x3f5   :  { %6440 = vmatpush.bf16.msrb.mxu1 %v8763_v36  ;;  %v6057_v26 = vadd.f32 %v11134_v4, %v6043_v56  ;;  %v6031_v18 = vadd.f32 %v11136_v61, %v6017_v46  ;;  %v6143_v39 = vadd.f32 %v6142_v55, %v6129_v7  ;;  %v9323_v61 = vor.u32 %v10381_v29, %v9322_v44  ;;  %v10451_v56 = vld [vmem:[#allocation12 + $0xd50] sm:$0xf0]  ;;  %v10437_v23 = vld [vmem:[#allocation12 + $0xce0] sm:$0xf0]  ;;  %v6182_v7 = vpop.f32.mrf.mxu2 }
 0x3f6   :  { %v9603_v46 = vor.u32 %v10451_v56, %v9602_v48 }
 0x3f7   :  { %10497 = vtanh.f32 %v6057_v26  ;;  %v6045_v4 = vadd.f32 %v11138_v30, %v6031_v18  ;;  %v9295_v30 = vor.u32 %v10374_v24, %v9294_v14  ;;  %v10430_v26 = vld [vmem:[#allocation12 + $0xca8] sm:$0xf0]  ;;  %v6183_v14 = vadd.f32 %v6182_v7, %v3411_v41 }
 0x3f8   :  { %6482 = vmatpush.bf16.msra.mxu0 %v9435_v43  ;;  %10499 = vtanh.f32 %v6169_v50  ;;  %v9519_v3 = vor.u32 %v10430_v26, %v9518_v25 }
 0x3f9   :  { %6441 = vmatpush.bf16.msrb.mxu1 %v8735_v53  ;;  %v6059_v13 = vadd.f32 %v11143_v10, %v6045_v4  ;;  %v6156_v28 = vpop.f32.mrf.mxu0  ;;  %v6170_v36 = vpop.f32.mrf.mxu1  ;;  %v10472_v10 = vld [vmem:[#allocation12 + $0xdf8] sm:$0xf0]  ;;  %v10465_v53 = vld [vmem:[#allocation12 + $0xdc0] sm:$0xf0] }
 0x3fa   :  { %v6157_v6 = vadd.f32 %v6156_v28, %v6143_v39  ;;  %v9687_v0 = vor.u32 %v10472_v10, %v9686_v8  ;;  %v9659_v12 = vor.u32 %v10465_v53, %v9658_v57  ;;  %v3412_v28 = vperm.slane %v11140_v5, 5 }
 0x3fb   :  { %10501 = vtanh.f32 %v6059_v13 }
 0x3fc   :  { %6483 = vmatpush.bf16.msra.mxu0 %v9407_v19  ;;  %v6171_v60 = vadd.f32 %v6170_v36, %v6157_v6  ;;  %v6196_v18 = vpop.f32.mrf.mxu3 }
 0x3fd   :  { %6442 = vmatpush.bf16.msrb.mxu1 %v8707_v40  ;;  %v10498_v54 = vpop.eup %10497  ;;  %v10444_v40 = vld [vmem:[#allocation12 + $0xd18] sm:$0xf0]  ;;  %v6197_v6 = vadd.f32 %v6196_v18, %v6183_v14 }
 0x3fe   :  { %v10500_v43 = vpop.eup %10499  ;;  %10503 = vtanh.f32 %v6171_v60 }
 0x3ff   :  { %v6524_v63 = vpack.c.bf16 %v10500_v43, %v10498_v54 }
 0x400   :  { %6484 = vmatpush.bf16.msra.mxu0 %v9379_v47  ;;  %v9575_v47 = vor.u32 %v10444_v40, %v9574_v49 }
 0x401   :  { %6443 = vmatpush.bf16.msrb.mxu1 %v8679_v59  ;;  %6532 = vst [vmem:[%s11199_s9 + $0x8] sm:$0xff] %v6524_v63  ;;  %v10502_v16 = vpop.eup %10501  ;;  %v6210_v38 = vpop.f32.mrf.mxu0 }
 0x402   :  { %v6184_v59 = vpop.f32.mrf.mxu2 }
 0x403   :  { %v6185_v58 = vadd.f32 %v6184_v59, %v3411_v41 }
 0x404   :  { %6485 = vmatpush.bf16.msra.mxu0 %v9351_v21  ;;  %v10504_v19 = vpop.eup %10503  ;;  %v6198_v21 = vpop.f32.mrf.mxu3 }
 0x405   :  { %6444 = vmatpush.bf16.msrb.mxu1 %v8651_v45  ;;  %v6528_v20 = vpack.c.bf16 %v10504_v19, %v10502_v16  ;;  %v6199_v52 = vadd.f32 %v6198_v21, %v6185_v58 }
 0x407   :  { %6536 = vst [vmem:[%s11199_s9 + $0x24] sm:$0xff] %v6528_v20 }
 0x408   :  { %6486 = vmatpush.bf16.msra.mxu0 %v9323_v61 }
 0x409   :  { %6445 = vmatpush.bf16.msrb.mxu1 %v8623_v42  ;;  %v6212_v51 = vpop.f32.mrf.mxu0  ;;  %v6211_v42 = vadd.f32 %v6210_v38, %v6197_v6 }
 0x40a   :  { %v6238_v37 = vpop.f32.mrf.mxu2 }
 0x40c   :  { %6487 = vmatpush.bf16.msra.mxu0 %v9295_v30  ;;  %v6252_v55 = vpop.f32.mrf.mxu3 }
 0x40d   :  { %6446 = vmatpush.bf16.msrb.mxu1 %v8595_v15  ;;  %v6224_v50 = vpop.f32.mrf.mxu1 }
 0x40e   :  { %v6225_v30 = vadd.f32 %v6224_v50, %v6211_v42 }
 0x410   :  { %6488 = vmatpush.bf16.msra.mxu0 %v9267_v11  ;;  %6447 = vmatmul.bf16.vlgmr.msrb.gmra.mxu1 %v10978_v33  ;;  %v9547_v33 = vor.u32 %v10437_v23, %v9546_v22  ;;  %v6239_v8 = vadd.f32 %v6238_v37, %v6225_v30 }
 0x411   :  { %6495 = vmatpush.bf16.msra.mxu1 %v9687_v0  ;;  %v6266_v29 = vpop.f32.mrf.mxu0  ;;  %v6213_v0 = vadd.f32 %v6212_v51, %v6199_v52 }
 0x412   :  { %v6240_v39 = vpop.f32.mrf.mxu2  ;;  %v6253_v16 = vadd.f32 %v6252_v55, %v6239_v8 }
 0x413   :  { %6489 = vmatmul.bf16.vlgmr.msra.gmra.mxu0 %v10999_v17  ;;  %v10423_v17 = vld [vmem:[#allocation12 + $0xc70] sm:$0xf0] }
 0x414   :  { %v9491_v34 = vor.u32 %v10423_v17, %v9490_v62  ;;  %v6254_v45 = vpop.f32.mrf.mxu3  ;;  %v6267_v48 = vadd.f32 %v6266_v29, %v6253_v16 }
 0x415   :  { %6496 = vmatpush.bf16.msra.mxu1 %v9659_v12  ;;  %v6226_v44 = vpop.f32.mrf.mxu1 }
 0x416   :  { %v6227_v19 = vadd.f32 %v6226_v44, %v6213_v0 }
 0x418   :  { %v6241_v56 = vadd.f32 %v6240_v39, %v6227_v19  ;;  %v3413_v39 = vperm.slane %v11140_v5, 6 }
 0x419   :  { %6497 = vmatpush.bf16.msra.mxu1 %v9631_v31  ;;  %v6268_v1 = vpop.f32.mrf.mxu0 }
 0x41a   :  { %v6294_v61 = vpop.f32.mrf.mxu2  ;;  %v6255_v23 = vadd.f32 %v6254_v45, %v6241_v56 }
 0x41b   :  { %v6295_v36 = vadd.f32 %v6294_v61, %v3412_v28 }
 0x41c   :  { %v6308_v13 = vpop.f32.mrf.mxu3  ;;  %v6269_v62 = vadd.f32 %v6268_v1, %v6255_v23 }
 0x41d   :  { %6498 = vmatpush.bf16.msra.mxu1 %v9603_v46  ;;  %v6309_v60 = vadd.f32 %v6308_v13, %v6295_v36 }
 0x421   :  { %6499 = vmatpush.bf16.msra.mxu1 %v9575_v47 }
 0x422   :  { %v6296_v54 = vpop.f32.mrf.mxu2 }
 0x423   :  { %v6297_v11 = vadd.f32 %v6296_v54, %v3412_v28 }
 0x424   :  { %v6310_v27 = vpop.f32.mrf.mxu3 }
 0x425   :  { %6500 = vmatpush.bf16.msra.mxu1 %v9547_v33  ;;  %v6311_v57 = vadd.f32 %v6310_v27, %v6297_v11 }
 0x429   :  { %6501 = vmatpush.bf16.msra.mxu1 %v9519_v3 }
 0x42c   :  { %v6350_v10 = vpop.f32.mrf.mxu2 }
 0x42d   :  { %6502 = vmatpush.bf16.msra.mxu1 %v9491_v34  ;;  %v6280_v4 = vpop.f32.mrf.mxu1 }
 0x42e   :  { %v6281_v40 = vadd.f32 %v6280_v4, %v6267_v48 }
 0x430   :  { %6503 = vmatmul.bf16.vlgmr.msra.gmra.mxu1 %v11006_v2  ;;  %v6322_v24 = vpop.f32.mrf.mxu0  ;;  %10505 = vtanh.f32 %v6281_v40 }
 0x431   :  { %v6323_v35 = vadd.f32 %v6322_v24, %v6309_v60 }
 0x434   :  { %v6364_v12 = vpop.f32.mrf.mxu3  ;;  %v6352_v49 = vpop.f32.mrf.mxu2 }
 0x435   :  { %v6282_v2 = vpop.f32.mrf.mxu1 }
 0x436   :  { %v6283_v17 = vadd.f32 %v6282_v2, %v6269_v62  ;;  %v10506_v18 = vpop.eup %10505 }
 0x438   :  { %v6324_v15 = vpop.f32.mrf.mxu0 }
 0x439   :  { %v6325_v9 = vadd.f32 %v6324_v15, %v6311_v57 }
 0x43c   :  { %v6366_v26 = vpop.f32.mrf.mxu3 }
 0x44c   :  { %v6406_v44 = vpop.f32.mrf.mxu2 }
 0x44d   :  { %v6336_v43 = vpop.f32.mrf.mxu1  ;;  %v6407_v61 = vadd.f32 %v6406_v44, %v3413_v39 }
 0x44e   :  { %v6337_v63 = vadd.f32 %v6336_v43, %v6323_v35 }
 0x450   :  { %v6351_v53 = vadd.f32 %v6350_v10, %v6337_v63  ;;  %v6378_v46 = vpop.f32.mrf.mxu0 }
 0x452   :  { %v6365_v32 = vadd.f32 %v6364_v12, %v6351_v53 }
 0x454   :  { %v6379_v47 = vadd.f32 %v6378_v46, %v6365_v32  ;;  %v6420_v29 = vpop.f32.mrf.mxu3  ;;  %v6408_v45 = vpop.f32.mrf.mxu2 }
 0x455   :  { %v6338_v20 = vpop.f32.mrf.mxu1  ;;  %v6421_v41 = vadd.f32 %v6420_v29, %v6407_v61  ;;  %v6409_v6 = vadd.f32 %v6408_v45, %v3413_v39 }
 0x456   :  { %v6339_v31 = vadd.f32 %v6338_v20, %v6325_v9 }
 0x458   :  { %v6353_v22 = vadd.f32 %v6352_v49, %v6339_v31  ;;  %v6380_v34 = vpop.f32.mrf.mxu0 }
 0x45a   :  { %v6367_v3 = vadd.f32 %v6366_v26, %v6353_v22 }
 0x45c   :  { %v6381_v7 = vadd.f32 %v6380_v34, %v6367_v3  ;;  %v6422_v13 = vpop.f32.mrf.mxu3 }
 0x45d   :  { %v6423_v54 = vadd.f32 %v6422_v13, %v6409_v6 }
 0x46c   :  { %v6462_v14 = vpop.f32.mrf.mxu2 }
 0x46d   :  { %v6392_v33 = vpop.f32.mrf.mxu1 }
 0x46e   :  { %v6393_v25 = vadd.f32 %v6392_v33, %v6379_v47 }
 0x470   :  { %10507 = vtanh.f32 %v6393_v25  ;;  %v6434_v4 = vpop.f32.mrf.mxu0 }
 0x471   :  { %10509 = vtanh.f32 %v6283_v17  ;;  %v6435_v2 = vadd.f32 %v6434_v4, %v6421_v41 }
 0x474   :  { %v6476_v42 = vpop.f32.mrf.mxu3  ;;  %v6464_v5 = vpop.f32.mrf.mxu2 }
 0x475   :  { %v6394_v38 = vpop.f32.mrf.mxu1 }
 0x476   :  { %v10508_v59 = vpop.eup %10507  ;;  %v6395_v50 = vadd.f32 %v6394_v38, %v6381_v7 }
 0x477   :  { %v6525_v21 = vpack.c.bf16 %v10508_v59, %v10506_v18  ;;  %v10510_v37 = vpop.eup %10509 }
 0x478   :  { %10511 = vtanh.f32 %v6395_v50  ;;  %v6436_v24 = vpop.f32.mrf.mxu0 }
 0x479   :  { %6533 = vst [vmem:[%s11199_s9 + $0x10] sm:$0xff] %v6525_v21  ;;  %v6437_v60 = vadd.f32 %v6436_v24, %v6423_v54 }
 0x47c   :  { %v6478_v10 = vpop.f32.mrf.mxu3 }
 0x47e   :  { %v10512_v51 = vpop.eup %10511 }
 0x47f   :  { %v6529_v55 = vpack.c.bf16 %v10512_v51, %v10510_v37 }
 0x481   :  { %6537 = vst [vmem:[%s11199_s9 + $0x2c] sm:$0xff] %v6529_v55 }
 0x48d   :  { %v6448_v1 = vpop.f32.mrf.mxu1 }
 0x48e   :  { %v6449_v28 = vadd.f32 %v6448_v1, %v6435_v2 }
 0x490   :  { %v6463_v36 = vadd.f32 %v6462_v14, %v6449_v28  ;;  %v6490_v35 = vpop.f32.mrf.mxu0 }
 0x492   :  { %v6477_v30 = vadd.f32 %v6476_v42, %v6463_v36 }
 0x494   :  { %v6491_v58 = vadd.f32 %v6490_v35, %v6477_v30 }
 0x495   :  { %v6450_v43 = vpop.f32.mrf.mxu1 }
 0x496   :  { %v6451_v27 = vadd.f32 %v6450_v43, %v6437_v60 }
 0x498   :  { %v6465_v63 = vadd.f32 %v6464_v5, %v6451_v27  ;;  %v6492_v11 = vpop.f32.mrf.mxu0 }
 0x49a   :  { %v6479_v15 = vadd.f32 %v6478_v10, %v6465_v63 }
 0x49c   :  { %v6493_v0 = vadd.f32 %v6492_v11, %v6479_v15 }
 0x4ad   :  { %v6504_v52 = vpop.f32.mrf.mxu1 }
 0x4ae   :  { %v6505_v8 = vadd.f32 %v6504_v52, %v6491_v58 }
 0x4b0   :  { %10513 = vtanh.f32 %v6505_v8 }
 0x4b5   :  { %v6506_v57 = vpop.f32.mrf.mxu1 }
 0x4b6   :  { %v10514_v53 = vpop.eup %10513  ;;  %v6507_v16 = vadd.f32 %v6506_v57, %v6493_v0 }
 0x4b7   :  { %v6526_v19 = vpack.c.bf16 %v10514_v53, %v10514_v53 }
 0x4b8   :  { %10515 = vtanh.f32 %v6507_v16 }
 0x4b9   :  { %6534 = vst [vmem:[%s11199_s9 + $0x18] sm:$0xf] %v6526_v19 }
 0x4be   :  { %v10516_v12 = vpop.eup %10515 }
 0x4bf   :  { %v6530_v20 = vpack.c.bf16 %v10516_v12, %v10516_v12 }
 0x4c1   :  { %6538 = vst [vmem:[%s11199_s9 + $0x34] sm:$0xf] %v6530_v20 }
 0x4c2   :  { %6543 = vsyncpa [#allocation3], 1 }
 0x4c3   :  { %6544 = vsyncpa [#allocation5], 1 }
 0x4c4   :  { %6545 = vsyncpa [#allocation8], 1 }
 0x4c5   :  { %6546 = vsyncpa [#allocation11], 1 }
 0x4c6   :  { %6547 = vsyncpa [#allocation14], 1 }

</bundles_post_ra>
